<compile_context>
chip_gen: v7x
topology: tpu7x:2x2x1
jax: 0.10.0
libtpu: 0.0.40
codegen_flags: <defaults>
</compile_context>

<pallas_src>
import functools

import jax
import jax.numpy as jnp
from jax import lax
from jax.experimental import pallas as pl
from jax.experimental.pallas import tpu as pltpu

_LANE = 128      # lane width of a vreg (last dim)
_SUBLANE = 8     # sublane count of a vreg (second-to-last dim)
MATMUL_DTYPE = jnp.bfloat16   # MXU operand dtype (accumulation is always f32)


# --------------------------------------------------------------------------
# small helpers
# --------------------------------------------------------------------------
def _round_up(x, m):
    return (x + m - 1) // m * m


def _pad_gate_dim(a, h2, h2p):
    """Pad last dim 4*h2 -> 4*h2p, zero-padding each gate block
    (PyTorch [i|f|g|o] order preserved, each block padded from h2 to h2p)."""
    lead = a.shape[:-1]
    a4 = a.reshape(lead + (4, h2))
    a4 = jnp.pad(a4, [(0, 0)] * (a4.ndim - 1) + [(0, h2p - h2)])
    return a4.reshape(lead + (4 * h2p,))


def _vmem_capacity_bytes():
    """Per-TensorCore VMEM capacity (generation aware), with a conservative
    fallback (v7x size) if the query is unavailable."""
    try:
        cap = int(pltpu.get_tpu_info().vmem_capacity_bytes)
        if cap > 0:
            return cap
    except Exception:
        pass
    return 64 * 1024 * 1024


def _vmem_limit_bytes():
    # Explicit scoped limit: 3/4 of physical leaves headroom for compiler
    # internal scratch on every generation (96 MiB v5e/v6e, 48 MiB v7x).
    return int(_vmem_capacity_bytes() * 3 // 4)


def _layer_fixed_vmem(in_dim, h2p, b_pad, w_itemsize):
    """VMEM that does not scale with the time-block size."""
    gate_w = 4 * h2p
    return (in_dim * gate_w * w_itemsize      # W_ih^T  (single buffered)
            + h2p * gate_w * w_itemsize       # W_hh^T  (single buffered)
            + gate_w * 4                      # bias    (single buffered)
            + 2 * b_pad * h2p * 4             # h0, c0  (single buffered)
            + 2 * b_pad * h2p * 4             # h/c scratch state
            + 4 * b_pad * h2p * 4)            # hN, cN outputs (double buffered)


def _pick_time_block(seq_len, per_t_bytes, fixed_bytes, budget_bytes):
    """Largest time block whose buffers fit the available VMEM budget;
    kept remainder-free for the 8-deep unroll whenever possible."""
    avail = max(budget_bytes - fixed_bytes, per_t_bytes)
    cap = int(max(1, min(avail // per_t_bytes, 256)))
    if seq_len <= min(cap, 16):
        return seq_len                        # tiny: one fully-unrolled block
    if cap > 16:
        cap -= cap % 8                        # keep 8-deep unroll remainder-free
    if seq_len <= cap:
        t = _round_up(seq_len, 8)             # single (possibly tail-masked) block
        return t if t <= cap else seq_len
    best_div = 1
    for d in range(1, cap + 1):
        if seq_len % d == 0:
            best_div = d
    # prefer an exact divisor when a big enough one exists; otherwise pad+mask
    return best_div if 2 * best_div >= cap else cap


def _pick_unroll(t_blk):
    if t_blk <= 16:
        return t_blk                          # fully unroll tiny blocks
    for u in (8, 7, 6, 5, 4, 3, 2):
        if t_blk % u == 0:
            return u
    return 1


# --------------------------------------------------------------------------
# Pallas kernel: one LSTM layer (fused input projection + recurrence)
# --------------------------------------------------------------------------
def _lstm_layer_kernel(seq_ref, h0_ref, c0_ref, wih_ref, whh_ref, bias_ref,
                       y_ref, hN_ref, cN_ref,
                       xproj_sc, h_sc, c_sc,
                       *, t_blk, seq_valid, needs_mask, unroll):
    """grid=(num_time_blocks,), sequential ("arbitrary") over time blocks.

    seq_ref : (T*B_pad, in_dim)  bf16  -- raw layer input, time-major rows
    wih_ref : (in_dim, 4*H2p)    bf16  -- W_ih^T, gate-major-padded
    whh_ref : (H2p,    4*H2p)    bf16  -- W_hh^T, gate-major-padded
    bias_ref: (1, 4*H2p)         f32   -- b_ih + b_hh
    y_ref   : (T*B_pad, H2p)     bf16/f32
    xproj_sc: (T*B_pad, 4*H2p)   f32   -- hoisted input projection (scratch)
    h_sc/c_sc: (B_pad, H2p)      f32   -- recurrent state, persists across blocks
    """
    blk = pl.program_id(0)
    b_pad, h2p = h_sc.shape

    @pl.when(blk == 0)
    def _init():
        h_sc[...] = h0_ref[...]
        c_sc[...] = c0_ref[...]

    # Hoisted input projection for the whole time block: one MXU matmul with
    # M = T*B_pad (instead of T tiny M=B_pad matmuls), off the serial chain,
    # and no x_proj HBM round trip.
    xp = jnp.dot(seq_ref[...], wih_ref[...], preferred_element_type=jnp.float32)
    xproj_sc[...] = xp + bias_ref[...]

    def step(t, carry):
        row0 = pl.multiple_of(t * b_pad, b_pad)
        gates = xproj_sc[pl.ds(row0, b_pad), :] + jnp.dot(
            h_sc[...].astype(whh_ref.dtype), whh_ref[...],
            preferred_element_type=jnp.float32)          # (B_pad, 4*H2p) f32
        # PyTorch gate order [i | f | g | o]; each slice is 128-lane aligned.
        i_g = jax.nn.sigmoid(gates[:, 0 * h2p:1 * h2p])
        f_g = jax.nn.sigmoid(gates[:, 1 * h2p:2 * h2p])
        g_g = jnp.tanh(gates[:, 2 * h2p:3 * h2p])
        o_g = jax.nn.sigmoid(gates[:, 3 * h2p:4 * h2p])

        c_new = f_g * c_sc[...] + i_g * g_g
        h_new = o_g * jnp.tanh(c_new)

        if needs_mask:
            # Tail steps beyond the true sequence length hold the state.
            valid = (blk * t_blk + t) < seq_valid
            c_new = jnp.where(valid, c_new, c_sc[...])
            h_new = jnp.where(valid, h_new, h_sc[...])

        c_sc[...] = c_new
        h_sc[...] = h_new
        y_ref[pl.ds(row0, b_pad), :] = h_new.astype(y_ref.dtype)
        return carry

    lax.fori_loop(0, t_blk, step, 0, unroll=unroll)

    # Cheap (B_pad x H2p) copies each block: final h/c stay correct under any
    # output writeback policy for the constant-index hN/cN blocks.
    hN_ref[...] = h_sc[...]
    cN_ref[...] = c_sc[...]


def lstm_layer(seq2d, h0p, c0p, wih_t, whh_t, bias, *, b_pad, seq_valid, y_dtype):
    """One LSTM layer.

    seq2d: [L_in*B_pad, in_dim] bf16 (L_in may already contain tail padding)
    h0p/c0p: [B_pad, H2p] f32; wih_t/whh_t bf16; bias [1, 4*H2p] f32.
    Returns (y2d [L_pad*B_pad, H2p] y_dtype, hN [B_pad,H2p], cN, L_pad).
    """
    total_rows, in_dim = seq2d.shape
    l_in = total_rows // b_pad
    h2p, gate_w = whh_t.shape
    assert gate_w == 4 * h2p and h0p.shape == (b_pad, h2p)

    # Generation-aware VMEM accounting.
    budget = _vmem_capacity_bytes() // 2
    fixed = _layer_fixed_vmem(in_dim, h2p, b_pad, jnp.dtype(wih_t.dtype).itemsize)
    per_t = b_pad * (2 * in_dim * jnp.dtype(seq2d.dtype).itemsize   # seq block x2
                     + 2 * h2p * jnp.dtype(y_dtype).itemsize        # y block x2
                     + gate_w * 4)                                  # x_proj scratch
    t_blk = _pick_time_block(l_in, per_t, fixed, budget)
    l_pad = pl.cdiv(l_in, t_blk) * t_blk
    if l_pad > l_in:
        seq2d = jnp.pad(seq2d, ((0, (l_pad - l_in) * b_pad), (0, 0)))
    num_blocks = l_pad // t_blk
    rows_blk = t_blk * b_pad

    kernel = functools.partial(
        _lstm_layer_kernel,
        t_blk=t_blk, seq_valid=seq_valid,
        needs_mask=(l_pad > seq_valid), unroll=_pick_unroll(t_blk))

    # Loop-invariant operands: single-buffered (constant index maps).
    inv = dict(pipeline_mode=pl.Buffered(1))
    grid_spec = pltpu.PrefetchScalarGridSpec(
        num_scalar_prefetch=0,
        grid=(num_blocks,),
        in_specs=[
            pl.BlockSpec((rows_blk, in_dim), lambda i: (i, 0)),           # seq
            pl.BlockSpec((b_pad, h2p), lambda i: (0, 0), **inv),          # h0
            pl.BlockSpec((b_pad, h2p), lambda i: (0, 0), **inv),          # c0
            pl.BlockSpec((in_dim, gate_w), lambda i: (0, 0), **inv),      # W_ih^T
            pl.BlockSpec((h2p, gate_w), lambda i: (0, 0), **inv),         # W_hh^T
            pl.BlockSpec((1, gate_w), lambda i: (0, 0), **inv),           # bias
        ],
        out_specs=[
            pl.BlockSpec((rows_blk, h2p), lambda i: (i, 0)),              # y
            pl.BlockSpec((b_pad, h2p), lambda i: (0, 0)),                 # hN
            pl.BlockSpec((b_pad, h2p), lambda i: (0, 0)),                 # cN
        ],
        scratch_shapes=[
            pltpu.VMEM((rows_blk, gate_w), jnp.float32),   # x @ W_ih^T + b
            pltpu.VMEM((b_pad, h2p), jnp.float32),         # h state
            pltpu.VMEM((b_pad, h2p), jnp.float32),         # c state
        ],
    )

    y2d, h_last, c_last = pl.pallas_call(
        kernel,
        grid_spec=grid_spec,
        out_shape=(
            jax.ShapeDtypeStruct((l_pad * b_pad, h2p), y_dtype),
            jax.ShapeDtypeStruct((b_pad, h2p), jnp.float32),
            jax.ShapeDtypeStruct((b_pad, h2p), jnp.float32),
        ),
        compiler_params=pltpu.CompilerParams(
            dimension_semantics=("arbitrary",),            # sequential recurrence
            vmem_limit_bytes=_vmem_limit_bytes()),
    )(seq2d, h0p, c0p, wih_t, whh_t, bias)
    return y2d, h_last, c_last, l_pad


# --------------------------------------------------------------------------
# parameters & forward wrapper
# --------------------------------------------------------------------------
def init_complex_lstm_params(key, input_size, hidden_size, num_layers,
                             matmul_dtype=MATMUL_DTYPE):
    """Deterministic synthetic params with PyTorch nn.LSTM shapes/init range,
    pre-transposed and padded into the gate-major 128-lane-aligned layout."""
    h2 = 2 * hidden_size
    i2 = 2 * input_size
    h2p = _round_up(h2, _LANE)
    k = 1.0 / (h2 ** 0.5)
    params = []
    for layer in range(num_layers):
        in_sz = i2 if layer == 0 else h2
        in_pad = _round_up(in_sz, _LANE)     # lane-aligned K for the fused matmul
        key, k1, k2, k3, k4 = jax.random.split(key, 5)
        w_ih = jax.random.uniform(k1, (4 * h2, in_sz), jnp.float32, -k, k)
        w_hh = jax.random.uniform(k2, (4 * h2, h2), jnp.float32, -k, k)
        b_ih = jax.random.uniform(k3, (4 * h2,), jnp.float32, -k, k)
        b_hh = jax.random.uniform(k4, (4 * h2,), jnp.float32, -k, k)

        wih_t = _pad_gate_dim(w_ih.T, h2, h2p)                 # [in_sz, 4*H2p]
        wih_t = jnp.pad(wih_t, ((0, in_pad - in_sz), (0, 0)))  # [in_pad, 4*H2p]
        whh_t = _pad_gate_dim(w_hh.T, h2, h2p)                 # [h2, 4*H2p]
        whh_t = jnp.pad(whh_t, ((0, h2p - h2), (0, 0)))        # [H2p, 4*H2p]
        bias = _pad_gate_dim(b_ih + b_hh, h2, h2p).reshape(1, 4 * h2p)
        params.append((wih_t.astype(matmul_dtype),
                       whh_t.astype(matmul_dtype),
                       bias.astype(jnp.float32)))
    return params


def complex_lstm_forward(x, h0, c0, params):
    """x: [B, L, Ci] complex64; h0/c0: [num_layers, B, 2*hidden] f32.
    Returns (y [B, L, hidden] complex64, (hN, cN) each [num_layers, B, 2*hidden])."""
    batch, seq_len, _ = x.shape
    h2 = h0.shape[-1]                     # 2*hidden (true width)
    h2p = params[0][1].shape[0]           # padded to multiple of 128
    in0 = params[0][0].shape[0]           # layer-0 K, lane padded
    b_pad = _round_up(batch, _SUBLANE)
    num_layers = len(params)

    xr = jnp.concatenate([jnp.real(x), jnp.imag(x)], axis=-1).astype(jnp.float32)
    i2 = xr.shape[-1]
    seq = jnp.transpose(xr, (1, 0, 2))                              # [L, B, 2*Ci]
    seq = jnp.pad(seq, ((0, 0), (0, b_pad - batch), (0, in0 - i2)))
    seq2d = seq.astype(MATMUL_DTYPE).reshape(seq_len * b_pad, in0)  # time-major rows

    # Zero-padded state keeps padded gate lanes exactly zero through the
    # recurrence (pre-activation 0 -> i=f=o=0.5, g=0 -> c=h=0); do not change
    # this padding without also masking the padded lanes.
    h0p = jnp.pad(h0, ((0, 0), (0, b_pad - batch), (0, h2p - h2)))
    c0p = jnp.pad(c0, ((0, 0), (0, b_pad - batch), (0, h2p - h2)))

    h_fin, c_fin = [], []
    l_pad = seq_len
    for layer, (wih_t, whh_t, bias) in enumerate(params):
        last = layer == num_layers - 1
        # Intermediate-layer y stays bf16 (next layer casts to bf16 anyway);
        # the final layer emits f32 to preserve the complex64 output precision.
        y_dtype = jnp.float32 if last else MATMUL_DTYPE
        seq2d, h_last, c_last, l_pad = lstm_layer(
            seq2d, h0p[layer], c0p[layer], wih_t, whh_t, bias,
            b_pad=b_pad, seq_valid=seq_len, y_dtype=y_dtype)
        h_fin.append(h_last[:batch, :h2])
        c_fin.append(c_last[:batch, :h2])

    y = seq2d.reshape(l_pad, b_pad, h2p)[:seq_len, :batch, :h2]
    y = jnp.transpose(y, (1, 0, 2)).astype(jnp.float32)             # [B, L, 2*hidden]
    y_re, y_im = jnp.split(y, 2, axis=-1)
    y_c = jax.lax.complex(y_re, y_im)                               # [B, L, hidden]
    return y_c, (jnp.stack(h_fin, axis=0), jnp.stack(c_fin, axis=0))


@jax.jit
def complex_lstm_forward_jit(x, h0, c0, *flat_params):
    params = [tuple(flat_params[3 * l:3 * l + 3])
              for l in range(len(flat_params) // 3)]
    return complex_lstm_forward(x, h0, c0, params)


# --------------------------------------------------------------------------
# pure-JAX reference (loose tolerance: kernel uses bf16 MXU operands)
# --------------------------------------------------------------------------
def _reference_complex_lstm(x, h0, c0, params, input_size, hidden_size):
    h2 = 2 * hidden_size
    h2p = params[0][1].shape[0]

    def unpack_w(wt, in_sz):        # [in_pad, 4*H2p] -> [4*h2, in_sz] f32
        w = wt.astype(jnp.float32).reshape(wt.shape[0], 4, h2p)
        return w[:in_sz, :, :h2].reshape(in_sz, 4 * h2).T

    def unpack_b(b):                # [1, 4*H2p] -> [4*h2] f32
        return b.astype(jnp.float32).reshape(4, h2p)[:, :h2].reshape(4 * h2)

    seq = jnp.concatenate([jnp.real(x), jnp.imag(x)], axis=-1)      # [B, L, 2Ci]
    hs, cs = [], []
    for layer, (wih_t, whh_t, bias) in enumerate(params):
        in_sz = 2 * input_size if layer == 0 else h2
        w_ih, w_hh, b = unpack_w(wih_t, in_sz), unpack_w(whh_t, h2), unpack_b(bias)

        def step(carry, x_t, w_ih=w_ih, w_hh=w_hh, b=b):
            h, c = carry
            gates = x_t @ w_ih.T + h @ w_hh.T + b
            i, f, g, o = jnp.split(gates, 4, axis=-1)
            c = jax.nn.sigmoid(f) * c + jax.nn.sigmoid(i) * jnp.tanh(g)
            h = jax.nn.sigmoid(o) * jnp.tanh(c)
            return (h, c), h

        (h, c), ys = lax.scan(step, (h0[layer], c0[layer]),
                              jnp.transpose(seq, (1, 0, 2)))
        seq = jnp.transpose(ys, (1, 0, 2))
        hs.append(h)
        cs.append(c)

    yr, yi = jnp.split(seq, 2, axis=-1)
    return jax.lax.complex(yr, yi), (jnp.stack(hs, 0), jnp.stack(cs, 0))


# --------------------------------------------------------------------------
# demo / self test
# --------------------------------------------------------------------------
if __name__ == "__main__":
    # Small shapes: batch=2, seq L=8, complex input size Ci=4, hidden=16, 2 layers.
    batch, seq_len, c_in, hidden, num_layers = 2, 8, 4, 16, 2
    H2 = 2 * hidden

    key = jax.random.PRNGKey(0)
    key, kx_r, kx_i, kp = jax.random.split(key, 4)
    x = jax.lax.complex(
        jax.random.normal(kx_r, (batch, seq_len, c_in), jnp.float32),
        jax.random.normal(kx_i, (batch, seq_len, c_in), jnp.float32))

    # init_carry equivalent: zero state [num_layers, batch, 2*hidden]
    h0 = jnp.zeros((num_layers, batch, H2), jnp.float32)
    c0 = jnp.zeros((num_layers, batch, H2), jnp.float32)

    params = init_complex_lstm_params(kp, c_in, hidden, num_layers)
    flat_params = [a for p in params for a in p]

    y, (hN, cN) = complex_lstm_forward_jit(x, h0, c0, *flat_params)
    jax.block_until_ready((y, hN, cN))

    assert y.shape == (batch, seq_len, hidden) and y.dtype == jnp.complex64
    assert hN.shape == (num_layers, batch, H2)
    assert cN.shape == (num_layers, batch, H2)

    # Loose-tolerance check vs. a pure-JAX f32 LSTM on the same (bf16-rounded)
    # weights; the bf16 MXU operands bound the deviation (~1e-2 worst case).
    y_ref, (h_ref, c_ref) = _reference_complex_lstm(x, h0, c0, params, c_in, hidden)
    tol = 5e-2
    assert float(jnp.max(jnp.abs(y - y_ref))) < tol
    assert float(jnp.max(jnp.abs(hN - h_ref))) < tol
    assert float(jnp.max(jnp.abs(cN - c_ref))) < tol

    print("KERNEL_OK")
</pallas_src>

<mosaic_0001>
module attributes {stable_mosaic.version = 11 : i64} {
  func.func @_lstm_layer_kernel(%arg0: i32, %arg1: memref<64x128xbf16, #tpu.memory_space<vmem>>, %arg2: memref<8x128xf32, #tpu.memory_space<vmem>>, %arg3: memref<8x128xf32, #tpu.memory_space<vmem>>, %arg4: memref<128x512xbf16, #tpu.memory_space<vmem>>, %arg5: memref<128x512xbf16, #tpu.memory_space<vmem>>, %arg6: memref<1x512xf32, #tpu.memory_space<vmem>>, %arg7: memref<64x128xbf16, #tpu.memory_space<vmem>>, %arg8: memref<8x128xf32, #tpu.memory_space<vmem>>, %arg9: memref<8x128xf32, #tpu.memory_space<vmem>>, %arg10: memref<64x512xf32, #tpu.memory_space<vmem>>, %arg11: memref<8x128xf32, #tpu.memory_space<vmem>>, %arg12: memref<8x128xf32, #tpu.memory_space<vmem>>) attributes {dimension_semantics = [#tpu.dimension_semantics<arbitrary>], iteration_bounds = array<i64: 1>, scalar_prefetch = 0 : i64, scratch_operands = 3 : i64, tpu.core_type = #tpu.core_type<tc>, window_params = [{transform_indices = @transform_0, window_bounds = array<i64: 64, 128>}, {pipeline_mode = #tpu.pipeline_mode<synchronous>, transform_indices = @transform_1, window_bounds = array<i64: 8, 128>}, {pipeline_mode = #tpu.pipeline_mode<synchronous>, transform_indices = @transform_2, window_bounds = array<i64: 8, 128>}, {pipeline_mode = #tpu.pipeline_mode<synchronous>, transform_indices = @transform_3, window_bounds = array<i64: 128, 512>}, {pipeline_mode = #tpu.pipeline_mode<synchronous>, transform_indices = @transform_4, window_bounds = array<i64: 128, 512>}, {pipeline_mode = #tpu.pipeline_mode<synchronous>, transform_indices = @transform_5, window_bounds = array<i64: 1, 512>}, {transform_indices = @transform_6, window_bounds = array<i64: 64, 128>}, {pipeline_mode = #tpu.pipeline_mode<synchronous>, transform_indices = @transform_7, window_bounds = array<i64: 8, 128>}, {pipeline_mode = #tpu.pipeline_mode<synchronous>, transform_indices = @transform_8, window_bounds = array<i64: 8, 128>}]} {
    %c0_i32 = arith.constant 0 : i32
    %0 = arith.cmpi eq, %arg0, %c0_i32 : i32
    %1 = arith.extui %0 : i1 to i32
    %c0_i32_0 = arith.constant 0 : i32
    %2 = arith.cmpi ne, %1, %c0_i32_0 : i32
    scf.if %2 {
      %c0_153 = arith.constant 0 : index
      %c0_154 = arith.constant 0 : index
      %334 = vector.load %arg2[%c0_153, %c0_154] : memref<8x128xf32, #tpu.memory_space<vmem>>, vector<8x128xf32>
      %c0_155 = arith.constant 0 : index
      %c0_156 = arith.constant 0 : index
      %335 = vector.load %arg11[%c0_155, %c0_156] : memref<8x128xf32, #tpu.memory_space<vmem>>, vector<8x128xf32>
      tpu.vector_store %arg11[%c0_155, %c0_156], %334 {strides = array<i32>} : memref<8x128xf32, #tpu.memory_space<vmem>>, vector<8x128xf32>,
      %c0_157 = arith.constant 0 : index
      %c0_158 = arith.constant 0 : index
      %336 = vector.load %arg3[%c0_157, %c0_158] : memref<8x128xf32, #tpu.memory_space<vmem>>, vector<8x128xf32>
      %c0_159 = arith.constant 0 : index
      %c0_160 = arith.constant 0 : index
      %337 = vector.load %arg12[%c0_159, %c0_160] : memref<8x128xf32, #tpu.memory_space<vmem>>, vector<8x128xf32>
      tpu.vector_store %arg12[%c0_159, %c0_160], %336 {strides = array<i32>} : memref<8x128xf32, #tpu.memory_space<vmem>>, vector<8x128xf32>,
    } else {
    }
    %c0 = arith.constant 0 : index
    %c0_1 = arith.constant 0 : index
    %3 = vector.load %arg1[%c0, %c0_1] : memref<64x128xbf16, #tpu.memory_space<vmem>>, vector<64x128xbf16>
    %c0_2 = arith.constant 0 : index
    %c0_3 = arith.constant 0 : index
    %4 = vector.load %arg4[%c0_2, %c0_3] : memref<128x512xbf16, #tpu.memory_space<vmem>>, vector<128x512xbf16>
    %cst = arith.constant dense<0.000000e+00> : vector<64x512xf32>
    %5 = tpu.matmul %3, %4, %cst {dimension_numbers = #tpu.dot_dimension_numbers<[1], [0], [0], [1], [0, 0, 1, 1], [], []>} : vector<64x128xbf16>, vector<128x512xbf16>, vector<64x512xf32> -> vector<64x512xf32>
    %c0_4 = arith.constant 0 : index
    %c0_5 = arith.constant 0 : index
    %6 = vector.load %arg6[%c0_4, %c0_5] : memref<1x512xf32, #tpu.memory_space<vmem>>, vector<1x512xf32>
    %7 = vector.broadcast %6 : vector<1x512xf32> to vector<64x512xf32>
    %8 = arith.addf %5, %7 : vector<64x512xf32>
    %c0_6 = arith.constant 0 : index
    %c0_7 = arith.constant 0 : index
    %9 = vector.load %arg10[%c0_6, %c0_7] : memref<64x512xf32, #tpu.memory_space<vmem>>, vector<64x512xf32>
    tpu.vector_store %arg10[%c0_6, %c0_7], %8 {strides = array<i32>} : memref<64x512xf32, #tpu.memory_space<vmem>>, vector<64x512xf32>,
    %c0_i32_8 = arith.constant 0 : i32
    %c8_i32 = arith.constant 8 : i32
    %10 = arith.muli %c0_i32_8, %c8_i32 : i32
    %11 = tpu.assume_multiple %10, 8 : i32
    %12 = arith.index_cast %11 : i32 to index
    %c0_9 = arith.constant 0 : index
    %13 = vector.load %arg10[%12, %c0_9] : memref<64x512xf32, #tpu.memory_space<vmem>>, vector<8x512xf32>
    %c0_10 = arith.constant 0 : index
    %c0_11 = arith.constant 0 : index
    %14 = vector.load %arg11[%c0_10, %c0_11] : memref<8x128xf32, #tpu.memory_space<vmem>>, vector<8x128xf32>
    %15 = arith.truncf %14 : vector<8x128xf32> to vector<8x128xbf16>
    %c0_12 = arith.constant 0 : index
    %c0_13 = arith.constant 0 : index
    %16 = vector.load %arg5[%c0_12, %c0_13] : memref<128x512xbf16, #tpu.memory_space<vmem>>, vector<128x512xbf16>
    %cst_14 = arith.constant dense<0.000000e+00> : vector<8x512xf32>
    %17 = tpu.matmul %15, %16, %cst_14 {dimension_numbers = #tpu.dot_dimension_numbers<[1], [0], [0], [1], [0, 0, 1, 1], [], []>} : vector<8x128xbf16>, vector<128x512xbf16>, vector<8x512xf32> -> vector<8x512xf32>
    %18 = arith.addf %13, %17 : vector<8x512xf32>
    %19 = vector.extract_strided_slice %18 {offsets = [0, 0], sizes = [8, 128], strides = [1, 1]} : vector<8x512xf32> to vector<8x128xf32>
    %20 = arith.negf %19 : vector<8x128xf32>
    %21 = math.exp %20 : vector<8x128xf32>
    %cst_15 = arith.constant 1.000000e+00 : f32
    %22 = vector.broadcast %cst_15 : f32 to vector<8x128xf32>
    %23 = arith.addf %22, %21 : vector<8x128xf32>
    %24 = arith.divf %22, %23 : vector<8x128xf32>
    %25 = vector.extract_strided_slice %18 {offsets = [0, 128], sizes = [8, 128], strides = [1, 1]} : vector<8x512xf32> to vector<8x128xf32>
    %26 = arith.negf %25 : vector<8x128xf32>
    %27 = math.exp %26 : vector<8x128xf32>
    %cst_16 = arith.constant 1.000000e+00 : f32
    %28 = vector.broadcast %cst_16 : f32 to vector<8x128xf32>
    %29 = arith.addf %28, %27 : vector<8x128xf32>
    %30 = arith.divf %28, %29 : vector<8x128xf32>
    %31 = vector.extract_strided_slice %18 {offsets = [0, 256], sizes = [8, 128], strides = [1, 1]} : vector<8x512xf32> to vector<8x128xf32>
    %32 = math.tanh %31 : vector<8x128xf32>
    %33 = vector.extract_strided_slice %18 {offsets = [0, 384], sizes = [8, 128], strides = [1, 1]} : vector<8x512xf32> to vector<8x128xf32>
    %34 = arith.negf %33 : vector<8x128xf32>
    %35 = math.exp %34 : vector<8x128xf32>
    %cst_17 = arith.constant 1.000000e+00 : f32
    %36 = vector.broadcast %cst_17 : f32 to vector<8x128xf32>
    %37 = arith.addf %36, %35 : vector<8x128xf32>
    %38 = arith.divf %36, %37 : vector<8x128xf32>
    %c0_18 = arith.constant 0 : index
    %c0_19 = arith.constant 0 : index
    %39 = vector.load %arg12[%c0_18, %c0_19] : memref<8x128xf32, #tpu.memory_space<vmem>>, vector<8x128xf32>
    %40 = arith.mulf %30, %39 : vector<8x128xf32>
    %41 = arith.mulf %24, %32 : vector<8x128xf32>
    %42 = arith.addf %40, %41 : vector<8x128xf32>
    %43 = math.tanh %42 : vector<8x128xf32>
    %44 = arith.mulf %38, %43 : vector<8x128xf32>
    %c0_20 = arith.constant 0 : index
    %c0_21 = arith.constant 0 : index
    %45 = vector.load %arg12[%c0_20, %c0_21] : memref<8x128xf32, #tpu.memory_space<vmem>>, vector<8x128xf32>
    tpu.vector_store %arg12[%c0_20, %c0_21], %42 {strides = array<i32>} : memref<8x128xf32, #tpu.memory_space<vmem>>, vector<8x128xf32>,
    %c0_22 = arith.constant 0 : index
    %c0_23 = arith.constant 0 : index
    %46 = vector.load %arg11[%c0_22, %c0_23] : memref<8x128xf32, #tpu.memory_space<vmem>>, vector<8x128xf32>
    tpu.vector_store %arg11[%c0_22, %c0_23], %44 {strides = array<i32>} : memref<8x128xf32, #tpu.memory_space<vmem>>, vector<8x128xf32>,
    %47 = arith.truncf %44 : vector<8x128xf32> to vector<8x128xbf16>
    %48 = arith.index_cast %11 : i32 to index
    %c0_24 = arith.constant 0 : index
    %49 = vector.load %arg7[%48, %c0_24] : memref<64x128xbf16, #tpu.memory_space<vmem>>, vector<8x128xbf16>
    tpu.vector_store %arg7[%48, %c0_24], %47 {strides = array<i32>} : memref<64x128xbf16, #tpu.memory_space<vmem>>, vector<8x128xbf16>,
    %c1_i32 = arith.constant 1 : i32
    %c8_i32_25 = arith.constant 8 : i32
    %50 = arith.muli %c1_i32, %c8_i32_25 : i32
    %51 = tpu.assume_multiple %50, 8 : i32
    %52 = arith.index_cast %51 : i32 to index
    %c0_26 = arith.constant 0 : index
    %53 = vector.load %arg10[%52, %c0_26] : memref<64x512xf32, #tpu.memory_space<vmem>>, vector<8x512xf32>
    %c0_27 = arith.constant 0 : index
    %c0_28 = arith.constant 0 : index
    %54 = vector.load %arg11[%c0_27, %c0_28] : memref<8x128xf32, #tpu.memory_space<vmem>>, vector<8x128xf32>
    %55 = arith.truncf %54 : vector<8x128xf32> to vector<8x128xbf16>
    %c0_29 = arith.constant 0 : index
    %c0_30 = arith.constant 0 : index
    %56 = vector.load %arg5[%c0_29, %c0_30] : memref<128x512xbf16, #tpu.memory_space<vmem>>, vector<128x512xbf16>
    %cst_31 = arith.constant dense<0.000000e+00> : vector<8x512xf32>
    %57 = tpu.matmul %55, %56, %cst_31 {dimension_numbers = #tpu.dot_dimension_numbers<[1], [0], [0], [1], [0, 0, 1, 1], [], []>} : vector<8x128xbf16>, vector<128x512xbf16>, vector<8x512xf32> -> vector<8x512xf32>
    %58 = arith.addf %53, %57 : vector<8x512xf32>
    %59 = vector.extract_strided_slice %58 {offsets = [0, 0], sizes = [8, 128], strides = [1, 1]} : vector<8x512xf32> to vector<8x128xf32>
    %60 = arith.negf %59 : vector<8x128xf32>
    %61 = math.exp %60 : vector<8x128xf32>
    %cst_32 = arith.constant 1.000000e+00 : f32
    %62 = vector.broadcast %cst_32 : f32 to vector<8x128xf32>
    %63 = arith.addf %62, %61 : vector<8x128xf32>
    %64 = arith.divf %62, %63 : vector<8x128xf32>
    %65 = vector.extract_strided_slice %58 {offsets = [0, 128], sizes = [8, 128], strides = [1, 1]} : vector<8x512xf32> to vector<8x128xf32>
    %66 = arith.negf %65 : vector<8x128xf32>
    %67 = math.exp %66 : vector<8x128xf32>
    %cst_33 = arith.constant 1.000000e+00 : f32
    %68 = vector.broadcast %cst_33 : f32 to vector<8x128xf32>
    %69 = arith.addf %68, %67 : vector<8x128xf32>
    %70 = arith.divf %68, %69 : vector<8x128xf32>
    %71 = vector.extract_strided_slice %58 {offsets = [0, 256], sizes = [8, 128], strides = [1, 1]} : vector<8x512xf32> to vector<8x128xf32>
    %72 = math.tanh %71 : vector<8x128xf32>
    %73 = vector.extract_strided_slice %58 {offsets = [0, 384], sizes = [8, 128], strides = [1, 1]} : vector<8x512xf32> to vector<8x128xf32>
    %74 = arith.negf %73 : vector<8x128xf32>
    %75 = math.exp %74 : vector<8x128xf32>
    %cst_34 = arith.constant 1.000000e+00 : f32
    %76 = vector.broadcast %cst_34 : f32 to vector<8x128xf32>
    %77 = arith.addf %76, %75 : vector<8x128xf32>
    %78 = arith.divf %76, %77 : vector<8x128xf32>
    %c0_35 = arith.constant 0 : index
    %c0_36 = arith.constant 0 : index
    %79 = vector.load %arg12[%c0_35, %c0_36] : memref<8x128xf32, #tpu.memory_space<vmem>>, vector<8x128xf32>
    %80 = arith.mulf %70, %79 : vector<8x128xf32>
    %81 = arith.mulf %64, %72 : vector<8x128xf32>
    %82 = arith.addf %80, %81 : vector<8x128xf32>
    %83 = math.tanh %82 : vector<8x128xf32>
    %84 = arith.mulf %78, %83 : vector<8x128xf32>
    %c0_37 = arith.constant 0 : index
    %c0_38 = arith.constant 0 : index
    %85 = vector.load %arg12[%c0_37, %c0_38] : memref<8x128xf32, #tpu.memory_space<vmem>>, vector<8x128xf32>
    tpu.vector_store %arg12[%c0_37, %c0_38], %82 {strides = array<i32>} : memref<8x128xf32, #tpu.memory_space<vmem>>, vector<8x128xf32>,
    %c0_39 = arith.constant 0 : index
    %c0_40 = arith.constant 0 : index
    %86 = vector.load %arg11[%c0_39, %c0_40] : memref<8x128xf32, #tpu.memory_space<vmem>>, vector<8x128xf32>
    tpu.vector_store %arg11[%c0_39, %c0_40], %84 {strides = array<i32>} : memref<8x128xf32, #tpu.memory_space<vmem>>, vector<8x128xf32>,
    %87 = arith.truncf %84 : vector<8x128xf32> to vector<8x128xbf16>
    %88 = arith.index_cast %51 : i32 to index
    %c0_41 = arith.constant 0 : index
    %89 = vector.load %arg7[%88, %c0_41] : memref<64x128xbf16, #tpu.memory_space<vmem>>, vector<8x128xbf16>
    tpu.vector_store %arg7[%88, %c0_41], %87 {strides = array<i32>} : memref<64x128xbf16, #tpu.memory_space<vmem>>, vector<8x128xbf16>,
    %c2_i32 = arith.constant 2 : i32
    %c8_i32_42 = arith.constant 8 : i32
    %90 = arith.muli %c2_i32, %c8_i32_42 : i32
    %91 = tpu.assume_multiple %90, 8 : i32
    %92 = arith.index_cast %91 : i32 to index
    %c0_43 = arith.constant 0 : index
    %93 = vector.load %arg10[%92, %c0_43] : memref<64x512xf32, #tpu.memory_space<vmem>>, vector<8x512xf32>
    %c0_44 = arith.constant 0 : index
    %c0_45 = arith.constant 0 : index
    %94 = vector.load %arg11[%c0_44, %c0_45] : memref<8x128xf32, #tpu.memory_space<vmem>>, vector<8x128xf32>
    %95 = arith.truncf %94 : vector<8x128xf32> to vector<8x128xbf16>
    %c0_46 = arith.constant 0 : index
    %c0_47 = arith.constant 0 : index
    %96 = vector.load %arg5[%c0_46, %c0_47] : memref<128x512xbf16, #tpu.memory_space<vmem>>, vector<128x512xbf16>
    %cst_48 = arith.constant dense<0.000000e+00> : vector<8x512xf32>
    %97 = tpu.matmul %95, %96, %cst_48 {dimension_numbers = #tpu.dot_dimension_numbers<[1], [0], [0], [1], [0, 0, 1, 1], [], []>} : vector<8x128xbf16>, vector<128x512xbf16>, vector<8x512xf32> -> vector<8x512xf32>
    %98 = arith.addf %93, %97 : vector<8x512xf32>
    %99 = vector.extract_strided_slice %98 {offsets = [0, 0], sizes = [8, 128], strides = [1, 1]} : vector<8x512xf32> to vector<8x128xf32>
    %100 = arith.negf %99 : vector<8x128xf32>
    %101 = math.exp %100 : vector<8x128xf32>
    %cst_49 = arith.constant 1.000000e+00 : f32
    %102 = vector.broadcast %cst_49 : f32 to vector<8x128xf32>
    %103 = arith.addf %102, %101 : vector<8x128xf32>
    %104 = arith.divf %102, %103 : vector<8x128xf32>
    %105 = vector.extract_strided_slice %98 {offsets = [0, 128], sizes = [8, 128], strides = [1, 1]} : vector<8x512xf32> to vector<8x128xf32>
    %106 = arith.negf %105 : vector<8x128xf32>
    %107 = math.exp %106 : vector<8x128xf32>
    %cst_50 = arith.constant 1.000000e+00 : f32
    %108 = vector.broadcast %cst_50 : f32 to vector<8x128xf32>
    %109 = arith.addf %108, %107 : vector<8x128xf32>
    %110 = arith.divf %108, %109 : vector<8x128xf32>
    %111 = vector.extract_strided_slice %98 {offsets = [0, 256], sizes = [8, 128], strides = [1, 1]} : vector<8x512xf32> to vector<8x128xf32>
    %112 = math.tanh %111 : vector<8x128xf32>
    %113 = vector.extract_strided_slice %98 {offsets = [0, 384], sizes = [8, 128], strides = [1, 1]} : vector<8x512xf32> to vector<8x128xf32>
    %114 = arith.negf %113 : vector<8x128xf32>
    %115 = math.exp %114 : vector<8x128xf32>
    %cst_51 = arith.constant 1.000000e+00 : f32
    %116 = vector.broadcast %cst_51 : f32 to vector<8x128xf32>
    %117 = arith.addf %116, %115 : vector<8x128xf32>
    %118 = arith.divf %116, %117 : vector<8x128xf32>
    %c0_52 = arith.constant 0 : index
    %c0_53 = arith.constant 0 : index
    %119 = vector.load %arg12[%c0_52, %c0_53] : memref<8x128xf32, #tpu.memory_space<vmem>>, vector<8x128xf32>
    %120 = arith.mulf %110, %119 : vector<8x128xf32>
    %121 = arith.mulf %104, %112 : vector<8x128xf32>
    %122 = arith.addf %120, %121 : vector<8x128xf32>
    %123 = math.tanh %122 : vector<8x128xf32>
    %124 = arith.mulf %118, %123 : vector<8x128xf32>
    %c0_54 = arith.constant 0 : index
    %c0_55 = arith.constant 0 : index
    %125 = vector.load %arg12[%c0_54, %c0_55] : memref<8x128xf32, #tpu.memory_space<vmem>>, vector<8x128xf32>
    tpu.vector_store %arg12[%c0_54, %c0_55], %122 {strides = array<i32>} : memref<8x128xf32, #tpu.memory_space<vmem>>, vector<8x128xf32>,
    %c0_56 = arith.constant 0 : index
    %c0_57 = arith.constant 0 : index
    %126 = vector.load %arg11[%c0_56, %c0_57] : memref<8x128xf32, #tpu.memory_space<vmem>>, vector<8x128xf32>
    tpu.vector_store %arg11[%c0_56, %c0_57], %124 {strides = array<i32>} : memref<8x128xf32, #tpu.memory_space<vmem>>, vector<8x128xf32>,
    %127 = arith.truncf %124 : vector<8x128xf32> to vector<8x128xbf16>
    %128 = arith.index_cast %91 : i32 to index
    %c0_58 = arith.constant 0 : index
    %129 = vector.load %arg7[%128, %c0_58] : memref<64x128xbf16, #tpu.memory_space<vmem>>, vector<8x128xbf16>
    tpu.vector_store %arg7[%128, %c0_58], %127 {strides = array<i32>} : memref<64x128xbf16, #tpu.memory_space<vmem>>, vector<8x128xbf16>,
    %c3_i32 = arith.constant 3 : i32
    %c8_i32_59 = arith.constant 8 : i32
    %130 = arith.muli %c3_i32, %c8_i32_59 : i32
    %131 = tpu.assume_multiple %130, 8 : i32
    %132 = arith.index_cast %131 : i32 to index
    %c0_60 = arith.constant 0 : index
    %133 = vector.load %arg10[%132, %c0_60] : memref<64x512xf32, #tpu.memory_space<vmem>>, vector<8x512xf32>
    %c0_61 = arith.constant 0 : index
    %c0_62 = arith.constant 0 : index
    %134 = vector.load %arg11[%c0_61, %c0_62] : memref<8x128xf32, #tpu.memory_space<vmem>>, vector<8x128xf32>
    %135 = arith.truncf %134 : vector<8x128xf32> to vector<8x128xbf16>
    %c0_63 = arith.constant 0 : index
    %c0_64 = arith.constant 0 : index
    %136 = vector.load %arg5[%c0_63, %c0_64] : memref<128x512xbf16, #tpu.memory_space<vmem>>, vector<128x512xbf16>
    %cst_65 = arith.constant dense<0.000000e+00> : vector<8x512xf32>
    %137 = tpu.matmul %135, %136, %cst_65 {dimension_numbers = #tpu.dot_dimension_numbers<[1], [0], [0], [1], [0, 0, 1, 1], [], []>} : vector<8x128xbf16>, vector<128x512xbf16>, vector<8x512xf32> -> vector<8x512xf32>
    %138 = arith.addf %133, %137 : vector<8x512xf32>
    %139 = vector.extract_strided_slice %138 {offsets = [0, 0], sizes = [8, 128], strides = [1, 1]} : vector<8x512xf32> to vector<8x128xf32>
    %140 = arith.negf %139 : vector<8x128xf32>
    %141 = math.exp %140 : vector<8x128xf32>
    %cst_66 = arith.constant 1.000000e+00 : f32
    %142 = vector.broadcast %cst_66 : f32 to vector<8x128xf32>
    %143 = arith.addf %142, %141 : vector<8x128xf32>
    %144 = arith.divf %142, %143 : vector<8x128xf32>
    %145 = vector.extract_strided_slice %138 {offsets = [0, 128], sizes = [8, 128], strides = [1, 1]} : vector<8x512xf32> to vector<8x128xf32>
    %146 = arith.negf %145 : vector<8x128xf32>
    %147 = math.exp %146 : vector<8x128xf32>
    %cst_67 = arith.constant 1.000000e+00 : f32
    %148 = vector.broadcast %cst_67 : f32 to vector<8x128xf32>
    %149 = arith.addf %148, %147 : vector<8x128xf32>
    %150 = arith.divf %148, %149 : vector<8x128xf32>
    %151 = vector.extract_strided_slice %138 {offsets = [0, 256], sizes = [8, 128], strides = [1, 1]} : vector<8x512xf32> to vector<8x128xf32>
    %152 = math.tanh %151 : vector<8x128xf32>
    %153 = vector.extract_strided_slice %138 {offsets = [0, 384], sizes = [8, 128], strides = [1, 1]} : vector<8x512xf32> to vector<8x128xf32>
    %154 = arith.negf %153 : vector<8x128xf32>
    %155 = math.exp %154 : vector<8x128xf32>
    %cst_68 = arith.constant 1.000000e+00 : f32
    %156 = vector.broadcast %cst_68 : f32 to vector<8x128xf32>
    %157 = arith.addf %156, %155 : vector<8x128xf32>
    %158 = arith.divf %156, %157 : vector<8x128xf32>
    %c0_69 = arith.constant 0 : index
    %c0_70 = arith.constant 0 : index
    %159 = vector.load %arg12[%c0_69, %c0_70] : memref<8x128xf32, #tpu.memory_space<vmem>>, vector<8x128xf32>
    %160 = arith.mulf %150, %159 : vector<8x128xf32>
    %161 = arith.mulf %144, %152 : vector<8x128xf32>
    %162 = arith.addf %160, %161 : vector<8x128xf32>
    %163 = math.tanh %162 : vector<8x128xf32>
    %164 = arith.mulf %158, %163 : vector<8x128xf32>
    %c0_71 = arith.constant 0 : index
    %c0_72 = arith.constant 0 : index
    %165 = vector.load %arg12[%c0_71, %c0_72] : memref<8x128xf32, #tpu.memory_space<vmem>>, vector<8x128xf32>
    tpu.vector_store %arg12[%c0_71, %c0_72], %162 {strides = array<i32>} : memref<8x128xf32, #tpu.memory_space<vmem>>, vector<8x128xf32>,
    %c0_73 = arith.constant 0 : index
    %c0_74 = arith.constant 0 : index
    %166 = vector.load %arg11[%c0_73, %c0_74] : memref<8x128xf32, #tpu.memory_space<vmem>>, vector<8x128xf32>
    tpu.vector_store %arg11[%c0_73, %c0_74], %164 {strides = array<i32>} : memref<8x128xf32, #tpu.memory_space<vmem>>, vector<8x128xf32>,
    %167 = arith.truncf %164 : vector<8x128xf32> to vector<8x128xbf16>
    %168 = arith.index_cast %131 : i32 to index
    %c0_75 = arith.constant 0 : index
    %169 = vector.load %arg7[%168, %c0_75] : memref<64x128xbf16, #tpu.memory_space<vmem>>, vector<8x128xbf16>
    tpu.vector_store %arg7[%168, %c0_75], %167 {strides = array<i32>} : memref<64x128xbf16, #tpu.memory_space<vmem>>, vector<8x128xbf16>,
    %c4_i32 = arith.constant 4 : i32
    %c8_i32_76 = arith.constant 8 : i32
    %170 = arith.muli %c4_i32, %c8_i32_76 : i32
    %171 = tpu.assume_multiple %170, 8 : i32
    %172 = arith.index_cast %171 : i32 to index
    %c0_77 = arith.constant 0 : index
    %173 = vector.load %arg10[%172, %c0_77] : memref<64x512xf32, #tpu.memory_space<vmem>>, vector<8x512xf32>
    %c0_78 = arith.constant 0 : index
    %c0_79 = arith.constant 0 : index
    %174 = vector.load %arg11[%c0_78, %c0_79] : memref<8x128xf32, #tpu.memory_space<vmem>>, vector<8x128xf32>
    %175 = arith.truncf %174 : vector<8x128xf32> to vector<8x128xbf16>
    %c0_80 = arith.constant 0 : index
    %c0_81 = arith.constant 0 : index
    %176 = vector.load %arg5[%c0_80, %c0_81] : memref<128x512xbf16, #tpu.memory_space<vmem>>, vector<128x512xbf16>
    %cst_82 = arith.constant dense<0.000000e+00> : vector<8x512xf32>
    %177 = tpu.matmul %175, %176, %cst_82 {dimension_numbers = #tpu.dot_dimension_numbers<[1], [0], [0], [1], [0, 0, 1, 1], [], []>} : vector<8x128xbf16>, vector<128x512xbf16>, vector<8x512xf32> -> vector<8x512xf32>
    %178 = arith.addf %173, %177 : vector<8x512xf32>
    %179 = vector.extract_strided_slice %178 {offsets = [0, 0], sizes = [8, 128], strides = [1, 1]} : vector<8x512xf32> to vector<8x128xf32>
    %180 = arith.negf %179 : vector<8x128xf32>
    %181 = math.exp %180 : vector<8x128xf32>
    %cst_83 = arith.constant 1.000000e+00 : f32
    %182 = vector.broadcast %cst_83 : f32 to vector<8x128xf32>
    %183 = arith.addf %182, %181 : vector<8x128xf32>
    %184 = arith.divf %182, %183 : vector<8x128xf32>
    %185 = vector.extract_strided_slice %178 {offsets = [0, 128], sizes = [8, 128], strides = [1, 1]} : vector<8x512xf32> to vector<8x128xf32>
    %186 = arith.negf %185 : vector<8x128xf32>
    %187 = math.exp %186 : vector<8x128xf32>
    %cst_84 = arith.constant 1.000000e+00 : f32
    %188 = vector.broadcast %cst_84 : f32 to vector<8x128xf32>
    %189 = arith.addf %188, %187 : vector<8x128xf32>
    %190 = arith.divf %188, %189 : vector<8x128xf32>
    %191 = vector.extract_strided_slice %178 {offsets = [0, 256], sizes = [8, 128], strides = [1, 1]} : vector<8x512xf32> to vector<8x128xf32>
    %192 = math.tanh %191 : vector<8x128xf32>
    %193 = vector.extract_strided_slice %178 {offsets = [0, 384], sizes = [8, 128], strides = [1, 1]} : vector<8x512xf32> to vector<8x128xf32>
    %194 = arith.negf %193 : vector<8x128xf32>
    %195 = math.exp %194 : vector<8x128xf32>
    %cst_85 = arith.constant 1.000000e+00 : f32
    %196 = vector.broadcast %cst_85 : f32 to vector<8x128xf32>
    %197 = arith.addf %196, %195 : vector<8x128xf32>
    %198 = arith.divf %196, %197 : vector<8x128xf32>
    %c0_86 = arith.constant 0 : index
    %c0_87 = arith.constant 0 : index
    %199 = vector.load %arg12[%c0_86, %c0_87] : memref<8x128xf32, #tpu.memory_space<vmem>>, vector<8x128xf32>
    %200 = arith.mulf %190, %199 : vector<8x128xf32>
    %201 = arith.mulf %184, %192 : vector<8x128xf32>
    %202 = arith.addf %200, %201 : vector<8x128xf32>
    %203 = math.tanh %202 : vector<8x128xf32>
    %204 = arith.mulf %198, %203 : vector<8x128xf32>
    %c0_88 = arith.constant 0 : index
    %c0_89 = arith.constant 0 : index
    %205 = vector.load %arg12[%c0_88, %c0_89] : memref<8x128xf32, #tpu.memory_space<vmem>>, vector<8x128xf32>
    tpu.vector_store %arg12[%c0_88, %c0_89], %202 {strides = array<i32>} : memref<8x128xf32, #tpu.memory_space<vmem>>, vector<8x128xf32>,
    %c0_90 = arith.constant 0 : index
    %c0_91 = arith.constant 0 : index
    %206 = vector.load %arg11[%c0_90, %c0_91] : memref<8x128xf32, #tpu.memory_space<vmem>>, vector<8x128xf32>
    tpu.vector_store %arg11[%c0_90, %c0_91], %204 {strides = array<i32>} : memref<8x128xf32, #tpu.memory_space<vmem>>, vector<8x128xf32>,
    %207 = arith.truncf %204 : vector<8x128xf32> to vector<8x128xbf16>
    %208 = arith.index_cast %171 : i32 to index
    %c0_92 = arith.constant 0 : index
    %209 = vector.load %arg7[%208, %c0_92] : memref<64x128xbf16, #tpu.memory_space<vmem>>, vector<8x128xbf16>
    tpu.vector_store %arg7[%208, %c0_92], %207 {strides = array<i32>} : memref<64x128xbf16, #tpu.memory_space<vmem>>, vector<8x128xbf16>,
    %c5_i32 = arith.constant 5 : i32
    %c8_i32_93 = arith.constant 8 : i32
    %210 = arith.muli %c5_i32, %c8_i32_93 : i32
    %211 = tpu.assume_multiple %210, 8 : i32
    %212 = arith.index_cast %211 : i32 to index
    %c0_94 = arith.constant 0 : index
    %213 = vector.load %arg10[%212, %c0_94] : memref<64x512xf32, #tpu.memory_space<vmem>>, vector<8x512xf32>
    %c0_95 = arith.constant 0 : index
    %c0_96 = arith.constant 0 : index
    %214 = vector.load %arg11[%c0_95, %c0_96] : memref<8x128xf32, #tpu.memory_space<vmem>>, vector<8x128xf32>
    %215 = arith.truncf %214 : vector<8x128xf32> to vector<8x128xbf16>
    %c0_97 = arith.constant 0 : index
    %c0_98 = arith.constant 0 : index
    %216 = vector.load %arg5[%c0_97, %c0_98] : memref<128x512xbf16, #tpu.memory_space<vmem>>, vector<128x512xbf16>
    %cst_99 = arith.constant dense<0.000000e+00> : vector<8x512xf32>
    %217 = tpu.matmul %215, %216, %cst_99 {dimension_numbers = #tpu.dot_dimension_numbers<[1], [0], [0], [1], [0, 0, 1, 1], [], []>} : vector<8x128xbf16>, vector<128x512xbf16>, vector<8x512xf32> -> vector<8x512xf32>
    %218 = arith.addf %213, %217 : vector<8x512xf32>
    %219 = vector.extract_strided_slice %218 {offsets = [0, 0], sizes = [8, 128], strides = [1, 1]} : vector<8x512xf32> to vector<8x128xf32>
    %220 = arith.negf %219 : vector<8x128xf32>
    %221 = math.exp %220 : vector<8x128xf32>
    %cst_100 = arith.constant 1.000000e+00 : f32
    %222 = vector.broadcast %cst_100 : f32 to vector<8x128xf32>
    %223 = arith.addf %222, %221 : vector<8x128xf32>
    %224 = arith.divf %222, %223 : vector<8x128xf32>
    %225 = vector.extract_strided_slice %218 {offsets = [0, 128], sizes = [8, 128], strides = [1, 1]} : vector<8x512xf32> to vector<8x128xf32>
    %226 = arith.negf %225 : vector<8x128xf32>
    %227 = math.exp %226 : vector<8x128xf32>
    %cst_101 = arith.constant 1.000000e+00 : f32
    %228 = vector.broadcast %cst_101 : f32 to vector<8x128xf32>
    %229 = arith.addf %228, %227 : vector<8x128xf32>
    %230 = arith.divf %228, %229 : vector<8x128xf32>
    %231 = vector.extract_strided_slice %218 {offsets = [0, 256], sizes = [8, 128], strides = [1, 1]} : vector<8x512xf32> to vector<8x128xf32>
    %232 = math.tanh %231 : vector<8x128xf32>
    %233 = vector.extract_strided_slice %218 {offsets = [0, 384], sizes = [8, 128], strides = [1, 1]} : vector<8x512xf32> to vector<8x128xf32>
    %234 = arith.negf %233 : vector<8x128xf32>
    %235 = math.exp %234 : vector<8x128xf32>
    %cst_102 = arith.constant 1.000000e+00 : f32
    %236 = vector.broadcast %cst_102 : f32 to vector<8x128xf32>
    %237 = arith.addf %236, %235 : vector<8x128xf32>
    %238 = arith.divf %236, %237 : vector<8x128xf32>
    %c0_103 = arith.constant 0 : index
    %c0_104 = arith.constant 0 : index
    %239 = vector.load %arg12[%c0_103, %c0_104] : memref<8x128xf32, #tpu.memory_space<vmem>>, vector<8x128xf32>
    %240 = arith.mulf %230, %239 : vector<8x128xf32>
    %241 = arith.mulf %224, %232 : vector<8x128xf32>
    %242 = arith.addf %240, %241 : vector<8x128xf32>
    %243 = math.tanh %242 : vector<8x128xf32>
    %244 = arith.mulf %238, %243 : vector<8x128xf32>
    %c0_105 = arith.constant 0 : index
    %c0_106 = arith.constant 0 : index
    %245 = vector.load %arg12[%c0_105, %c0_106] : memref<8x128xf32, #tpu.memory_space<vmem>>, vector<8x128xf32>
    tpu.vector_store %arg12[%c0_105, %c0_106], %242 {strides = array<i32>} : memref<8x128xf32, #tpu.memory_space<vmem>>, vector<8x128xf32>,
    %c0_107 = arith.constant 0 : index
    %c0_108 = arith.constant 0 : index
    %246 = vector.load %arg11[%c0_107, %c0_108] : memref<8x128xf32, #tpu.memory_space<vmem>>, vector<8x128xf32>
    tpu.vector_store %arg11[%c0_107, %c0_108], %244 {strides = array<i32>} : memref<8x128xf32, #tpu.memory_space<vmem>>, vector<8x128xf32>,
    %247 = arith.truncf %244 : vector<8x128xf32> to vector<8x128xbf16>
    %248 = arith.index_cast %211 : i32 to index
    %c0_109 = arith.constant 0 : index
    %249 = vector.load %arg7[%248, %c0_109] : memref<64x128xbf16, #tpu.memory_space<vmem>>, vector<8x128xbf16>
    tpu.vector_store %arg7[%248, %c0_109], %247 {strides = array<i32>} : memref<64x128xbf16, #tpu.memory_space<vmem>>, vector<8x128xbf16>,
    %c6_i32 = arith.constant 6 : i32
    %c8_i32_110 = arith.constant 8 : i32
    %250 = arith.muli %c6_i32, %c8_i32_110 : i32
    %251 = tpu.assume_multiple %250, 8 : i32
    %252 = arith.index_cast %251 : i32 to index
    %c0_111 = arith.constant 0 : index
    %253 = vector.load %arg10[%252, %c0_111] : memref<64x512xf32, #tpu.memory_space<vmem>>, vector<8x512xf32>
    %c0_112 = arith.constant 0 : index
    %c0_113 = arith.constant 0 : index
    %254 = vector.load %arg11[%c0_112, %c0_113] : memref<8x128xf32, #tpu.memory_space<vmem>>, vector<8x128xf32>
    %255 = arith.truncf %254 : vector<8x128xf32> to vector<8x128xbf16>
    %c0_114 = arith.constant 0 : index
    %c0_115 = arith.constant 0 : index
    %256 = vector.load %arg5[%c0_114, %c0_115] : memref<128x512xbf16, #tpu.memory_space<vmem>>, vector<128x512xbf16>
    %cst_116 = arith.constant dense<0.000000e+00> : vector<8x512xf32>
    %257 = tpu.matmul %255, %256, %cst_116 {dimension_numbers = #tpu.dot_dimension_numbers<[1], [0], [0], [1], [0, 0, 1, 1], [], []>} : vector<8x128xbf16>, vector<128x512xbf16>, vector<8x512xf32> -> vector<8x512xf32>
    %258 = arith.addf %253, %257 : vector<8x512xf32>
    %259 = vector.extract_strided_slice %258 {offsets = [0, 0], sizes = [8, 128], strides = [1, 1]} : vector<8x512xf32> to vector<8x128xf32>
    %260 = arith.negf %259 : vector<8x128xf32>
    %261 = math.exp %260 : vector<8x128xf32>
    %cst_117 = arith.constant 1.000000e+00 : f32
    %262 = vector.broadcast %cst_117 : f32 to vector<8x128xf32>
    %263 = arith.addf %262, %261 : vector<8x128xf32>
    %264 = arith.divf %262, %263 : vector<8x128xf32>
    %265 = vector.extract_strided_slice %258 {offsets = [0, 128], sizes = [8, 128], strides = [1, 1]} : vector<8x512xf32> to vector<8x128xf32>
    %266 = arith.negf %265 : vector<8x128xf32>
    %267 = math.exp %266 : vector<8x128xf32>
    %cst_118 = arith.constant 1.000000e+00 : f32
    %268 = vector.broadcast %cst_118 : f32 to vector<8x128xf32>
    %269 = arith.addf %268, %267 : vector<8x128xf32>
    %270 = arith.divf %268, %269 : vector<8x128xf32>
    %271 = vector.extract_strided_slice %258 {offsets = [0, 256], sizes = [8, 128], strides = [1, 1]} : vector<8x512xf32> to vector<8x128xf32>
    %272 = math.tanh %271 : vector<8x128xf32>
    %273 = vector.extract_strided_slice %258 {offsets = [0, 384], sizes = [8, 128], strides = [1, 1]} : vector<8x512xf32> to vector<8x128xf32>
    %274 = arith.negf %273 : vector<8x128xf32>
    %275 = math.exp %274 : vector<8x128xf32>
    %cst_119 = arith.constant 1.000000e+00 : f32
    %276 = vector.broadcast %cst_119 : f32 to vector<8x128xf32>
    %277 = arith.addf %276, %275 : vector<8x128xf32>
    %278 = arith.divf %276, %277 : vector<8x128xf32>
    %c0_120 = arith.constant 0 : index
    %c0_121 = arith.constant 0 : index
    %279 = vector.load %arg12[%c0_120, %c0_121] : memref<8x128xf32, #tpu.memory_space<vmem>>, vector<8x128xf32>
    %280 = arith.mulf %270, %279 : vector<8x128xf32>
    %281 = arith.mulf %264, %272 : vector<8x128xf32>
    %282 = arith.addf %280, %281 : vector<8x128xf32>
    %283 = math.tanh %282 : vector<8x128xf32>
    %284 = arith.mulf %278, %283 : vector<8x128xf32>
    %c0_122 = arith.constant 0 : index
    %c0_123 = arith.constant 0 : index
    %285 = vector.load %arg12[%c0_122, %c0_123] : memref<8x128xf32, #tpu.memory_space<vmem>>, vector<8x128xf32>
    tpu.vector_store %arg12[%c0_122, %c0_123], %282 {strides = array<i32>} : memref<8x128xf32, #tpu.memory_space<vmem>>, vector<8x128xf32>,
    %c0_124 = arith.constant 0 : index
    %c0_125 = arith.constant 0 : index
    %286 = vector.load %arg11[%c0_124, %c0_125] : memref<8x128xf32, #tpu.memory_space<vmem>>, vector<8x128xf32>
    tpu.vector_store %arg11[%c0_124, %c0_125], %284 {strides = array<i32>} : memref<8x128xf32, #tpu.memory_space<vmem>>, vector<8x128xf32>,
    %287 = arith.truncf %284 : vector<8x128xf32> to vector<8x128xbf16>
    %288 = arith.index_cast %251 : i32 to index
    %c0_126 = arith.constant 0 : index
    %289 = vector.load %arg7[%288, %c0_126] : memref<64x128xbf16, #tpu.memory_space<vmem>>, vector<8x128xbf16>
    tpu.vector_store %arg7[%288, %c0_126], %287 {strides = array<i32>} : memref<64x128xbf16, #tpu.memory_space<vmem>>, vector<8x128xbf16>,
    %c7_i32 = arith.constant 7 : i32
    %c8_i32_127 = arith.constant 8 : i32
    %290 = arith.muli %c7_i32, %c8_i32_127 : i32
    %291 = tpu.assume_multiple %290, 8 : i32
    %292 = arith.index_cast %291 : i32 to index
    %c0_128 = arith.constant 0 : index
    %293 = vector.load %arg10[%292, %c0_128] : memref<64x512xf32, #tpu.memory_space<vmem>>, vector<8x512xf32>
    %c0_129 = arith.constant 0 : index
    %c0_130 = arith.constant 0 : index
    %294 = vector.load %arg11[%c0_129, %c0_130] : memref<8x128xf32, #tpu.memory_space<vmem>>, vector<8x128xf32>
    %295 = arith.truncf %294 : vector<8x128xf32> to vector<8x128xbf16>
    %c0_131 = arith.constant 0 : index
    %c0_132 = arith.constant 0 : index
    %296 = vector.load %arg5[%c0_131, %c0_132] : memref<128x512xbf16, #tpu.memory_space<vmem>>, vector<128x512xbf16>
    %cst_133 = arith.constant dense<0.000000e+00> : vector<8x512xf32>
    %297 = tpu.matmul %295, %296, %cst_133 {dimension_numbers = #tpu.dot_dimension_numbers<[1], [0], [0], [1], [0, 0, 1, 1], [], []>} : vector<8x128xbf16>, vector<128x512xbf16>, vector<8x512xf32> -> vector<8x512xf32>
    %298 = arith.addf %293, %297 : vector<8x512xf32>
    %299 = vector.extract_strided_slice %298 {offsets = [0, 0], sizes = [8, 128], strides = [1, 1]} : vector<8x512xf32> to vector<8x128xf32>
    %300 = arith.negf %299 : vector<8x128xf32>
    %301 = math.exp %300 : vector<8x128xf32>
    %cst_134 = arith.constant 1.000000e+00 : f32
    %302 = vector.broadcast %cst_134 : f32 to vector<8x128xf32>
    %303 = arith.addf %302, %301 : vector<8x128xf32>
    %304 = arith.divf %302, %303 : vector<8x128xf32>
    %305 = vector.extract_strided_slice %298 {offsets = [0, 128], sizes = [8, 128], strides = [1, 1]} : vector<8x512xf32> to vector<8x128xf32>
    %306 = arith.negf %305 : vector<8x128xf32>
    %307 = math.exp %306 : vector<8x128xf32>
    %cst_135 = arith.constant 1.000000e+00 : f32
    %308 = vector.broadcast %cst_135 : f32 to vector<8x128xf32>
    %309 = arith.addf %308, %307 : vector<8x128xf32>
    %310 = arith.divf %308, %309 : vector<8x128xf32>
    %311 = vector.extract_strided_slice %298 {offsets = [0, 256], sizes = [8, 128], strides = [1, 1]} : vector<8x512xf32> to vector<8x128xf32>
    %312 = math.tanh %311 : vector<8x128xf32>
    %313 = vector.extract_strided_slice %298 {offsets = [0, 384], sizes = [8, 128], strides = [1, 1]} : vector<8x512xf32> to vector<8x128xf32>
    %314 = arith.negf %313 : vector<8x128xf32>
    %315 = math.exp %314 : vector<8x128xf32>
    %cst_136 = arith.constant 1.000000e+00 : f32
    %316 = vector.broadcast %cst_136 : f32 to vector<8x128xf32>
    %317 = arith.addf %316, %315 : vector<8x128xf32>
    %318 = arith.divf %316, %317 : vector<8x128xf32>
    %c0_137 = arith.constant 0 : index
    %c0_138 = arith.constant 0 : index
    %319 = vector.load %arg12[%c0_137, %c0_138] : memref<8x128xf32, #tpu.memory_space<vmem>>, vector<8x128xf32>
    %320 = arith.mulf %310, %319 : vector<8x128xf32>
    %321 = arith.mulf %304, %312 : vector<8x128xf32>
    %322 = arith.addf %320, %321 : vector<8x128xf32>
    %323 = math.tanh %322 : vector<8x128xf32>
    %324 = arith.mulf %318, %323 : vector<8x128xf32>
    %c0_139 = arith.constant 0 : index
    %c0_140 = arith.constant 0 : index
    %325 = vector.load %arg12[%c0_139, %c0_140] : memref<8x128xf32, #tpu.memory_space<vmem>>, vector<8x128xf32>
    tpu.vector_store %arg12[%c0_139, %c0_140], %322 {strides = array<i32>} : memref<8x128xf32, #tpu.memory_space<vmem>>, vector<8x128xf32>,
    %c0_141 = arith.constant 0 : index
    %c0_142 = arith.constant 0 : index
    %326 = vector.load %arg11[%c0_141, %c0_142] : memref<8x128xf32, #tpu.memory_space<vmem>>, vector<8x128xf32>
    tpu.vector_store %arg11[%c0_141, %c0_142], %324 {strides = array<i32>} : memref<8x128xf32, #tpu.memory_space<vmem>>, vector<8x128xf32>,
    %327 = arith.truncf %324 : vector<8x128xf32> to vector<8x128xbf16>
    %328 = arith.index_cast %291 : i32 to index
    %c0_143 = arith.constant 0 : index
    %329 = vector.load %arg7[%328, %c0_143] : memref<64x128xbf16, #tpu.memory_space<vmem>>, vector<8x128xbf16>
    tpu.vector_store %arg7[%328, %c0_143], %327 {strides = array<i32>} : memref<64x128xbf16, #tpu.memory_space<vmem>>, vector<8x128xbf16>,
    %c8_i32_144 = arith.constant 8 : i32
    %c0_145 = arith.constant 0 : index
    %c0_146 = arith.constant 0 : index
    %330 = vector.load %arg11[%c0_145, %c0_146] : memref<8x128xf32, #tpu.memory_space<vmem>>, vector<8x128xf32>
    %c0_147 = arith.constant 0 : index
    %c0_148 = arith.constant 0 : index
    %331 = vector.load %arg8[%c0_147, %c0_148] : memref<8x128xf32, #tpu.memory_space<vmem>>, vector<8x128xf32>
    tpu.vector_store %arg8[%c0_147, %c0_148], %330 {strides = array<i32>} : memref<8x128xf32, #tpu.memory_space<vmem>>, vector<8x128xf32>,
    %c0_149 = arith.constant 0 : index
    %c0_150 = arith.constant 0 : index
    %332 = vector.load %arg12[%c0_149, %c0_150] : memref<8x128xf32, #tpu.memory_space<vmem>>, vector<8x128xf32>
    %c0_151 = arith.constant 0 : index
    %c0_152 = arith.constant 0 : index
    %333 = vector.load %arg9[%c0_151, %c0_152] : memref<8x128xf32, #tpu.memory_space<vmem>>, vector<8x128xf32>
    tpu.vector_store %arg9[%c0_151, %c0_152], %332 {strides = array<i32>} : memref<8x128xf32, #tpu.memory_space<vmem>>, vector<8x128xf32>,
    return
  }
  func.func @transform_0(%arg0: i32) -> (i32, i32) {
    %c0_i32 = arith.constant 0 : i32
    %c0_i32_0 = arith.constant 0 : i32
    return %arg0, %c0_i32 : i32, i32
  }
  func.func @transform_1(%arg0: i32) -> (i32, i32) {
    %c0_i32 = arith.constant 0 : i32
    %c0_i32_0 = arith.constant 0 : i32
    %c0_i32_1 = arith.constant 0 : i32
    return %c0_i32, %c0_i32_0 : i32, i32
  }
  func.func @transform_2(%arg0: i32) -> (i32, i32) {
    %c0_i32 = arith.constant 0 : i32
    %c0_i32_0 = arith.constant 0 : i32
    %c0_i32_1 = arith.constant 0 : i32
    return %c0_i32, %c0_i32_0 : i32, i32
  }
  func.func @transform_3(%arg0: i32) -> (i32, i32) {
    %c0_i32 = arith.constant 0 : i32
    %c0_i32_0 = arith.constant 0 : i32
    %c0_i32_1 = arith.constant 0 : i32
    return %c0_i32, %c0_i32_0 : i32, i32
  }
  func.func @transform_4(%arg0: i32) -> (i32, i32) {
    %c0_i32 = arith.constant 0 : i32
    %c0_i32_0 = arith.constant 0 : i32
    %c0_i32_1 = arith.constant 0 : i32
    return %c0_i32, %c0_i32_0 : i32, i32
  }
  func.func @transform_5(%arg0: i32) -> (i32, i32) {
    %c0_i32 = arith.constant 0 : i32
    %c0_i32_0 = arith.constant 0 : i32
    %c0_i32_1 = arith.constant 0 : i32
    return %c0_i32, %c0_i32_0 : i32, i32
  }
  func.func @transform_6(%arg0: i32) -> (i32, i32) {
    %c0_i32 = arith.constant 0 : i32
    %c0_i32_0 = arith.constant 0 : i32
    return %arg0, %c0_i32 : i32, i32
  }
  func.func @transform_7(%arg0: i32) -> (i32, i32) {
    %c0_i32 = arith.constant 0 : i32
    %c0_i32_0 = arith.constant 0 : i32
    %c0_i32_1 = arith.constant 0 : i32
    return %c0_i32, %c0_i32_0 : i32, i32
  }
  func.func @transform_8(%arg0: i32) -> (i32, i32) {
    %c0_i32 = arith.constant 0 : i32
    %c0_i32_0 = arith.constant 0 : i32
    %c0_i32_1 = arith.constant 0 : i32
    return %c0_i32, %c0_i32_0 : i32, i32
  }
}

module attributes {stable_mosaic.version = 11 : i64} {
  func.func @_lstm_layer_kernel(%arg0: i32, %arg1: memref<64x128xbf16, #tpu.memory_space<vmem>>, %arg2: memref<8x128xf32, #tpu.memory_space<vmem>>, %arg3: memref<8x128xf32, #tpu.memory_space<vmem>>, %arg4: memref<128x512xbf16, #tpu.memory_space<vmem>>, %arg5: memref<128x512xbf16, #tpu.memory_space<vmem>>, %arg6: memref<1x512xf32, #tpu.memory_space<vmem>>, %arg7: memref<64x128xf32, #tpu.memory_space<vmem>>, %arg8: memref<8x128xf32, #tpu.memory_space<vmem>>, %arg9: memref<8x128xf32, #tpu.memory_space<vmem>>, %arg10: memref<64x512xf32, #tpu.memory_space<vmem>>, %arg11: memref<8x128xf32, #tpu.memory_space<vmem>>, %arg12: memref<8x128xf32, #tpu.memory_space<vmem>>) attributes {dimension_semantics = [#tpu.dimension_semantics<arbitrary>], iteration_bounds = array<i64: 1>, scalar_prefetch = 0 : i64, scratch_operands = 3 : i64, tpu.core_type = #tpu.core_type<tc>, window_params = [{transform_indices = @transform_0, window_bounds = array<i64: 64, 128>}, {pipeline_mode = #tpu.pipeline_mode<synchronous>, transform_indices = @transform_1, window_bounds = array<i64: 8, 128>}, {pipeline_mode = #tpu.pipeline_mode<synchronous>, transform_indices = @transform_2, window_bounds = array<i64: 8, 128>}, {pipeline_mode = #tpu.pipeline_mode<synchronous>, transform_indices = @transform_3, window_bounds = array<i64: 128, 512>}, {pipeline_mode = #tpu.pipeline_mode<synchronous>, transform_indices = @transform_4, window_bounds = array<i64: 128, 512>}, {pipeline_mode = #tpu.pipeline_mode<synchronous>, transform_indices = @transform_5, window_bounds = array<i64: 1, 512>}, {transform_indices = @transform_6, window_bounds = array<i64: 64, 128>}, {pipeline_mode = #tpu.pipeline_mode<synchronous>, transform_indices = @transform_7, window_bounds = array<i64: 8, 128>}, {pipeline_mode = #tpu.pipeline_mode<synchronous>, transform_indices = @transform_8, window_bounds = array<i64: 8, 128>}]} {
    %c0_i32 = arith.constant 0 : i32
    %0 = arith.cmpi eq, %arg0, %c0_i32 : i32
    %1 = arith.extui %0 : i1 to i32
    %c0_i32_0 = arith.constant 0 : i32
    %2 = arith.cmpi ne, %1, %c0_i32_0 : i32
    scf.if %2 {
      %c0_153 = arith.constant 0 : index
      %c0_154 = arith.constant 0 : index
      %326 = vector.load %arg2[%c0_153, %c0_154] : memref<8x128xf32, #tpu.memory_space<vmem>>, vector<8x128xf32>
      %c0_155 = arith.constant 0 : index
      %c0_156 = arith.constant 0 : index
      %327 = vector.load %arg11[%c0_155, %c0_156] : memref<8x128xf32, #tpu.memory_space<vmem>>, vector<8x128xf32>
      tpu.vector_store %arg11[%c0_155, %c0_156], %326 {strides = array<i32>} : memref<8x128xf32, #tpu.memory_space<vmem>>, vector<8x128xf32>,
      %c0_157 = arith.constant 0 : index
      %c0_158 = arith.constant 0 : index
      %328 = vector.load %arg3[%c0_157, %c0_158] : memref<8x128xf32, #tpu.memory_space<vmem>>, vector<8x128xf32>
      %c0_159 = arith.constant 0 : index
      %c0_160 = arith.constant 0 : index
      %329 = vector.load %arg12[%c0_159, %c0_160] : memref<8x128xf32, #tpu.memory_space<vmem>>, vector<8x128xf32>
      tpu.vector_store %arg12[%c0_159, %c0_160], %328 {strides = array<i32>} : memref<8x128xf32, #tpu.memory_space<vmem>>, vector<8x128xf32>,
    } else {
    }
    %c0 = arith.constant 0 : index
    %c0_1 = arith.constant 0 : index
    %3 = vector.load %arg1[%c0, %c0_1] : memref<64x128xbf16, #tpu.memory_space<vmem>>, vector<64x128xbf16>
    %c0_2 = arith.constant 0 : index
    %c0_3 = arith.constant 0 : index
    %4 = vector.load %arg4[%c0_2, %c0_3] : memref<128x512xbf16, #tpu.memory_space<vmem>>, vector<128x512xbf16>
    %cst = arith.constant dense<0.000000e+00> : vector<64x512xf32>
    %5 = tpu.matmul %3, %4, %cst {dimension_numbers = #tpu.dot_dimension_numbers<[1], [0], [0], [1], [0, 0, 1, 1], [], []>} : vector<64x128xbf16>, vector<128x512xbf16>, vector<64x512xf32> -> vector<64x512xf32>
    %c0_4 = arith.constant 0 : index
    %c0_5 = arith.constant 0 : index
    %6 = vector.load %arg6[%c0_4, %c0_5] : memref<1x512xf32, #tpu.memory_space<vmem>>, vector<1x512xf32>
    %7 = vector.broadcast %6 : vector<1x512xf32> to vector<64x512xf32>
    %8 = arith.addf %5, %7 : vector<64x512xf32>
    %c0_6 = arith.constant 0 : index
    %c0_7 = arith.constant 0 : index
    %9 = vector.load %arg10[%c0_6, %c0_7] : memref<64x512xf32, #tpu.memory_space<vmem>>, vector<64x512xf32>
    tpu.vector_store %arg10[%c0_6, %c0_7], %8 {strides = array<i32>} : memref<64x512xf32, #tpu.memory_space<vmem>>, vector<64x512xf32>,
    %c0_i32_8 = arith.constant 0 : i32
    %c8_i32 = arith.constant 8 : i32
    %10 = arith.muli %c0_i32_8, %c8_i32 : i32
    %11 = tpu.assume_multiple %10, 8 : i32
    %12 = arith.index_cast %11 : i32 to index
    %c0_9 = arith.constant 0 : index
    %13 = vector.load %arg10[%12, %c0_9] : memref<64x512xf32, #tpu.memory_space<vmem>>, vector<8x512xf32>
    %c0_10 = arith.constant 0 : index
    %c0_11 = arith.constant 0 : index
    %14 = vector.load %arg11[%c0_10, %c0_11] : memref<8x128xf32, #tpu.memory_space<vmem>>, vector<8x128xf32>
    %15 = arith.truncf %14 : vector<8x128xf32> to vector<8x128xbf16>
    %c0_12 = arith.constant 0 : index
    %c0_13 = arith.constant 0 : index
    %16 = vector.load %arg5[%c0_12, %c0_13] : memref<128x512xbf16, #tpu.memory_space<vmem>>, vector<128x512xbf16>
    %cst_14 = arith.constant dense<0.000000e+00> : vector<8x512xf32>
    %17 = tpu.matmul %15, %16, %cst_14 {dimension_numbers = #tpu.dot_dimension_numbers<[1], [0], [0], [1], [0, 0, 1, 1], [], []>} : vector<8x128xbf16>, vector<128x512xbf16>, vector<8x512xf32> -> vector<8x512xf32>
    %18 = arith.addf %13, %17 : vector<8x512xf32>
    %19 = vector.extract_strided_slice %18 {offsets = [0, 0], sizes = [8, 128], strides = [1, 1]} : vector<8x512xf32> to vector<8x128xf32>
    %20 = arith.negf %19 : vector<8x128xf32>
    %21 = math.exp %20 : vector<8x128xf32>
    %cst_15 = arith.constant 1.000000e+00 : f32
    %22 = vector.broadcast %cst_15 : f32 to vector<8x128xf32>
    %23 = arith.addf %22, %21 : vector<8x128xf32>
    %24 = arith.divf %22, %23 : vector<8x128xf32>
    %25 = vector.extract_strided_slice %18 {offsets = [0, 128], sizes = [8, 128], strides = [1, 1]} : vector<8x512xf32> to vector<8x128xf32>
    %26 = arith.negf %25 : vector<8x128xf32>
    %27 = math.exp %26 : vector<8x128xf32>
    %cst_16 = arith.constant 1.000000e+00 : f32
    %28 = vector.broadcast %cst_16 : f32 to vector<8x128xf32>
    %29 = arith.addf %28, %27 : vector<8x128xf32>
    %30 = arith.divf %28, %29 : vector<8x128xf32>
    %31 = vector.extract_strided_slice %18 {offsets = [0, 256], sizes = [8, 128], strides = [1, 1]} : vector<8x512xf32> to vector<8x128xf32>
    %32 = math.tanh %31 : vector<8x128xf32>
    %33 = vector.extract_strided_slice %18 {offsets = [0, 384], sizes = [8, 128], strides = [1, 1]} : vector<8x512xf32> to vector<8x128xf32>
    %34 = arith.negf %33 : vector<8x128xf32>
    %35 = math.exp %34 : vector<8x128xf32>
    %cst_17 = arith.constant 1.000000e+00 : f32
    %36 = vector.broadcast %cst_17 : f32 to vector<8x128xf32>
    %37 = arith.addf %36, %35 : vector<8x128xf32>
    %38 = arith.divf %36, %37 : vector<8x128xf32>
    %c0_18 = arith.constant 0 : index
    %c0_19 = arith.constant 0 : index
    %39 = vector.load %arg12[%c0_18, %c0_19] : memref<8x128xf32, #tpu.memory_space<vmem>>, vector<8x128xf32>
    %40 = arith.mulf %30, %39 : vector<8x128xf32>
    %41 = arith.mulf %24, %32 : vector<8x128xf32>
    %42 = arith.addf %40, %41 : vector<8x128xf32>
    %43 = math.tanh %42 : vector<8x128xf32>
    %44 = arith.mulf %38, %43 : vector<8x128xf32>
    %c0_20 = arith.constant 0 : index
    %c0_21 = arith.constant 0 : index
    %45 = vector.load %arg12[%c0_20, %c0_21] : memref<8x128xf32, #tpu.memory_space<vmem>>, vector<8x128xf32>
    tpu.vector_store %arg12[%c0_20, %c0_21], %42 {strides = array<i32>} : memref<8x128xf32, #tpu.memory_space<vmem>>, vector<8x128xf32>,
    %c0_22 = arith.constant 0 : index
    %c0_23 = arith.constant 0 : index
    %46 = vector.load %arg11[%c0_22, %c0_23] : memref<8x128xf32, #tpu.memory_space<vmem>>, vector<8x128xf32>
    tpu.vector_store %arg11[%c0_22, %c0_23], %44 {strides = array<i32>} : memref<8x128xf32, #tpu.memory_space<vmem>>, vector<8x128xf32>,
    %47 = arith.index_cast %11 : i32 to index
    %c0_24 = arith.constant 0 : index
    %48 = vector.load %arg7[%47, %c0_24] : memref<64x128xf32, #tpu.memory_space<vmem>>, vector<8x128xf32>
    tpu.vector_store %arg7[%47, %c0_24], %44 {strides = array<i32>} : memref<64x128xf32, #tpu.memory_space<vmem>>, vector<8x128xf32>,
    %c1_i32 = arith.constant 1 : i32
    %c8_i32_25 = arith.constant 8 : i32
    %49 = arith.muli %c1_i32, %c8_i32_25 : i32
    %50 = tpu.assume_multiple %49, 8 : i32
    %51 = arith.index_cast %50 : i32 to index
    %c0_26 = arith.constant 0 : index
    %52 = vector.load %arg10[%51, %c0_26] : memref<64x512xf32, #tpu.memory_space<vmem>>, vector<8x512xf32>
    %c0_27 = arith.constant 0 : index
    %c0_28 = arith.constant 0 : index
    %53 = vector.load %arg11[%c0_27, %c0_28] : memref<8x128xf32, #tpu.memory_space<vmem>>, vector<8x128xf32>
    %54 = arith.truncf %53 : vector<8x128xf32> to vector<8x128xbf16>
    %c0_29 = arith.constant 0 : index
    %c0_30 = arith.constant 0 : index
    %55 = vector.load %arg5[%c0_29, %c0_30] : memref<128x512xbf16, #tpu.memory_space<vmem>>, vector<128x512xbf16>
    %cst_31 = arith.constant dense<0.000000e+00> : vector<8x512xf32>
    %56 = tpu.matmul %54, %55, %cst_31 {dimension_numbers = #tpu.dot_dimension_numbers<[1], [0], [0], [1], [0, 0, 1, 1], [], []>} : vector<8x128xbf16>, vector<128x512xbf16>, vector<8x512xf32> -> vector<8x512xf32>
    %57 = arith.addf %52, %56 : vector<8x512xf32>
    %58 = vector.extract_strided_slice %57 {offsets = [0, 0], sizes = [8, 128], strides = [1, 1]} : vector<8x512xf32> to vector<8x128xf32>
    %59 = arith.negf %58 : vector<8x128xf32>
    %60 = math.exp %59 : vector<8x128xf32>
    %cst_32 = arith.constant 1.000000e+00 : f32
    %61 = vector.broadcast %cst_32 : f32 to vector<8x128xf32>
    %62 = arith.addf %61, %60 : vector<8x128xf32>
    %63 = arith.divf %61, %62 : vector<8x128xf32>
    %64 = vector.extract_strided_slice %57 {offsets = [0, 128], sizes = [8, 128], strides = [1, 1]} : vector<8x512xf32> to vector<8x128xf32>
    %65 = arith.negf %64 : vector<8x128xf32>
    %66 = math.exp %65 : vector<8x128xf32>
    %cst_33 = arith.constant 1.000000e+00 : f32
    %67 = vector.broadcast %cst_33 : f32 to vector<8x128xf32>
    %68 = arith.addf %67, %66 : vector<8x128xf32>
    %69 = arith.divf %67, %68 : vector<8x128xf32>
    %70 = vector.extract_strided_slice %57 {offsets = [0, 256], sizes = [8, 128], strides = [1, 1]} : vector<8x512xf32> to vector<8x128xf32>
    %71 = math.tanh %70 : vector<8x128xf32>
    %72 = vector.extract_strided_slice %57 {offsets = [0, 384], sizes = [8, 128], strides = [1, 1]} : vector<8x512xf32> to vector<8x128xf32>
    %73 = arith.negf %72 : vector<8x128xf32>
    %74 = math.exp %73 : vector<8x128xf32>
    %cst_34 = arith.constant 1.000000e+00 : f32
    %75 = vector.broadcast %cst_34 : f32 to vector<8x128xf32>
    %76 = arith.addf %75, %74 : vector<8x128xf32>
    %77 = arith.divf %75, %76 : vector<8x128xf32>
    %c0_35 = arith.constant 0 : index
    %c0_36 = arith.constant 0 : index
    %78 = vector.load %arg12[%c0_35, %c0_36] : memref<8x128xf32, #tpu.memory_space<vmem>>, vector<8x128xf32>
    %79 = arith.mulf %69, %78 : vector<8x128xf32>
    %80 = arith.mulf %63, %71 : vector<8x128xf32>
    %81 = arith.addf %79, %80 : vector<8x128xf32>
    %82 = math.tanh %81 : vector<8x128xf32>
    %83 = arith.mulf %77, %82 : vector<8x128xf32>
    %c0_37 = arith.constant 0 : index
    %c0_38 = arith.constant 0 : index
    %84 = vector.load %arg12[%c0_37, %c0_38] : memref<8x128xf32, #tpu.memory_space<vmem>>, vector<8x128xf32>
    tpu.vector_store %arg12[%c0_37, %c0_38], %81 {strides = array<i32>} : memref<8x128xf32, #tpu.memory_space<vmem>>, vector<8x128xf32>,
    %c0_39 = arith.constant 0 : index
    %c0_40 = arith.constant 0 : index
    %85 = vector.load %arg11[%c0_39, %c0_40] : memref<8x128xf32, #tpu.memory_space<vmem>>, vector<8x128xf32>
    tpu.vector_store %arg11[%c0_39, %c0_40], %83 {strides = array<i32>} : memref<8x128xf32, #tpu.memory_space<vmem>>, vector<8x128xf32>,
    %86 = arith.index_cast %50 : i32 to index
    %c0_41 = arith.constant 0 : index
    %87 = vector.load %arg7[%86, %c0_41] : memref<64x128xf32, #tpu.memory_space<vmem>>, vector<8x128xf32>
    tpu.vector_store %arg7[%86, %c0_41], %83 {strides = array<i32>} : memref<64x128xf32, #tpu.memory_space<vmem>>, vector<8x128xf32>,
    %c2_i32 = arith.constant 2 : i32
    %c8_i32_42 = arith.constant 8 : i32
    %88 = arith.muli %c2_i32, %c8_i32_42 : i32
    %89 = tpu.assume_multiple %88, 8 : i32
    %90 = arith.index_cast %89 : i32 to index
    %c0_43 = arith.constant 0 : index
    %91 = vector.load %arg10[%90, %c0_43] : memref<64x512xf32, #tpu.memory_space<vmem>>, vector<8x512xf32>
    %c0_44 = arith.constant 0 : index
    %c0_45 = arith.constant 0 : index
    %92 = vector.load %arg11[%c0_44, %c0_45] : memref<8x128xf32, #tpu.memory_space<vmem>>, vector<8x128xf32>
    %93 = arith.truncf %92 : vector<8x128xf32> to vector<8x128xbf16>
    %c0_46 = arith.constant 0 : index
    %c0_47 = arith.constant 0 : index
    %94 = vector.load %arg5[%c0_46, %c0_47] : memref<128x512xbf16, #tpu.memory_space<vmem>>, vector<128x512xbf16>
    %cst_48 = arith.constant dense<0.000000e+00> : vector<8x512xf32>
    %95 = tpu.matmul %93, %94, %cst_48 {dimension_numbers = #tpu.dot_dimension_numbers<[1], [0], [0], [1], [0, 0, 1, 1], [], []>} : vector<8x128xbf16>, vector<128x512xbf16>, vector<8x512xf32> -> vector<8x512xf32>
    %96 = arith.addf %91, %95 : vector<8x512xf32>
    %97 = vector.extract_strided_slice %96 {offsets = [0, 0], sizes = [8, 128], strides = [1, 1]} : vector<8x512xf32> to vector<8x128xf32>
    %98 = arith.negf %97 : vector<8x128xf32>
    %99 = math.exp %98 : vector<8x128xf32>
    %cst_49 = arith.constant 1.000000e+00 : f32
    %100 = vector.broadcast %cst_49 : f32 to vector<8x128xf32>
    %101 = arith.addf %100, %99 : vector<8x128xf32>
    %102 = arith.divf %100, %101 : vector<8x128xf32>
    %103 = vector.extract_strided_slice %96 {offsets = [0, 128], sizes = [8, 128], strides = [1, 1]} : vector<8x512xf32> to vector<8x128xf32>
    %104 = arith.negf %103 : vector<8x128xf32>
    %105 = math.exp %104 : vector<8x128xf32>
    %cst_50 = arith.constant 1.000000e+00 : f32
    %106 = vector.broadcast %cst_50 : f32 to vector<8x128xf32>
    %107 = arith.addf %106, %105 : vector<8x128xf32>
    %108 = arith.divf %106, %107 : vector<8x128xf32>
    %109 = vector.extract_strided_slice %96 {offsets = [0, 256], sizes = [8, 128], strides = [1, 1]} : vector<8x512xf32> to vector<8x128xf32>
    %110 = math.tanh %109 : vector<8x128xf32>
    %111 = vector.extract_strided_slice %96 {offsets = [0, 384], sizes = [8, 128], strides = [1, 1]} : vector<8x512xf32> to vector<8x128xf32>
    %112 = arith.negf %111 : vector<8x128xf32>
    %113 = math.exp %112 : vector<8x128xf32>
    %cst_51 = arith.constant 1.000000e+00 : f32
    %114 = vector.broadcast %cst_51 : f32 to vector<8x128xf32>
    %115 = arith.addf %114, %113 : vector<8x128xf32>
    %116 = arith.divf %114, %115 : vector<8x128xf32>
    %c0_52 = arith.constant 0 : index
    %c0_53 = arith.constant 0 : index
    %117 = vector.load %arg12[%c0_52, %c0_53] : memref<8x128xf32, #tpu.memory_space<vmem>>, vector<8x128xf32>
    %118 = arith.mulf %108, %117 : vector<8x128xf32>
    %119 = arith.mulf %102, %110 : vector<8x128xf32>
    %120 = arith.addf %118, %119 : vector<8x128xf32>
    %121 = math.tanh %120 : vector<8x128xf32>
    %122 = arith.mulf %116, %121 : vector<8x128xf32>
    %c0_54 = arith.constant 0 : index
    %c0_55 = arith.constant 0 : index
    %123 = vector.load %arg12[%c0_54, %c0_55] : memref<8x128xf32, #tpu.memory_space<vmem>>, vector<8x128xf32>
    tpu.vector_store %arg12[%c0_54, %c0_55], %120 {strides = array<i32>} : memref<8x128xf32, #tpu.memory_space<vmem>>, vector<8x128xf32>,
    %c0_56 = arith.constant 0 : index
    %c0_57 = arith.constant 0 : index
    %124 = vector.load %arg11[%c0_56, %c0_57] : memref<8x128xf32, #tpu.memory_space<vmem>>, vector<8x128xf32>
    tpu.vector_store %arg11[%c0_56, %c0_57], %122 {strides = array<i32>} : memref<8x128xf32, #tpu.memory_space<vmem>>, vector<8x128xf32>,
    %125 = arith.index_cast %89 : i32 to index
    %c0_58 = arith.constant 0 : index
    %126 = vector.load %arg7[%125, %c0_58] : memref<64x128xf32, #tpu.memory_space<vmem>>, vector<8x128xf32>
    tpu.vector_store %arg7[%125, %c0_58], %122 {strides = array<i32>} : memref<64x128xf32, #tpu.memory_space<vmem>>, vector<8x128xf32>,
    %c3_i32 = arith.constant 3 : i32
    %c8_i32_59 = arith.constant 8 : i32
    %127 = arith.muli %c3_i32, %c8_i32_59 : i32
    %128 = tpu.assume_multiple %127, 8 : i32
    %129 = arith.index_cast %128 : i32 to index
    %c0_60 = arith.constant 0 : index
    %130 = vector.load %arg10[%129, %c0_60] : memref<64x512xf32, #tpu.memory_space<vmem>>, vector<8x512xf32>
    %c0_61 = arith.constant 0 : index
    %c0_62 = arith.constant 0 : index
    %131 = vector.load %arg11[%c0_61, %c0_62] : memref<8x128xf32, #tpu.memory_space<vmem>>, vector<8x128xf32>
    %132 = arith.truncf %131 : vector<8x128xf32> to vector<8x128xbf16>
    %c0_63 = arith.constant 0 : index
    %c0_64 = arith.constant 0 : index
    %133 = vector.load %arg5[%c0_63, %c0_64] : memref<128x512xbf16, #tpu.memory_space<vmem>>, vector<128x512xbf16>
    %cst_65 = arith.constant dense<0.000000e+00> : vector<8x512xf32>
    %134 = tpu.matmul %132, %133, %cst_65 {dimension_numbers = #tpu.dot_dimension_numbers<[1], [0], [0], [1], [0, 0, 1, 1], [], []>} : vector<8x128xbf16>, vector<128x512xbf16>, vector<8x512xf32> -> vector<8x512xf32>
    %135 = arith.addf %130, %134 : vector<8x512xf32>
    %136 = vector.extract_strided_slice %135 {offsets = [0, 0], sizes = [8, 128], strides = [1, 1]} : vector<8x512xf32> to vector<8x128xf32>
    %137 = arith.negf %136 : vector<8x128xf32>
    %138 = math.exp %137 : vector<8x128xf32>
    %cst_66 = arith.constant 1.000000e+00 : f32
    %139 = vector.broadcast %cst_66 : f32 to vector<8x128xf32>
    %140 = arith.addf %139, %138 : vector<8x128xf32>
    %141 = arith.divf %139, %140 : vector<8x128xf32>
    %142 = vector.extract_strided_slice %135 {offsets = [0, 128], sizes = [8, 128], strides = [1, 1]} : vector<8x512xf32> to vector<8x128xf32>
    %143 = arith.negf %142 : vector<8x128xf32>
    %144 = math.exp %143 : vector<8x128xf32>
    %cst_67 = arith.constant 1.000000e+00 : f32
    %145 = vector.broadcast %cst_67 : f32 to vector<8x128xf32>
    %146 = arith.addf %145, %144 : vector<8x128xf32>
    %147 = arith.divf %145, %146 : vector<8x128xf32>
    %148 = vector.extract_strided_slice %135 {offsets = [0, 256], sizes = [8, 128], strides = [1, 1]} : vector<8x512xf32> to vector<8x128xf32>
    %149 = math.tanh %148 : vector<8x128xf32>
    %150 = vector.extract_strided_slice %135 {offsets = [0, 384], sizes = [8, 128], strides = [1, 1]} : vector<8x512xf32> to vector<8x128xf32>
    %151 = arith.negf %150 : vector<8x128xf32>
    %152 = math.exp %151 : vector<8x128xf32>
    %cst_68 = arith.constant 1.000000e+00 : f32
    %153 = vector.broadcast %cst_68 : f32 to vector<8x128xf32>
    %154 = arith.addf %153, %152 : vector<8x128xf32>
    %155 = arith.divf %153, %154 : vector<8x128xf32>
    %c0_69 = arith.constant 0 : index
    %c0_70 = arith.constant 0 : index
    %156 = vector.load %arg12[%c0_69, %c0_70] : memref<8x128xf32, #tpu.memory_space<vmem>>, vector<8x128xf32>
    %157 = arith.mulf %147, %156 : vector<8x128xf32>
    %158 = arith.mulf %141, %149 : vector<8x128xf32>
    %159 = arith.addf %157, %158 : vector<8x128xf32>
    %160 = math.tanh %159 : vector<8x128xf32>
    %161 = arith.mulf %155, %160 : vector<8x128xf32>
    %c0_71 = arith.constant 0 : index
    %c0_72 = arith.constant 0 : index
    %162 = vector.load %arg12[%c0_71, %c0_72] : memref<8x128xf32, #tpu.memory_space<vmem>>, vector<8x128xf32>
    tpu.vector_store %arg12[%c0_71, %c0_72], %159 {strides = array<i32>} : memref<8x128xf32, #tpu.memory_space<vmem>>, vector<8x128xf32>,
    %c0_73 = arith.constant 0 : index
    %c0_74 = arith.constant 0 : index
    %163 = vector.load %arg11[%c0_73, %c0_74] : memref<8x128xf32, #tpu.memory_space<vmem>>, vector<8x128xf32>
    tpu.vector_store %arg11[%c0_73, %c0_74], %161 {strides = array<i32>} : memref<8x128xf32, #tpu.memory_space<vmem>>, vector<8x128xf32>,
    %164 = arith.index_cast %128 : i32 to index
    %c0_75 = arith.constant 0 : index
    %165 = vector.load %arg7[%164, %c0_75] : memref<64x128xf32, #tpu.memory_space<vmem>>, vector<8x128xf32>
    tpu.vector_store %arg7[%164, %c0_75], %161 {strides = array<i32>} : memref<64x128xf32, #tpu.memory_space<vmem>>, vector<8x128xf32>,
    %c4_i32 = arith.constant 4 : i32
    %c8_i32_76 = arith.constant 8 : i32
    %166 = arith.muli %c4_i32, %c8_i32_76 : i32
    %167 = tpu.assume_multiple %166, 8 : i32
    %168 = arith.index_cast %167 : i32 to index
    %c0_77 = arith.constant 0 : index
    %169 = vector.load %arg10[%168, %c0_77] : memref<64x512xf32, #tpu.memory_space<vmem>>, vector<8x512xf32>
    %c0_78 = arith.constant 0 : index
    %c0_79 = arith.constant 0 : index
    %170 = vector.load %arg11[%c0_78, %c0_79] : memref<8x128xf32, #tpu.memory_space<vmem>>, vector<8x128xf32>
    %171 = arith.truncf %170 : vector<8x128xf32> to vector<8x128xbf16>
    %c0_80 = arith.constant 0 : index
    %c0_81 = arith.constant 0 : index
    %172 = vector.load %arg5[%c0_80, %c0_81] : memref<128x512xbf16, #tpu.memory_space<vmem>>, vector<128x512xbf16>
    %cst_82 = arith.constant dense<0.000000e+00> : vector<8x512xf32>
    %173 = tpu.matmul %171, %172, %cst_82 {dimension_numbers = #tpu.dot_dimension_numbers<[1], [0], [0], [1], [0, 0, 1, 1], [], []>} : vector<8x128xbf16>, vector<128x512xbf16>, vector<8x512xf32> -> vector<8x512xf32>
    %174 = arith.addf %169, %173 : vector<8x512xf32>
    %175 = vector.extract_strided_slice %174 {offsets = [0, 0], sizes = [8, 128], strides = [1, 1]} : vector<8x512xf32> to vector<8x128xf32>
    %176 = arith.negf %175 : vector<8x128xf32>
    %177 = math.exp %176 : vector<8x128xf32>
    %cst_83 = arith.constant 1.000000e+00 : f32
    %178 = vector.broadcast %cst_83 : f32 to vector<8x128xf32>
    %179 = arith.addf %178, %177 : vector<8x128xf32>
    %180 = arith.divf %178, %179 : vector<8x128xf32>
    %181 = vector.extract_strided_slice %174 {offsets = [0, 128], sizes = [8, 128], strides = [1, 1]} : vector<8x512xf32> to vector<8x128xf32>
    %182 = arith.negf %181 : vector<8x128xf32>
    %183 = math.exp %182 : vector<8x128xf32>
    %cst_84 = arith.constant 1.000000e+00 : f32
    %184 = vector.broadcast %cst_84 : f32 to vector<8x128xf32>
    %185 = arith.addf %184, %183 : vector<8x128xf32>
    %186 = arith.divf %184, %185 : vector<8x128xf32>
    %187 = vector.extract_strided_slice %174 {offsets = [0, 256], sizes = [8, 128], strides = [1, 1]} : vector<8x512xf32> to vector<8x128xf32>
    %188 = math.tanh %187 : vector<8x128xf32>
    %189 = vector.extract_strided_slice %174 {offsets = [0, 384], sizes = [8, 128], strides = [1, 1]} : vector<8x512xf32> to vector<8x128xf32>
    %190 = arith.negf %189 : vector<8x128xf32>
    %191 = math.exp %190 : vector<8x128xf32>
    %cst_85 = arith.constant 1.000000e+00 : f32
    %192 = vector.broadcast %cst_85 : f32 to vector<8x128xf32>
    %193 = arith.addf %192, %191 : vector<8x128xf32>
    %194 = arith.divf %192, %193 : vector<8x128xf32>
    %c0_86 = arith.constant 0 : index
    %c0_87 = arith.constant 0 : index
    %195 = vector.load %arg12[%c0_86, %c0_87] : memref<8x128xf32, #tpu.memory_space<vmem>>, vector<8x128xf32>
    %196 = arith.mulf %186, %195 : vector<8x128xf32>
    %197 = arith.mulf %180, %188 : vector<8x128xf32>
    %198 = arith.addf %196, %197 : vector<8x128xf32>
    %199 = math.tanh %198 : vector<8x128xf32>
    %200 = arith.mulf %194, %199 : vector<8x128xf32>
    %c0_88 = arith.constant 0 : index
    %c0_89 = arith.constant 0 : index
    %201 = vector.load %arg12[%c0_88, %c0_89] : memref<8x128xf32, #tpu.memory_space<vmem>>, vector<8x128xf32>
    tpu.vector_store %arg12[%c0_88, %c0_89], %198 {strides = array<i32>} : memref<8x128xf32, #tpu.memory_space<vmem>>, vector<8x128xf32>,
    %c0_90 = arith.constant 0 : index
    %c0_91 = arith.constant 0 : index
    %202 = vector.load %arg11[%c0_90, %c0_91] : memref<8x128xf32, #tpu.memory_space<vmem>>, vector<8x128xf32>
    tpu.vector_store %arg11[%c0_90, %c0_91], %200 {strides = array<i32>} : memref<8x128xf32, #tpu.memory_space<vmem>>, vector<8x128xf32>,
    %203 = arith.index_cast %167 : i32 to index
    %c0_92 = arith.constant 0 : index
    %204 = vector.load %arg7[%203, %c0_92] : memref<64x128xf32, #tpu.memory_space<vmem>>, vector<8x128xf32>
    tpu.vector_store %arg7[%203, %c0_92], %200 {strides = array<i32>} : memref<64x128xf32, #tpu.memory_space<vmem>>, vector<8x128xf32>,
    %c5_i32 = arith.constant 5 : i32
    %c8_i32_93 = arith.constant 8 : i32
    %205 = arith.muli %c5_i32, %c8_i32_93 : i32
    %206 = tpu.assume_multiple %205, 8 : i32
    %207 = arith.index_cast %206 : i32 to index
    %c0_94 = arith.constant 0 : index
    %208 = vector.load %arg10[%207, %c0_94] : memref<64x512xf32, #tpu.memory_space<vmem>>, vector<8x512xf32>
    %c0_95 = arith.constant 0 : index
    %c0_96 = arith.constant 0 : index
    %209 = vector.load %arg11[%c0_95, %c0_96] : memref<8x128xf32, #tpu.memory_space<vmem>>, vector<8x128xf32>
    %210 = arith.truncf %209 : vector<8x128xf32> to vector<8x128xbf16>
    %c0_97 = arith.constant 0 : index
    %c0_98 = arith.constant 0 : index
    %211 = vector.load %arg5[%c0_97, %c0_98] : memref<128x512xbf16, #tpu.memory_space<vmem>>, vector<128x512xbf16>
    %cst_99 = arith.constant dense<0.000000e+00> : vector<8x512xf32>
    %212 = tpu.matmul %210, %211, %cst_99 {dimension_numbers = #tpu.dot_dimension_numbers<[1], [0], [0], [1], [0, 0, 1, 1], [], []>} : vector<8x128xbf16>, vector<128x512xbf16>, vector<8x512xf32> -> vector<8x512xf32>
    %213 = arith.addf %208, %212 : vector<8x512xf32>
    %214 = vector.extract_strided_slice %213 {offsets = [0, 0], sizes = [8, 128], strides = [1, 1]} : vector<8x512xf32> to vector<8x128xf32>
    %215 = arith.negf %214 : vector<8x128xf32>
    %216 = math.exp %215 : vector<8x128xf32>
    %cst_100 = arith.constant 1.000000e+00 : f32
    %217 = vector.broadcast %cst_100 : f32 to vector<8x128xf32>
    %218 = arith.addf %217, %216 : vector<8x128xf32>
    %219 = arith.divf %217, %218 : vector<8x128xf32>
    %220 = vector.extract_strided_slice %213 {offsets = [0, 128], sizes = [8, 128], strides = [1, 1]} : vector<8x512xf32> to vector<8x128xf32>
    %221 = arith.negf %220 : vector<8x128xf32>
    %222 = math.exp %221 : vector<8x128xf32>
    %cst_101 = arith.constant 1.000000e+00 : f32
    %223 = vector.broadcast %cst_101 : f32 to vector<8x128xf32>
    %224 = arith.addf %223, %222 : vector<8x128xf32>
    %225 = arith.divf %223, %224 : vector<8x128xf32>
    %226 = vector.extract_strided_slice %213 {offsets = [0, 256], sizes = [8, 128], strides = [1, 1]} : vector<8x512xf32> to vector<8x128xf32>
    %227 = math.tanh %226 : vector<8x128xf32>
    %228 = vector.extract_strided_slice %213 {offsets = [0, 384], sizes = [8, 128], strides = [1, 1]} : vector<8x512xf32> to vector<8x128xf32>
    %229 = arith.negf %228 : vector<8x128xf32>
    %230 = math.exp %229 : vector<8x128xf32>
    %cst_102 = arith.constant 1.000000e+00 : f32
    %231 = vector.broadcast %cst_102 : f32 to vector<8x128xf32>
    %232 = arith.addf %231, %230 : vector<8x128xf32>
    %233 = arith.divf %231, %232 : vector<8x128xf32>
    %c0_103 = arith.constant 0 : index
    %c0_104 = arith.constant 0 : index
    %234 = vector.load %arg12[%c0_103, %c0_104] : memref<8x128xf32, #tpu.memory_space<vmem>>, vector<8x128xf32>
    %235 = arith.mulf %225, %234 : vector<8x128xf32>
    %236 = arith.mulf %219, %227 : vector<8x128xf32>
    %237 = arith.addf %235, %236 : vector<8x128xf32>
    %238 = math.tanh %237 : vector<8x128xf32>
    %239 = arith.mulf %233, %238 : vector<8x128xf32>
    %c0_105 = arith.constant 0 : index
    %c0_106 = arith.constant 0 : index
    %240 = vector.load %arg12[%c0_105, %c0_106] : memref<8x128xf32, #tpu.memory_space<vmem>>, vector<8x128xf32>
    tpu.vector_store %arg12[%c0_105, %c0_106], %237 {strides = array<i32>} : memref<8x128xf32, #tpu.memory_space<vmem>>, vector<8x128xf32>,
    %c0_107 = arith.constant 0 : index
    %c0_108 = arith.constant 0 : index
    %241 = vector.load %arg11[%c0_107, %c0_108] : memref<8x128xf32, #tpu.memory_space<vmem>>, vector<8x128xf32>
    tpu.vector_store %arg11[%c0_107, %c0_108], %239 {strides = array<i32>} : memref<8x128xf32, #tpu.memory_space<vmem>>, vector<8x128xf32>,
    %242 = arith.index_cast %206 : i32 to index
    %c0_109 = arith.constant 0 : index
    %243 = vector.load %arg7[%242, %c0_109] : memref<64x128xf32, #tpu.memory_space<vmem>>, vector<8x128xf32>
    tpu.vector_store %arg7[%242, %c0_109], %239 {strides = array<i32>} : memref<64x128xf32, #tpu.memory_space<vmem>>, vector<8x128xf32>,
    %c6_i32 = arith.constant 6 : i32
    %c8_i32_110 = arith.constant 8 : i32
    %244 = arith.muli %c6_i32, %c8_i32_110 : i32
    %245 = tpu.assume_multiple %244, 8 : i32
    %246 = arith.index_cast %245 : i32 to index
    %c0_111 = arith.constant 0 : index
    %247 = vector.load %arg10[%246, %c0_111] : memref<64x512xf32, #tpu.memory_space<vmem>>, vector<8x512xf32>
    %c0_112 = arith.constant 0 : index
    %c0_113 = arith.constant 0 : index
    %248 = vector.load %arg11[%c0_112, %c0_113] : memref<8x128xf32, #tpu.memory_space<vmem>>, vector<8x128xf32>
    %249 = arith.truncf %248 : vector<8x128xf32> to vector<8x128xbf16>
    %c0_114 = arith.constant 0 : index
    %c0_115 = arith.constant 0 : index
    %250 = vector.load %arg5[%c0_114, %c0_115] : memref<128x512xbf16, #tpu.memory_space<vmem>>, vector<128x512xbf16>
    %cst_116 = arith.constant dense<0.000000e+00> : vector<8x512xf32>
    %251 = tpu.matmul %249, %250, %cst_116 {dimension_numbers = #tpu.dot_dimension_numbers<[1], [0], [0], [1], [0, 0, 1, 1], [], []>} : vector<8x128xbf16>, vector<128x512xbf16>, vector<8x512xf32> -> vector<8x512xf32>
    %252 = arith.addf %247, %251 : vector<8x512xf32>
    %253 = vector.extract_strided_slice %252 {offsets = [0, 0], sizes = [8, 128], strides = [1, 1]} : vector<8x512xf32> to vector<8x128xf32>
    %254 = arith.negf %253 : vector<8x128xf32>
    %255 = math.exp %254 : vector<8x128xf32>
    %cst_117 = arith.constant 1.000000e+00 : f32
    %256 = vector.broadcast %cst_117 : f32 to vector<8x128xf32>
    %257 = arith.addf %256, %255 : vector<8x128xf32>
    %258 = arith.divf %256, %257 : vector<8x128xf32>
    %259 = vector.extract_strided_slice %252 {offsets = [0, 128], sizes = [8, 128], strides = [1, 1]} : vector<8x512xf32> to vector<8x128xf32>
    %260 = arith.negf %259 : vector<8x128xf32>
    %261 = math.exp %260 : vector<8x128xf32>
    %cst_118 = arith.constant 1.000000e+00 : f32
    %262 = vector.broadcast %cst_118 : f32 to vector<8x128xf32>
    %263 = arith.addf %262, %261 : vector<8x128xf32>
    %264 = arith.divf %262, %263 : vector<8x128xf32>
    %265 = vector.extract_strided_slice %252 {offsets = [0, 256], sizes = [8, 128], strides = [1, 1]} : vector<8x512xf32> to vector<8x128xf32>
    %266 = math.tanh %265 : vector<8x128xf32>
    %267 = vector.extract_strided_slice %252 {offsets = [0, 384], sizes = [8, 128], strides = [1, 1]} : vector<8x512xf32> to vector<8x128xf32>
    %268 = arith.negf %267 : vector<8x128xf32>
    %269 = math.exp %268 : vector<8x128xf32>
    %cst_119 = arith.constant 1.000000e+00 : f32
    %270 = vector.broadcast %cst_119 : f32 to vector<8x128xf32>
    %271 = arith.addf %270, %269 : vector<8x128xf32>
    %272 = arith.divf %270, %271 : vector<8x128xf32>
    %c0_120 = arith.constant 0 : index
    %c0_121 = arith.constant 0 : index
    %273 = vector.load %arg12[%c0_120, %c0_121] : memref<8x128xf32, #tpu.memory_space<vmem>>, vector<8x128xf32>
    %274 = arith.mulf %264, %273 : vector<8x128xf32>
    %275 = arith.mulf %258, %266 : vector<8x128xf32>
    %276 = arith.addf %274, %275 : vector<8x128xf32>
    %277 = math.tanh %276 : vector<8x128xf32>
    %278 = arith.mulf %272, %277 : vector<8x128xf32>
    %c0_122 = arith.constant 0 : index
    %c0_123 = arith.constant 0 : index
    %279 = vector.load %arg12[%c0_122, %c0_123] : memref<8x128xf32, #tpu.memory_space<vmem>>, vector<8x128xf32>
    tpu.vector_store %arg12[%c0_122, %c0_123], %276 {strides = array<i32>} : memref<8x128xf32, #tpu.memory_space<vmem>>, vector<8x128xf32>,
    %c0_124 = arith.constant 0 : index
    %c0_125 = arith.constant 0 : index
    %280 = vector.load %arg11[%c0_124, %c0_125] : memref<8x128xf32, #tpu.memory_space<vmem>>, vector<8x128xf32>
    tpu.vector_store %arg11[%c0_124, %c0_125], %278 {strides = array<i32>} : memref<8x128xf32, #tpu.memory_space<vmem>>, vector<8x128xf32>,
    %281 = arith.index_cast %245 : i32 to index
    %c0_126 = arith.constant 0 : index
    %282 = vector.load %arg7[%281, %c0_126] : memref<64x128xf32, #tpu.memory_space<vmem>>, vector<8x128xf32>
    tpu.vector_store %arg7[%281, %c0_126], %278 {strides = array<i32>} : memref<64x128xf32, #tpu.memory_space<vmem>>, vector<8x128xf32>,
    %c7_i32 = arith.constant 7 : i32
    %c8_i32_127 = arith.constant 8 : i32
    %283 = arith.muli %c7_i32, %c8_i32_127 : i32
    %284 = tpu.assume_multiple %283, 8 : i32
    %285 = arith.index_cast %284 : i32 to index
    %c0_128 = arith.constant 0 : index
    %286 = vector.load %arg10[%285, %c0_128] : memref<64x512xf32, #tpu.memory_space<vmem>>, vector<8x512xf32>
    %c0_129 = arith.constant 0 : index
    %c0_130 = arith.constant 0 : index
    %287 = vector.load %arg11[%c0_129, %c0_130] : memref<8x128xf32, #tpu.memory_space<vmem>>, vector<8x128xf32>
    %288 = arith.truncf %287 : vector<8x128xf32> to vector<8x128xbf16>
    %c0_131 = arith.constant 0 : index
    %c0_132 = arith.constant 0 : index
    %289 = vector.load %arg5[%c0_131, %c0_132] : memref<128x512xbf16, #tpu.memory_space<vmem>>, vector<128x512xbf16>
    %cst_133 = arith.constant dense<0.000000e+00> : vector<8x512xf32>
    %290 = tpu.matmul %288, %289, %cst_133 {dimension_numbers = #tpu.dot_dimension_numbers<[1], [0], [0], [1], [0, 0, 1, 1], [], []>} : vector<8x128xbf16>, vector<128x512xbf16>, vector<8x512xf32> -> vector<8x512xf32>
    %291 = arith.addf %286, %290 : vector<8x512xf32>
    %292 = vector.extract_strided_slice %291 {offsets = [0, 0], sizes = [8, 128], strides = [1, 1]} : vector<8x512xf32> to vector<8x128xf32>
    %293 = arith.negf %292 : vector<8x128xf32>
    %294 = math.exp %293 : vector<8x128xf32>
    %cst_134 = arith.constant 1.000000e+00 : f32
    %295 = vector.broadcast %cst_134 : f32 to vector<8x128xf32>
    %296 = arith.addf %295, %294 : vector<8x128xf32>
    %297 = arith.divf %295, %296 : vector<8x128xf32>
    %298 = vector.extract_strided_slice %291 {offsets = [0, 128], sizes = [8, 128], strides = [1, 1]} : vector<8x512xf32> to vector<8x128xf32>
    %299 = arith.negf %298 : vector<8x128xf32>
    %300 = math.exp %299 : vector<8x128xf32>
    %cst_135 = arith.constant 1.000000e+00 : f32
    %301 = vector.broadcast %cst_135 : f32 to vector<8x128xf32>
    %302 = arith.addf %301, %300 : vector<8x128xf32>
    %303 = arith.divf %301, %302 : vector<8x128xf32>
    %304 = vector.extract_strided_slice %291 {offsets = [0, 256], sizes = [8, 128], strides = [1, 1]} : vector<8x512xf32> to vector<8x128xf32>
    %305 = math.tanh %304 : vector<8x128xf32>
    %306 = vector.extract_strided_slice %291 {offsets = [0, 384], sizes = [8, 128], strides = [1, 1]} : vector<8x512xf32> to vector<8x128xf32>
    %307 = arith.negf %306 : vector<8x128xf32>
    %308 = math.exp %307 : vector<8x128xf32>
    %cst_136 = arith.constant 1.000000e+00 : f32
    %309 = vector.broadcast %cst_136 : f32 to vector<8x128xf32>
    %310 = arith.addf %309, %308 : vector<8x128xf32>
    %311 = arith.divf %309, %310 : vector<8x128xf32>
    %c0_137 = arith.constant 0 : index
    %c0_138 = arith.constant 0 : index
    %312 = vector.load %arg12[%c0_137, %c0_138] : memref<8x128xf32, #tpu.memory_space<vmem>>, vector<8x128xf32>
    %313 = arith.mulf %303, %312 : vector<8x128xf32>
    %314 = arith.mulf %297, %305 : vector<8x128xf32>
    %315 = arith.addf %313, %314 : vector<8x128xf32>
    %316 = math.tanh %315 : vector<8x128xf32>
    %317 = arith.mulf %311, %316 : vector<8x128xf32>
    %c0_139 = arith.constant 0 : index
    %c0_140 = arith.constant 0 : index
    %318 = vector.load %arg12[%c0_139, %c0_140] : memref<8x128xf32, #tpu.memory_space<vmem>>, vector<8x128xf32>
    tpu.vector_store %arg12[%c0_139, %c0_140], %315 {strides = array<i32>} : memref<8x128xf32, #tpu.memory_space<vmem>>, vector<8x128xf32>,
    %c0_141 = arith.constant 0 : index
    %c0_142 = arith.constant 0 : index
    %319 = vector.load %arg11[%c0_141, %c0_142] : memref<8x128xf32, #tpu.memory_space<vmem>>, vector<8x128xf32>
    tpu.vector_store %arg11[%c0_141, %c0_142], %317 {strides = array<i32>} : memref<8x128xf32, #tpu.memory_space<vmem>>, vector<8x128xf32>,
    %320 = arith.index_cast %284 : i32 to index
    %c0_143 = arith.constant 0 : index
    %321 = vector.load %arg7[%320, %c0_143] : memref<64x128xf32, #tpu.memory_space<vmem>>, vector<8x128xf32>
    tpu.vector_store %arg7[%320, %c0_143], %317 {strides = array<i32>} : memref<64x128xf32, #tpu.memory_space<vmem>>, vector<8x128xf32>,
    %c8_i32_144 = arith.constant 8 : i32
    %c0_145 = arith.constant 0 : index
    %c0_146 = arith.constant 0 : index
    %322 = vector.load %arg11[%c0_145, %c0_146] : memref<8x128xf32, #tpu.memory_space<vmem>>, vector<8x128xf32>
    %c0_147 = arith.constant 0 : index
    %c0_148 = arith.constant 0 : index
    %323 = vector.load %arg8[%c0_147, %c0_148] : memref<8x128xf32, #tpu.memory_space<vmem>>, vector<8x128xf32>
    tpu.vector_store %arg8[%c0_147, %c0_148], %322 {strides = array<i32>} : memref<8x128xf32, #tpu.memory_space<vmem>>, vector<8x128xf32>,
    %c0_149 = arith.constant 0 : index
    %c0_150 = arith.constant 0 : index
    %324 = vector.load %arg12[%c0_149, %c0_150] : memref<8x128xf32, #tpu.memory_space<vmem>>, vector<8x128xf32>
    %c0_151 = arith.constant 0 : index
    %c0_152 = arith.constant 0 : index
    %325 = vector.load %arg9[%c0_151, %c0_152] : memref<8x128xf32, #tpu.memory_space<vmem>>, vector<8x128xf32>
    tpu.vector_store %arg9[%c0_151, %c0_152], %324 {strides = array<i32>} : memref<8x128xf32, #tpu.memory_space<vmem>>, vector<8x128xf32>,
    return
  }
  func.func @transform_0(%arg0: i32) -> (i32, i32) {
    %c0_i32 = arith.constant 0 : i32
    %c0_i32_0 = arith.constant 0 : i32
    return %arg0, %c0_i32 : i32, i32
  }
  func.func @transform_1(%arg0: i32) -> (i32, i32) {
    %c0_i32 = arith.constant 0 : i32
    %c0_i32_0 = arith.constant 0 : i32
    %c0_i32_1 = arith.constant 0 : i32
    return %c0_i32, %c0_i32_0 : i32, i32
  }
  func.func @transform_2(%arg0: i32) -> (i32, i32) {
    %c0_i32 = arith.constant 0 : i32
    %c0_i32_0 = arith.constant 0 : i32
    %c0_i32_1 = arith.constant 0 : i32
    return %c0_i32, %c0_i32_0 : i32, i32
  }
  func.func @transform_3(%arg0: i32) -> (i32, i32) {
    %c0_i32 = arith.constant 0 : i32
    %c0_i32_0 = arith.constant 0 : i32
    %c0_i32_1 = arith.constant 0 : i32
    return %c0_i32, %c0_i32_0 : i32, i32
  }
  func.func @transform_4(%arg0: i32) -> (i32, i32) {
    %c0_i32 = arith.constant 0 : i32
    %c0_i32_0 = arith.constant 0 : i32
    %c0_i32_1 = arith.constant 0 : i32
    return %c0_i32, %c0_i32_0 : i32, i32
  }
  func.func @transform_5(%arg0: i32) -> (i32, i32) {
    %c0_i32 = arith.constant 0 : i32
    %c0_i32_0 = arith.constant 0 : i32
    %c0_i32_1 = arith.constant 0 : i32
    return %c0_i32, %c0_i32_0 : i32, i32
  }
  func.func @transform_6(%arg0: i32) -> (i32, i32) {
    %c0_i32 = arith.constant 0 : i32
    %c0_i32_0 = arith.constant 0 : i32
    return %arg0, %c0_i32 : i32, i32
  }
  func.func @transform_7(%arg0: i32) -> (i32, i32) {
    %c0_i32 = arith.constant 0 : i32
    %c0_i32_0 = arith.constant 0 : i32
    %c0_i32_1 = arith.constant 0 : i32
    return %c0_i32, %c0_i32_0 : i32, i32
  }
  func.func @transform_8(%arg0: i32) -> (i32, i32) {
    %c0_i32 = arith.constant 0 : i32
    %c0_i32_0 = arith.constant 0 : i32
    %c0_i32_1 = arith.constant 0 : i32
    return %c0_i32, %c0_i32_0 : i32, i32
  }
}

</mosaic_0001>

<bundles_post_ra>
// kernel: custom-call
= control target key start
LH: loop header
LB: loop body
LE: loop exit
PB: predicated region body
PF: predicated region fallthrough
CT: control target
= control target key end

     0   :  { %2 = vsyncpa [#allocation0], 0  ;;  %s61_s0 = inlined_call_operand.hbm [shape: c64[2,8,4], index: 0, kind: input, shape index: {}]   ;;  %s62_s1 = inlined_call_operand.vmem [shape: f32[2,8,4], index: 1, kind: output, shape index: {}]  }
   0x1   :  { %s3_s8 = sshll.u32 %s62_s1, 4  ;;  %s9_s11 = scalar_lea.hbm %s61_s0, 128  ;;  %s4_s8 = int_to_ptr.vmem [resolvable:$true] %s3_s8 }
   0x2   :  { %p10_p0 = scmp.ne.s32.totalorder %s61_s0, %s9_s11  ;;  %s11_s16 = scalar_lea.hbm %s61_s0, 256 }
   0x3   :  { %p12_p1 = scmp.lt.u32.totalorder %s11_s16, %s9_s11  ;;  %p13_p2 = scmp.lt.u32.totalorder %s9_s11, %s61_s0 }
   0x5   :  { %p14_p3 = por %p13_p2, %p12_p1 }
   0x7   :  { %p15_p4 = pnand %p14_p3, %p10_p0 }
   0x9   :  { %18 = shalt.err (!%p15_p4)  }
   0xa   :  { %s19_s1 = scalar_lea.vmem %s4_s8, 128  ;;  %p24_p6 = scmp.lt.s32.totalorder %s4_s8, %s4_s8 }
   0xb   :  { %p20_p5 = scmp.ne.s32.totalorder %s4_s8, %s19_s1  ;;  %p25_p7 = scmp.lt.s32.totalorder %s19_s1, %s19_s1 }
   0xd   :  { %p26_p8 = por %p25_p7, %p24_p6 }
   0xf   :  { %p27_p9 = pnand %p26_p8, %p20_p5 }
  0x11   :  { %30 = shalt.err (!%p27_p9)  }
  0x12   :  { %6 = dma.hbm_to_vmem [thread:$0]  %s61_s0, 128, %s4_s8, [#allocation0] }
  0x13   :  { %31 = dma.done.wait [#allocation0], 128  }
  0x14   :  { %32 = vsyncadd [#allocation0], 4294967168 }
  0x15   :  { %8 = vsyncpa [#allocation0], 1 }

// kernel: custom-call.1
= control target key start
LH: loop header
LB: loop body
LE: loop exit
PB: predicated region body
PF: predicated region fallthrough
CT: control target
= control target key end

     0   :  { %s59_s0 = inlined_call_operand.hbm [shape: c64[2,8,4], index: 0, kind: input, shape index: {}]   ;;  %s60_s1 = inlined_call_operand.vmem [shape: f32[2,8,4], index: 1, kind: output, shape index: {}]  }
   0x1   :  { %s2_s8 = scalar_lea.hbm %s59_s0, 128 }
   0x2   :  { %3 = vsyncpa [#allocation0], 0  ;;  %s4_s11 = sshll.u32 %s60_s1, 4  ;;  %s34_s14 = scalar_lea.hbm %s59_s0, 256  ;;  %s5_s11 = int_to_ptr.vmem [resolvable:$true] %s4_s11 }
   0x3   :  { %p11_p0 = scmp.ne.s32.totalorder %s2_s8, %s34_s14  ;;  %p13_p1 = scmp.lt.u32.totalorder %s2_s8, %s59_s0 }
   0x4   :  { %p14_p2 = scmp.lt.u32.totalorder %s34_s14, %s34_s14  ;;  %p16_p4 = scmp.lt.u32.totalorder %s34_s14, %s2_s8 }
   0x6   :  { %p15_p3 = por %p14_p2, %p13_p1 }
   0x8   :  { %p17_p5 = por %p16_p4, %p15_p3 }
   0xa   :  { %p18_p6 = pnand %p17_p5, %p11_p0 }
   0xc   :  { %21 = shalt.err (!%p18_p6)  }
   0xd   :  { %s22_s17 = scalar_lea.vmem %s5_s11, 128  ;;  %p27_p8 = scmp.lt.s32.totalorder %s5_s11, %s5_s11 }
   0xe   :  { %p23_p7 = scmp.ne.s32.totalorder %s5_s11, %s22_s17  ;;  %p28_p9 = scmp.lt.s32.totalorder %s22_s17, %s22_s17 }
  0x10   :  { %p29_p10 = por %p28_p9, %p27_p8 }
  0x12   :  { %p30_p11 = pnand %p29_p10, %p23_p7 }
  0x14   :  { %33 = shalt.err (!%p30_p11)  }
  0x15   :  { %7 = dma.hbm_to_vmem [thread:$0]  %s2_s8, 128, %s5_s11, [#allocation0] }
  0x16   :  { %35 = dma.done.wait [#allocation0], 128  }
  0x17   :  { %36 = vsyncadd [#allocation0], 4294967168 }
  0x18   :  { %9 = vsyncpa [#allocation0], 1 }

// kernel: custom-call.2
= control target key start
LH: loop header
LB: loop body
LE: loop exit
PB: predicated region body
PF: predicated region fallthrough
CT: control target
= control target key end

     0   :  { %s126_s0 = inlined_call_operand.vmem [shape: f32[2,8,16], index: 0, kind: input, shape index: {}]   ;;  %s127_s1 = inlined_call_operand.vmem [shape: f32[2,8,16], index: 1, kind: input, shape index: {}]   ;;  %s128_s2 = inlined_call_operand.hbm [shape: c64[2,8,16], index: 2, kind: output, shape index: {}]  }
   0x1   :  { %s87_s11 = scalar_lea.hbm %s128_s2, 256 }
   0x2   :  { %4 = vsyncpa [#allocation0], 0  ;;  %s5_s14 = sshll.u32 %s126_s0, 4  ;;  %s6_s14 = int_to_ptr.vmem [resolvable:$true] %s5_s14 }
   0x3   :  { %s18_s15 = scalar_lea.vmem %s6_s14, 256  ;;  %p23_p1 = scmp.lt.s32.totalorder %s6_s14, %s6_s14 }
   0x4   :  { %p19_p0 = scmp.ne.s32.totalorder %s6_s14, %s18_s15  ;;  %p24_p2 = scmp.lt.s32.totalorder %s18_s15, %s18_s15 }
   0x6   :  { %p25_p3 = por %p24_p2, %p23_p1 }
   0x8   :  { %p26_p4 = pnand %p25_p3, %p19_p0 }
   0xa   :  { %29 = shalt.err (!%p26_p4)  }
   0xb   :  { %p31_p5 = scmp.ne.s32.totalorder %s128_s2, %s87_s11  ;;  %s32_s0 = scalar_lea.hbm %s128_s2, 512 }
   0xc   :  { %p33_p6 = scmp.lt.u32.totalorder %s32_s0, %s87_s11  ;;  %p34_p7 = scmp.lt.u32.totalorder %s87_s11, %s128_s2 }
   0xe   :  { %p35_p8 = por %p34_p7, %p33_p6 }
  0x10   :  { %p36_p9 = pnand %p35_p8, %p31_p5 }
  0x12   :  { %39 = shalt.err (!%p36_p9)  }
  0x13   :  { %8 = dma.vmem_to_hbm [thread:$0]  %s6_s14, 256, %s128_s2, [#allocation0] }
  0x14   :  { %65 = dma.done.wait [#allocation0], 256  }
  0x15   :  { %66 = vsyncadd [#allocation0], 4294967040 }
  0x16   :  { %10 = vsyncpa [#allocation0], 1 }
  0x17   :  { %11 = vsyncpa [#allocation1], 0  ;;  %s12_s28 = sshll.u32 %s127_s1, 4  ;;  %s13_s28 = int_to_ptr.vmem [resolvable:$true] %s12_s28 }
  0x18   :  { %s40_s29 = scalar_lea.vmem %s13_s28, 256  ;;  %p45_p11 = scmp.lt.s32.totalorder %s13_s28, %s13_s28 }
  0x19   :  { %p41_p10 = scmp.ne.s32.totalorder %s13_s28, %s40_s29  ;;  %p46_p12 = scmp.lt.s32.totalorder %s40_s29, %s40_s29 }
  0x1b   :  { %p47_p13 = por %p46_p12, %p45_p11 }
  0x1d   :  { %p48_p0 = pnand %p47_p13, %p41_p10 }
  0x1f   :  { %51 = shalt.err (!%p48_p0)  }
  0x20   :  { %p53_p1 = scmp.ne.s32.totalorder %s87_s11, %s32_s0  ;;  %p56_p2 = scmp.lt.u32.totalorder %s32_s0, %s32_s0 }
  0x22   :  { %p57_p3 = por %p56_p2, %p34_p7 }
  0x24   :  { %p59_p4 = por %p57_p3, %p33_p6 }
  0x26   :  { %p60_p5 = pnand %p59_p4, %p53_p1 }
  0x28   :  { %63 = shalt.err (!%p60_p5)  }
  0x29   :  { %15 = dma.vmem_to_hbm [thread:$0]  %s13_s28, 256, %s87_s11, [#allocation1] }
  0x2a   :  { %67 = dma.done.wait [#allocation1], 256  }
  0x2b   :  { %68 = vsyncadd [#allocation1], 4294967040 }
  0x2c   :  { %17 = vsyncpa [#allocation1], 1 }

// kernel: complex_lstm_forward_jit.2
= control target key start
LH: loop header
LB: loop body
LE: loop exit
PB: predicated region body
PF: predicated region fallthrough
CT: control target
= control target key end

     0   :  { %14 = vsyncpa [#allocation6], 0  ;;  %s4366_s0 = inlined_call_operand.vmem [shape: bf16[64,128], index: 0, kind: input, shape index: {}]   ;;  %s4367_s1 = inlined_call_operand.vmem [shape: f32[8,128], index: 1, kind: input, shape index: {}]   ;;  %s4368_s2 = inlined_call_operand.vmem [shape: f32[8,128], index: 2, kind: input, shape index: {}]   ;;  %s4369_s3 = inlined_call_operand.hbm [shape: bf16[128,512], index: 3, kind: input, shape index: {}]   ;;  %s4370_s4 = inlined_call_operand.hbm [shape: bf16[128,512], index: 4, kind: input, shape index: {}]   ;;  %s4371_s5 = inlined_call_operand.vmem [shape: f32[1,512], index: 5, kind: input, shape index: {}]   ;;  %s4372_s6 = inlined_call_operand.vmem [shape: bf16[64,128], index: 6, kind: output, shape index: {0}]   ;;  %s4373_s7 = inlined_call_operand.vmem [shape: f32[8,128], index: 7, kind: output, shape index: {1}]   ;;  %s4374_s8 = inlined_call_operand.vmem [shape: f32[8,128], index: 8, kind: output, shape index: {2}]  }
   0x1   :  { %15 = vsyncpa [#allocation8], 0  ;;  %s3699_s27 = smov [#allocation5]   ;;  %s3651_s9 = scalar_lea.hbm %s4369_s3, 4096 }
   0x2   :  { %s27_s28 = sshll.u32 %s3699_s27, 4  ;;  %p3652_p0 = scmp.ne.s32.totalorder %s4369_s3, %s3651_s9  ;;  %s28_s28 = int_to_ptr.vmem [resolvable:$true] %s27_s28 }
   0x3   :  { %p3655_p1 = scmp.lt.u32.totalorder %s3651_s9, %s4369_s3 }
   0x5   :  { %p3657_p2 = pnand %p3655_p1, %p3652_p0 }
   0x7   :  { %3660 = shalt.err (!%p3657_p2)
}
   0x8   :  { %s3661_s14 = scalar_lea.vmem %s28_s28, 4096  ;;  %p3666_p4 = scmp.lt.s32.totalorder %s28_s28, %s28_s28 }
   0x9   :  { %p3662_p3 = scmp.ne.s32.totalorder %s28_s28, %s3661_s14  ;;  %p3667_p5 = scmp.lt.s32.totalorder %s3661_s14, %s3661_s14 }
   0xb   :  { %p3668_p6 = por %p3667_p5, %p3666_p4 }
   0xd   :  { %p3669_p7 = pnand %p3668_p6, %p3662_p3 }
   0xf   :  { %3672 = shalt.err (!%p3669_p7)
}
  0x10   :  { %s3700_s15 = smov 256   ;;  %s3701_s16 = smov 16  }
  0x11   :  { %33 = dma.hbm_to_vmem [thread:$0]  %s4369_s3, 4096, %s28_s28, [#allocation6], %s3700_s15, %s3700_s15, %s3701_s16  }
  0x12   :  { %s3702_s19 = smov [#allocation7]   ;;  %s3673_s23 = scalar_lea.hbm %s4370_s4, 4096 }
  0x13   :  { %s39_s20 = sshll.u32 %s3702_s19, 4  ;;  %p3674_p8 = scmp.ne.s32.totalorder %s4370_s4, %s3673_s23  ;;  %s40_s20 = int_to_ptr.vmem [resolvable:$true] %s39_s20 }
  0x14   :  { %p3677_p9 = scmp.lt.u32.totalorder %s3673_s23, %s4370_s4 }
  0x16   :  { %p3679_p10 = pnand %p3677_p9, %p3674_p8 }
  0x18   :  { %3682 = shalt.err (!%p3679_p10)
}
  0x19   :  { %s3683_s29 = scalar_lea.vmem %s40_s20, 4096  ;;  %p3688_p12 = scmp.lt.s32.totalorder %s40_s20, %s40_s20 }
  0x1a   :  { %p3684_p11 = scmp.ne.s32.totalorder %s40_s20, %s3683_s29  ;;  %p3689_p13 = scmp.lt.s32.totalorder %s3683_s29, %s3683_s29 }
  0x1c   :  { %p3690_p0 = por %p3689_p13, %p3688_p12 }
  0x1e   :  { %p3691_p1 = pnand %p3690_p0, %p3684_p11 }
  0x20   :  { %3694 = shalt.err (!%p3691_p1)
}
  0x21   :  { %45 = dma.hbm_to_vmem [thread:$0]  %s4370_s4, 4096, %s40_s20, [#allocation8], %s3700_s15, %s3700_s15, %s3701_s16  }
  0x22   :  { %3695 = dma.done.wait [#allocation6], 4096  }
  0x23   :  { %3696 = vsyncadd [#allocation6], 4294963200 }
  0x24   :  { %3697 = dma.done.wait [#allocation8], 4096  }
  0x25   :  { %3698 = vsyncadd [#allocation8], 4294963200  ;;  %v4375_v0 = vmov 0   ;;  %v3375_v1 = vld [vmem:[#allocation5 + $0x4] ss:$16 sps:$4 sm:$0xff]   ;;  %v3436_v44 = vld [vmem:[%s4366_s0 + $0x8] sm:$0xff]  }
  0x26   :  { %341 = vmatprep.mubr.bf16.mxu0 %v4375_v0  ;;  %414 = vmatprep.mubr.bf16.mxu1 %v4375_v0  ;;  %v3377_v2 = vld [vmem:[#allocation5 + $0xc] ss:$16 sps:$4 sm:$0xff]   ;;  %v3379_v3 = vld [vmem:[#allocation5] ss:$16 sps:$4 sm:$0xff]   ;;  %v3380_v4 = vld [vmem:[#allocation5 + $0x8] ss:$16 sps:$4 sm:$0xff]  }
  0x27   :  { %309 = vmatprep.subr.bf16.mxu0 %v3375_v1  ;;  %382 = vmatprep.subr.bf16.mxu1 %v3377_v2  ;;  %v3381_v5 = vld [vmem:[#allocation5 + $0x24] ss:$16 sps:$4 sm:$0xff]   ;;  %v3383_v6 = vld [vmem:[#allocation5 + $0x2c] ss:$16 sps:$4 sm:$0xff]   ;;  %v3385_v7 = vld [vmem:[#allocation5 + $0x20] ss:$16 sps:$4 sm:$0xff]  }
  0x28   :  { %310 = vmatpush1.bf16.msra.mxu0 %v3379_v3  ;;  %383 = vmatpush1.bf16.msra.mxu1 %v3380_v4  ;;  %v3386_v8 = vld [vmem:[#allocation5 + $0x28] ss:$16 sps:$4 sm:$0xff]   ;;  %v3387_v9 = vld [vmem:[#allocation5 + $0x44] ss:$16 sps:$4 sm:$0xff]   ;;  %v3389_v10 = vld [vmem:[#allocation5 + $0x4c] ss:$16 sps:$4 sm:$0xff]  }
  0x29   :  { %311 = vmatprep.subr.bf16.mxu0 %v3381_v5  ;;  %384 = vmatprep.subr.bf16.mxu1 %v3383_v6  ;;  %v3391_v11 = vld [vmem:[#allocation5 + $0x40] ss:$16 sps:$4 sm:$0xff]   ;;  %v3392_v12 = vld [vmem:[#allocation5 + $0x48] ss:$16 sps:$4 sm:$0xff]   ;;  %v3393_v13 = vld [vmem:[#allocation5 + $0x64] ss:$16 sps:$4 sm:$0xff]  }
  0x2a   :  { %v3395_v14 = vld [vmem:[#allocation5 + $0x6c] ss:$16 sps:$4 sm:$0xff]   ;;  %v3397_v15 = vld [vmem:[#allocation5 + $0x60] ss:$16 sps:$4 sm:$0xff]   ;;  %v3398_v16 = vld [vmem:[#allocation5 + $0x68] ss:$16 sps:$4 sm:$0xff]  }
  0x2b   :  { %v3399_v17 = vld [vmem:[#allocation5 + $0x84] ss:$16 sps:$4 sm:$0xff]   ;;  %v3401_v18 = vld [vmem:[#allocation5 + $0x8c] ss:$16 sps:$4 sm:$0xff]   ;;  %v3403_v19 = vld [vmem:[#allocation5 + $0x80] ss:$16 sps:$4 sm:$0xff]  }
  0x2c   :  { %312 = vmatpush1.bf16.msra.mxu0 %v3385_v7  ;;  %385 = vmatpush1.bf16.msra.mxu1 %v3386_v8  ;;  %v3404_v20 = vld [vmem:[#allocation5 + $0x88] ss:$16 sps:$4 sm:$0xff]   ;;  %v3405_v21 = vld [vmem:[#allocation5 + $0xa4] ss:$16 sps:$4 sm:$0xff]   ;;  %v3407_v22 = vld [vmem:[#allocation5 + $0xac] ss:$16 sps:$4 sm:$0xff]   ;;  %v105_v8 = vlaneseq }
  0x2d   :  { %313 = vmatprep.subr.bf16.mxu0 %v3387_v9  ;;  %386 = vmatprep.subr.bf16.mxu1 %v3389_v10  ;;  %v3409_v23 = vld [vmem:[#allocation5 + $0xa0] ss:$16 sps:$4 sm:$0xff]   ;;  %v3410_v24 = vld [vmem:[#allocation5 + $0xa8] ss:$16 sps:$4 sm:$0xff]   ;;  %v3411_v25 = vld [vmem:[#allocation5 + $0xc4] ss:$16 sps:$4 sm:$0xff]  }
  0x2e   :  { %v3413_v26 = vld [vmem:[#allocation5 + $0xcc] ss:$16 sps:$4 sm:$0xff]   ;;  %v3415_v27 = vld [vmem:[#allocation5 + $0xc0] ss:$16 sps:$4 sm:$0xff]   ;;  %v3416_v28 = vld [vmem:[#allocation5 + $0xc8] ss:$16 sps:$4 sm:$0xff]  }
  0x2f   :  { %v3417_v29 = vld [vmem:[#allocation5 + $0xe4] ss:$16 sps:$4 sm:$0xff]   ;;  %v3419_v30 = vld [vmem:[#allocation5 + $0xec] ss:$16 sps:$4 sm:$0xff]   ;;  %v3421_v31 = vld [vmem:[#allocation5 + $0xe0] ss:$16 sps:$4 sm:$0xff]  }
  0x30   :  { %314 = vmatpush1.bf16.msra.mxu0 %v3391_v11  ;;  %387 = vmatpush1.bf16.msra.mxu1 %v3392_v12  ;;  %v3422_v32 = vld [vmem:[#allocation5 + $0xe8] ss:$16 sps:$4 sm:$0xff]   ;;  %v3775_v33 = vld [vmem:[#allocation7 + $0x4] ss:$16 sps:$4 sm:$0xff]   ;;  %v3777_v34 = vld [vmem:[#allocation7 + $0xc] ss:$16 sps:$4 sm:$0xff]  }
  0x31   :  { %315 = vmatprep.subr.bf16.mxu0 %v3393_v13  ;;  %388 = vmatprep.subr.bf16.mxu1 %v3395_v14  ;;  %v3423_v35 = vld [vmem:[%s4366_s0] sm:$0xff]   ;;  %v3784_v37 = vld [vmem:[#allocation7 + $0x8] ss:$16 sps:$4 sm:$0xff]   ;;  %v3790_v39 = vld [vmem:[#allocation7 + $0x2c] ss:$16 sps:$4 sm:$0xff]   ;;  %v106_v9 = vshrl.u32 %v105_v8, 7 }
  0x32   :  { %v3782_v36 = vld [vmem:[#allocation7] ss:$16 sps:$4 sm:$0xff]   ;;  %v3788_v38 = vld [vmem:[#allocation7 + $0x24] ss:$16 sps:$4 sm:$0xff]   ;;  %v3796_v41 = vld [vmem:[#allocation7 + $0x28] ss:$16 sps:$4 sm:$0xff]  }
  0x33   :  { %v3792_v40 = vld [vmem:[#allocation7 + $0x20] ss:$16 sps:$4 sm:$0xff]   ;;  %v3800_v42 = vld [vmem:[#allocation7 + $0x44] ss:$16 sps:$4 sm:$0xff]   ;;  %v3802_v43 = vld [vmem:[#allocation7 + $0x4c] ss:$16 sps:$4 sm:$0xff]  }
  0x34   :  { %316 = vmatpush1.bf16.msra.mxu0 %v3397_v15  ;;  %389 = vmatpush1.bf16.msra.mxu1 %v3398_v16  ;;  %v3809_v45 = vld [vmem:[#allocation7 + $0x40] ss:$16 sps:$4 sm:$0xff]   ;;  %v3811_v46 = vld [vmem:[#allocation7 + $0x48] ss:$16 sps:$4 sm:$0xff]   ;;  %v3815_v47 = vld [vmem:[#allocation7 + $0x64] ss:$16 sps:$4 sm:$0xff]  }
  0x35   :  { %317 = vmatprep.subr.bf16.mxu0 %v3399_v17  ;;  %390 = vmatprep.subr.bf16.mxu1 %v3401_v18  ;;  %v3819_v48 = vld [vmem:[#allocation7 + $0x6c] ss:$16 sps:$4 sm:$0xff]   ;;  %v3821_v49 = vld [vmem:[#allocation7 + $0x60] ss:$16 sps:$4 sm:$0xff]   ;;  %v3823_v50 = vld [vmem:[#allocation7 + $0x68] ss:$16 sps:$4 sm:$0xff]  }
  0x36   :  { %v3827_v51 = vld [vmem:[#allocation7 + $0x84] ss:$16 sps:$4 sm:$0xff]   ;;  %v3831_v52 = vld [vmem:[#allocation7 + $0x8c] ss:$16 sps:$4 sm:$0xff]   ;;  %v3838_v54 = vld [vmem:[#allocation7 + $0x80] ss:$16 sps:$4 sm:$0xff]  }
  0x37   :  { %v3449_v53 = vld [vmem:[%s4366_s0 + $0x10] sm:$0xff]   ;;  %v3840_v55 = vld [vmem:[#allocation7 + $0x88] ss:$16 sps:$4 sm:$0xff]   ;;  %v3844_v57 = vld [vmem:[#allocation7 + $0xac] ss:$16 sps:$4 sm:$0xff]   ;;  %v115_v10 = vsub.s32 2, %v106_v9 }
  0x38   :  { %318 = vmatpush1.bf16.msra.mxu0 %v3403_v19  ;;  %391 = vmatpush1.bf16.msra.mxu1 %v3404_v20  ;;  %v3842_v56 = vld [vmem:[#allocation7 + $0xa4] ss:$16 sps:$4 sm:$0xff]   ;;  %v3850_v58 = vld [vmem:[#allocation7 + $0xa0] ss:$16 sps:$4 sm:$0xff]   ;;  %v3852_v59 = vld [vmem:[#allocation7 + $0xa8] ss:$16 sps:$4 sm:$0xff]  }
  0x39   :  { %319 = vmatprep.subr.bf16.mxu0 %v3405_v21  ;;  %392 = vmatprep.subr.bf16.mxu1 %v3407_v22  ;;  %v3854_v60 = vld [vmem:[#allocation7 + $0xc4] ss:$16 sps:$4 sm:$0xff]   ;;  %v3856_v61 = vld [vmem:[#allocation7 + $0xcc] ss:$16 sps:$4 sm:$0xff]   ;;  %v3867_v63 = vld [vmem:[#allocation7 + $0xc0] ss:$16 sps:$4 sm:$0xff]  }
  0x3a   :  { %v3462_v62 = vld [vmem:[%s4366_s0 + $0x18] sm:$0xff]   ;;  %v3871_v2 = vld [vmem:[#allocation7 + $0xe4] ss:$16 sps:$4 sm:$0xff]   ;;  %v3881_v4 = vld [vmem:[#allocation7 + $0xe0] ss:$16 sps:$4 sm:$0xff]   ;;  %v119_v11 = vsub.s32 3, %v106_v9 }
  0x3b   :  { %v3869_v1 = vld [vmem:[#allocation7 + $0xc8] ss:$16 sps:$4 sm:$0xff]   ;;  %v3873_v3 = vld [vmem:[#allocation7 + $0xec] ss:$16 sps:$4 sm:$0xff]   ;;  %v59_v6 = vld [vmem:[%s4367_s1] sm:$0xff]  ;;  %v107_v12 = vsub.s32 0, %v106_v9 }
  0x3c   :  { %320 = vmatpush1.bf16.msra.mxu0 %v3409_v23  ;;  %393 = vmatpush1.bf16.msra.mxu1 %v3410_v24  ;;  %v3883_v5 = vld [vmem:[#allocation7 + $0xe8] ss:$16 sps:$4 sm:$0xff]   ;;  %v495_v7 = vpack.c.bf16 %v59_v6, %v59_v6  ;;  %v103_v13 = vld [vmem:[%s4371_s5] sm:$0xf]  ;;  %v111_v14 = vsub.s32 1, %v106_v9 }
  0x3d   :  { %321 = vmatprep.subr.bf16.mxu0 %v3411_v25  ;;  %394 = vmatprep.subr.bf16.mxu1 %v3413_v26  ;;  %v3933_v15 = vrot.slane %v103_v13, %v115_v10  ;;  %v3939_v18 = vrot.slane %v103_v13, %v119_v11  ;;  %v108_v19 = vrot.slane %v103_v13, %v107_v12 }
  0x3e   :  { %v112_v22 = vrot.slane %v103_v13, %v111_v14 }
  0x40   :  { %322 = vmatpush1.bf16.msra.mxu0 %v3415_v27  ;;  %395 = vmatpush1.bf16.msra.mxu1 %v3416_v28 }
  0x41   :  { %323 = vmatprep.subr.bf16.mxu0 %v3417_v29  ;;  %396 = vmatprep.subr.bf16.mxu1 %v3419_v30 }
  0x44   :  { %324 = vmatpush1.bf16.msra.mxu0 %v3421_v31  ;;  %397 = vmatpush1.bf16.msra.mxu1 %v3422_v32 }
  0x45   :  { %688 = vmatprep.subr.bf16.mxu0 %v3775_v33  ;;  %729 = vmatprep.subr.bf16.mxu1 %v3777_v34 }
  0x47   :  { %342 = vmatmul.mubr.bf16.vlgmr.msra.gmra.mrb[0].mxu0 %v3423_v35  ;;  %415 = vmatmul.mubr.bf16.vlgmr.msra.gmra.mrb[0].mxu1 %v3423_v35 }
  0x48   :  { %689 = vmatpush1.bf16.msra.mxu0 %v3782_v36  ;;  %730 = vmatpush1.bf16.msra.mxu1 %v3784_v37 }
  0x49   :  { %690 = vmatprep.subr.bf16.mxu0 %v3788_v38  ;;  %731 = vmatprep.subr.bf16.mxu1 %v3790_v39 }
  0x4a   :  { %351 = vmatprep.mubr.bf16.mxu0 %v4375_v0  ;;  %424 = vmatprep.mubr.bf16.mxu1 %v4375_v0 }
  0x4c   :  { %691 = vmatpush1.bf16.msra.mxu0 %v3792_v40  ;;  %732 = vmatpush1.bf16.msra.mxu1 %v3796_v41 }
  0x4d   :  { %692 = vmatprep.subr.bf16.mxu0 %v3800_v42  ;;  %733 = vmatprep.subr.bf16.mxu1 %v3802_v43 }
  0x4f   :  { %352 = vmatmul.mubr.bf16.gmra.mrb[4].mxu0 %v3436_v44  ;;  %425 = vmatmul.mubr.bf16.gmra.mrb[4].mxu1 %v3436_v44 }
  0x50   :  { %693 = vmatpush1.bf16.msra.mxu0 %v3809_v45  ;;  %734 = vmatpush1.bf16.msra.mxu1 %v3811_v46 }
  0x51   :  { %694 = vmatprep.subr.bf16.mxu0 %v3815_v47  ;;  %735 = vmatprep.subr.bf16.mxu1 %v3819_v48 }
  0x52   :  { %361 = vmatprep.mubr.bf16.mxu0 %v4375_v0  ;;  %434 = vmatprep.mubr.bf16.mxu1 %v4375_v0 }
  0x54   :  { %695 = vmatpush1.bf16.msra.mxu0 %v3821_v49  ;;  %736 = vmatpush1.bf16.msra.mxu1 %v3823_v50 }
  0x55   :  { %696 = vmatprep.subr.bf16.mxu0 %v3827_v51  ;;  %737 = vmatprep.subr.bf16.mxu1 %v3831_v52 }
  0x57   :  { %362 = vmatmul.mubr.bf16.gmra.mrb[8].mxu0 %v3449_v53  ;;  %435 = vmatmul.mubr.bf16.gmra.mrb[8].mxu1 %v3449_v53 }
  0x58   :  { %697 = vmatpush1.bf16.msra.mxu0 %v3838_v54  ;;  %738 = vmatpush1.bf16.msra.mxu1 %v3840_v55 }
  0x59   :  { %698 = vmatprep.subr.bf16.mxu0 %v3842_v56  ;;  %739 = vmatprep.subr.bf16.mxu1 %v3844_v57 }
  0x5a   :  { %371 = vmatprep.mubr.bf16.mxu0 %v4375_v0  ;;  %444 = vmatprep.mubr.bf16.mxu1 %v4375_v0 }
  0x5c   :  { %699 = vmatpush1.bf16.msra.mxu0 %v3850_v58  ;;  %740 = vmatpush1.bf16.msra.mxu1 %v3852_v59 }
  0x5d   :  { %700 = vmatprep.subr.bf16.mxu0 %v3854_v60  ;;  %741 = vmatprep.subr.bf16.mxu1 %v3856_v61 }
  0x5f   :  { %372 = vmatmul.mubr.bf16.gmra.mrb[12].mxu0 %v3462_v62  ;;  %445 = vmatmul.mubr.bf16.gmra.mrb[12].mxu1 %v3462_v62 }
  0x60   :  { %701 = vmatpush1.bf16.msra.mxu0 %v3867_v63  ;;  %742 = vmatpush1.bf16.msra.mxu1 %v3869_v1 }
  0x61   :  { %702 = vmatprep.subr.bf16.mxu0 %v3871_v2  ;;  %743 = vmatprep.subr.bf16.mxu1 %v3873_v3 }
  0x62   :  { %720 = vmatprep.mubr.bf16.mxu0 %v4375_v0  ;;  %761 = vmatprep.mubr.bf16.mxu1 %v4375_v0 }
  0x64   :  { %703 = vmatpush1.bf16.msra.mxu0 %v3881_v4  ;;  %744 = vmatpush1.bf16.msra.mxu1 %v3883_v5 }
  0x65   :  { %1004 = vmatprep.subr.bf16.mxu0 %v3775_v33  ;;  %1045 = vmatprep.subr.bf16.mxu1 %v3777_v34 }
  0x67   :  { %721 = vmatmul.mubr.bf16.vlgmr.msra.gmra.mrb[16].mxu0 %v495_v7  ;;  %762 = vmatmul.mubr.bf16.vlgmr.msra.gmra.mrb[16].mxu1 %v495_v7 }
  0x68   :  { %1005 = vmatpush1.bf16.msra.mxu0 %v3782_v36  ;;  %1046 = vmatpush1.bf16.msra.mxu1 %v3784_v37 }
  0x69   :  { %1006 = vmatprep.subr.bf16.mxu0 %v3788_v38  ;;  %1047 = vmatprep.subr.bf16.mxu1 %v3790_v39 }
  0x6a   :  { %1036 = vmatprep.mubr.bf16.mxu0 %v4375_v0  ;;  %1077 = vmatprep.mubr.bf16.mxu1 %v4375_v0 }
  0x6c   :  { %1007 = vmatpush1.bf16.msra.mxu0 %v3792_v40  ;;  %1048 = vmatpush1.bf16.msra.mxu1 %v3796_v41 }
  0x6d   :  { %1008 = vmatprep.subr.bf16.mxu0 %v3800_v42  ;;  %1049 = vmatprep.subr.bf16.mxu1 %v3802_v43 }
  0x70   :  { %1009 = vmatpush1.bf16.msra.mxu0 %v3809_v45  ;;  %1050 = vmatpush1.bf16.msra.mxu1 %v3811_v46 }
  0x71   :  { %1010 = vmatprep.subr.bf16.mxu0 %v3815_v47  ;;  %1051 = vmatprep.subr.bf16.mxu1 %v3819_v48 }
  0x74   :  { %1011 = vmatpush1.bf16.msra.mxu0 %v3821_v49  ;;  %1052 = vmatpush1.bf16.msra.mxu1 %v3823_v50 }
  0x75   :  { %1012 = vmatprep.subr.bf16.mxu0 %v3827_v51  ;;  %1053 = vmatprep.subr.bf16.mxu1 %v3831_v52 }
  0x78   :  { %1013 = vmatpush1.bf16.msra.mxu0 %v3838_v54  ;;  %1054 = vmatpush1.bf16.msra.mxu1 %v3840_v55 }
  0x79   :  { %1014 = vmatprep.subr.bf16.mxu0 %v3842_v56  ;;  %1055 = vmatprep.subr.bf16.mxu1 %v3844_v57 }
  0x7c   :  { %1015 = vmatpush1.bf16.msra.mxu0 %v3850_v58  ;;  %1056 = vmatpush1.bf16.msra.mxu1 %v3852_v59 }
  0x7d   :  { %1016 = vmatprep.subr.bf16.mxu0 %v3854_v60  ;;  %1057 = vmatprep.subr.bf16.mxu1 %v3856_v61 }
  0x80   :  { %1017 = vmatpush1.bf16.msra.mxu0 %v3867_v63  ;;  %1058 = vmatpush1.bf16.msra.mxu1 %v3869_v1 }
  0x81   :  { %1018 = vmatprep.subr.bf16.mxu0 %v3871_v2  ;;  %1059 = vmatprep.subr.bf16.mxu1 %v3873_v3 }
  0x84   :  { %1019 = vmatpush1.bf16.msra.mxu0 %v3881_v4  ;;  %1060 = vmatpush1.bf16.msra.mxu1 %v3883_v5 }
  0x85   :  { %1321 = vmatprep.subr.bf16.mxu0 %v3775_v33  ;;  %1362 = vmatprep.subr.bf16.mxu1 %v3777_v34 }
 0x11a   :  { %v3935_v16 = vpop.f32.mrb[0].mxu0  ;;  %v3937_v17 = vpop.f32.mrb[0].mxu1 }
 0x11b   :  { %v345_v20 = vpop.f32.mrb[1].mxu0  ;;  %v418_v21 = vpop.f32.mrb[1].mxu1 }
 0x11c   :  { %v347_v23 = vpop.f32.mrb[2].mxu0  ;;  %v420_v24 = vpop.f32.mrb[2].mxu1 }
 0x11d   :  { %v3941_v25 = vadd.f32 %v347_v23, %v108_v19  ;;  %v349_v26 = vpop.f32.mrb[3].mxu0  ;;  %v3944_v27 = vadd.f32 %v420_v24, %v3933_v15  ;;  %v422_v28 = vpop.f32.mrb[3].mxu1 }
 0x11e   :  { %v3946_v29 = vadd.f32 %v349_v26, %v112_v22  ;;  %v3949_v30 = vadd.f32 %v422_v28, %v3939_v18 }
 0x122   :  { %v353_v31 = vpop.f32.mrb[4].mxu0  ;;  %v426_v32 = vpop.f32.mrb[4].mxu1 }
 0x123   :  { %v3951_v35 = vadd.f32 %v353_v31, %v108_v19  ;;  %v355_v44 = vpop.f32.mrb[5].mxu0  ;;  %v3954_v53 = vadd.f32 %v426_v32, %v3933_v15  ;;  %v428_v62 = vpop.f32.mrb[5].mxu1 }
 0x124   :  { %v3956_v6 = vadd.f32 %v355_v44, %v112_v22  ;;  %v357_v7 = vpop.f32.mrb[6].mxu0  ;;  %v3959_v8 = vadd.f32 %v428_v62, %v3939_v18  ;;  %v430_v9 = vpop.f32.mrb[6].mxu1 }
 0x125   :  { %v3961_v10 = vadd.f32 %v357_v7, %v108_v19  ;;  %v359_v11 = vpop.f32.mrb[7].mxu0  ;;  %v3964_v12 = vadd.f32 %v430_v9, %v3933_v15  ;;  %v432_v13 = vpop.f32.mrb[7].mxu1 }
 0x126   :  { %4377 = vst [vmem:[#allocation11_spill] sm:$0xff] %v3959_v8  ;;  %v3966_v14 = vadd.f32 %v359_v11, %v112_v22  ;;  %v3969_v23 = vadd.f32 %v432_v13, %v3939_v18 }
 0x127   :  { %4378 = vst [vmem:[#allocation12_spill] sm:$0xff] %v3961_v10  ;;  %4379 = vst [vmem:[#allocation13_spill] sm:$0xff] %v3964_v12 }
 0x128   :  { %4380 = vst [vmem:[#allocation14_spill] sm:$0xff] %v3966_v14  ;;  %4381 = vst [vmem:[#allocation15_spill] sm:$0xff] %v3969_v23 }
 0x12a   :  { %v363_v24 = vpop.f32.mrb[8].mxu0  ;;  %v436_v26 = vpop.f32.mrb[8].mxu1 }
 0x12b   :  { %v3971_v28 = vadd.f32 %v363_v24, %v108_v19  ;;  %v365_v31 = vpop.f32.mrb[9].mxu0  ;;  %v3974_v32 = vadd.f32 %v436_v26, %v3933_v15  ;;  %v438_v44 = vpop.f32.mrb[9].mxu1 }
 0x12c   :  { %v3976_v62 = vadd.f32 %v365_v31, %v112_v22  ;;  %v367_v7 = vpop.f32.mrb[10].mxu0  ;;  %v3979_v9 = vadd.f32 %v438_v44, %v3939_v18  ;;  %v440_v11 = vpop.f32.mrb[10].mxu1 }
 0x12d   :  { %4382 = vst [vmem:[#allocation16_spill] sm:$0xff] %v3971_v28  ;;  %4383 = vst [vmem:[#allocation17_spill] sm:$0xff] %v3974_v32  ;;  %v3981_v0 = vadd.f32 %v367_v7, %v108_v19  ;;  %v369_v13 = vpop.f32.mrb[11].mxu0  ;;  %v3984_v23 = vadd.f32 %v440_v11, %v3933_v15  ;;  %v442_v24 = vpop.f32.mrb[11].mxu1 }
 0x12e   :  { %4384 = vst [vmem:[#allocation18_spill] sm:$0xff] %v3976_v62  ;;  %4385 = vst [vmem:[#allocation19_spill] sm:$0xff] %v3979_v9  ;;  %v3986_v28 = vadd.f32 %v369_v13, %v112_v22  ;;  %v3989_v26 = vadd.f32 %v442_v24, %v3939_v18 }
 0x12f   :  { %4386 = vst [vmem:[#allocation20_spill] sm:$0xff] %v3981_v0  ;;  %4387 = vst [vmem:[#allocation21_spill] sm:$0xff] %v3984_v23 }
 0x130   :  { %4388 = vst [vmem:[#allocation22_spill] sm:$0xff] %v3986_v28  ;;  %4389 = vst [vmem:[#allocation23_spill] sm:$0xff] %v3989_v26 }
 0x132   :  { %v373_v32 = vpop.f32.mrb[12].mxu0  ;;  %v446_v31 = vpop.f32.mrb[12].mxu1 }
 0x133   :  { %v3991_v62 = vadd.f32 %v373_v32, %v108_v19  ;;  %v375_v14 = vpop.f32.mrb[13].mxu0  ;;  %v3994_v44 = vadd.f32 %v446_v31, %v3933_v15  ;;  %v448_v7 = vpop.f32.mrb[13].mxu1 }
 0x134   :  { %v3996_v0 = vadd.f32 %v375_v14, %v112_v22  ;;  %v377_v9 = vpop.f32.mrb[14].mxu0  ;;  %v3999_v11 = vadd.f32 %v448_v7, %v3939_v18  ;;  %v450_v13 = vpop.f32.mrb[14].mxu1  ;;  %v344_v14 = vadd.f32 %v3935_v16, %v108_v19  ;;  %v346_v7 = vadd.f32 %v345_v20, %v112_v22 }
 0x135   :  { %4390 = vst [vmem:[#allocation24_spill] sm:$0xff] %v3991_v62  ;;  %4391 = vst [vmem:[#allocation25_spill] sm:$0xff] %v3994_v44  ;;  %v4001_v28 = vadd.f32 %v377_v9, %v108_v19  ;;  %v379_v24 = vpop.f32.mrb[15].mxu0  ;;  %v4004_v26 = vadd.f32 %v450_v13, %v3933_v15  ;;  %v452_v32 = vpop.f32.mrb[15].mxu1 }
 0x136   :  { %4392 = vst [vmem:[#allocation26_spill] sm:$0xff] %v3996_v0  ;;  %4393 = vst [vmem:[#allocation27_spill] sm:$0xff] %v3999_v11  ;;  %v4006_v62 = vadd.f32 %v379_v24, %v112_v22  ;;  %v4009_v31 = vadd.f32 %v452_v32, %v3939_v18  ;;  %v417_v0 = vadd.f32 %v3937_v17, %v3933_v15  ;;  %v61_v22 = vld [vmem:[%s4368_s2] sm:$0xff] }
 0x137   :  { %4394 = vst [vmem:[#allocation28_spill] sm:$0xff] %v4001_v28  ;;  %4395 = vst [vmem:[#allocation29_spill] sm:$0xff] %v4004_v26  ;;  %v419_v11 = vadd.f32 %v418_v21, %v3939_v18 }
 0x138   :  { %4396 = vst [vmem:[#allocation30_spill] sm:$0xff] %v4006_v62  ;;  %4397 = vst [vmem:[#allocation31_spill] sm:$0xff] %v4009_v31 }
 0x13a   :  { %v722_v9 = vpop.f32.mrb[16].mxu0  ;;  %v763_v28 = vpop.f32.mrb[16].mxu1 }
 0x13b   :  { %v770_v44 = vadd.f32 %v722_v9, %v344_v14  ;;  %v772_v23 = vadd.f32 %v763_v28, %v417_v0  ;;  %v724_v13 = vpop.f32.mrb[17].mxu0  ;;  %v765_v26 = vpop.f32.mrb[17].mxu1  ;;  %v4398_v14 = vmov 0  }
 0x13c   :  { %v771_v12 = vadd.f32 %v724_v13, %v346_v7  ;;  %v773_v24 = vadd.f32 %v765_v26, %v419_v11  ;;  %v726_v62 = vpop.f32.mrb[18].mxu0  ;;  %v767_v10 = vpop.f32.mrb[18].mxu1 }
 0x13d   :  { %v3115_v32 = vmul.f32 -1.442695, %v770_v44  ;;  %v727_v31 = vpop.f32.mrb[19].mxu0  ;;  %v768_v8 = vpop.f32.mrb[19].mxu1 }
 0x13e   :  { %v3116_v16 = vmul.f32 -1.442695, %v771_v12  ;;  %v3117_v15 = vmul.f32 -1.442695, %v773_v24 }
 0x13f   :  { %3523 = vpow2.f32 %v3115_v32 }
 0x140   :  { %3525 = vpow2.f32 %v3116_v16 }
 0x141   :  { %3527 = vpow2.f32 %v3117_v15 }
 0x142   :  { %3529 = vtanh.f32 %v772_v23 }
 0x149   :  { %v3524_v17 = vpop.eup %3523 }
 0x14a   :  { %v3526_v19 = vpop.eup %3525  ;;  %v777_v18 = vadd.f32 1.0, %v3524_v17 }
 0x14b   :  { %v783_v20 = vadd.f32 1.0, %v3526_v19  ;;  %v3528_v0 = vpop.eup %3527 }
 0x14c   :  { %3531 = vrcp.f32 %v777_v18  ;;  %v3530_v21 = vpop.eup %3529  ;;  %v790_v28 = vadd.f32 1.0, %v3528_v0 }
 0x14d   :  { %3533 = vrcp.f32 %v783_v20 }
 0x14e   :  { %3535 = vrcp.f32 %v790_v28 }
 0x156   :  { %v3532_v10 = vpop.eup %3531 }
 0x157   :  { %v3534_v8 = vpop.eup %3533  ;;  %v795_v12 = vmul.f32 %v3532_v10, %v3530_v21 }
 0x158   :  { %v794_v62 = vmul.f32 %v3534_v8, %v61_v22  ;;  %v3536_v23 = vpop.eup %3535 }
 0x15a   :  { %v4018_v26 = vadd.f32 %v795_v12, %v794_v62 }
 0x15c   :  { %3537 = vtanh.f32 %v4018_v26 }
 0x166   :  { %v3538_v44 = vpop.eup %3537 }
 0x167   :  { %v798_v11 = vmul.f32 %v3538_v44, %v3536_v23 }
 0x169   :  { %v801_v31 = vpack.c.bf16 %v798_v11, %v798_v11 }
 0x16b   :  { %802 = vst [vmem:[%s4372_s6] sm:$0xf] %v801_v31  ;;  %1037 = vmatmul.mubr.bf16.vlgmr.msra.gmra.mrb[20].mxu0 %v801_v31  ;;  %1078 = vmatmul.mubr.bf16.vlgmr.msra.gmra.mrb[20].mxu1 %v801_v31 }
 0x16c   :  { %1322 = vmatpush1.bf16.msra.mxu0 %v3782_v36  ;;  %1363 = vmatpush1.bf16.msra.mxu1 %v3784_v37 }
 0x16d   :  { %1323 = vmatprep.subr.bf16.mxu0 %v3788_v38  ;;  %1364 = vmatprep.subr.bf16.mxu1 %v3790_v39 }
 0x16e   :  { %1353 = vmatprep.mubr.bf16.mxu0 %v4398_v14  ;;  %1394 = vmatprep.mubr.bf16.mxu1 %v4398_v14 }
 0x170   :  { %1324 = vmatpush1.bf16.msra.mxu0 %v3792_v40  ;;  %1365 = vmatpush1.bf16.msra.mxu1 %v3796_v41 }
 0x171   :  { %1325 = vmatprep.subr.bf16.mxu0 %v3800_v42  ;;  %1366 = vmatprep.subr.bf16.mxu1 %v3802_v43 }
 0x174   :  { %1326 = vmatpush1.bf16.msra.mxu0 %v3809_v45  ;;  %1367 = vmatpush1.bf16.msra.mxu1 %v3811_v46 }
 0x175   :  { %1327 = vmatprep.subr.bf16.mxu0 %v3815_v47  ;;  %1368 = vmatprep.subr.bf16.mxu1 %v3819_v48 }
 0x178   :  { %1328 = vmatpush1.bf16.msra.mxu0 %v3821_v49  ;;  %1369 = vmatpush1.bf16.msra.mxu1 %v3823_v50 }
 0x179   :  { %1329 = vmatprep.subr.bf16.mxu0 %v3827_v51  ;;  %1370 = vmatprep.subr.bf16.mxu1 %v3831_v52 }
 0x17c   :  { %1330 = vmatpush1.bf16.msra.mxu0 %v3838_v54  ;;  %1371 = vmatpush1.bf16.msra.mxu1 %v3840_v55 }
 0x17d   :  { %1331 = vmatprep.subr.bf16.mxu0 %v3842_v56  ;;  %1372 = vmatprep.subr.bf16.mxu1 %v3844_v57 }
 0x180   :  { %1332 = vmatpush1.bf16.msra.mxu0 %v3850_v58  ;;  %1373 = vmatpush1.bf16.msra.mxu1 %v3852_v59 }
 0x181   :  { %1333 = vmatprep.subr.bf16.mxu0 %v3854_v60  ;;  %1374 = vmatprep.subr.bf16.mxu1 %v3856_v61 }
 0x184   :  { %1334 = vmatpush1.bf16.msra.mxu0 %v3867_v63  ;;  %1375 = vmatpush1.bf16.msra.mxu1 %v3869_v1 }
 0x185   :  { %1335 = vmatprep.subr.bf16.mxu0 %v3871_v2  ;;  %1376 = vmatprep.subr.bf16.mxu1 %v3873_v3 }
 0x188   :  { %1336 = vmatpush1.bf16.msra.mxu0 %v3881_v4  ;;  %1377 = vmatpush1.bf16.msra.mxu1 %v3883_v5 }
 0x189   :  { %1638 = vmatprep.subr.bf16.mxu0 %v3775_v33  ;;  %1679 = vmatprep.subr.bf16.mxu1 %v3777_v34 }
 0x23e   :  { %v1038_v7 = vpop.f32.mrb[20].mxu0  ;;  %v1079_v9 = vpop.f32.mrb[20].mxu1 }
 0x23f   :  { %v1086_v13 = vadd.f32 %v1038_v7, %v3941_v25  ;;  %v1088_v24 = vadd.f32 %v1079_v9, %v3944_v27  ;;  %v1040_v32 = vpop.f32.mrb[21].mxu0  ;;  %v1081_v16 = vpop.f32.mrb[21].mxu1 }
 0x240   :  { %v1087_v15 = vadd.f32 %v1040_v32, %v3946_v29  ;;  %v1089_v17 = vadd.f32 %v1081_v16, %v3949_v30  ;;  %v1042_v19 = vpop.f32.mrb[22].mxu0  ;;  %v1083_v18 = vpop.f32.mrb[22].mxu1  ;;  %v4126_v32 = vld [vmem:[#allocation7 + $0x24] ss:$16 sps:$4 sm:$0xff]   ;;  %v4128_v16 = vld [vmem:[#allocation7 + $0x2c] ss:$16 sps:$4 sm:$0xff]  }
 0x241   :  { %v3150_v20 = vmul.f32 -1.442695, %v1086_v13  ;;  %v1043_v0 = vpop.f32.mrb[23].mxu0  ;;  %v1084_v21 = vpop.f32.mrb[23].mxu1  ;;  %v4118_v13 = vld [vmem:[#allocation7] ss:$16 sps:$4 sm:$0xff]  }
 0x242   :  { %v3151_v33 = vmul.f32 -1.442695, %v1087_v15  ;;  %v3152_v34 = vmul.f32 -1.442695, %v1089_v17  ;;  %v4130_v15 = vld [vmem:[#allocation7 + $0x20] ss:$16 sps:$4 sm:$0xff]  }
 0x243   :  { %3539 = vpow2.f32 %v3150_v20  ;;  %v4132_v17 = vld [vmem:[#allocation7 + $0x28] ss:$16 sps:$4 sm:$0xff]   ;;  %v4138_v19 = vld [vmem:[#allocation7 + $0x44] ss:$16 sps:$4 sm:$0xff]   ;;  %v4140_v18 = vld [vmem:[#allocation7 + $0x4c] ss:$16 sps:$4 sm:$0xff]  }
 0x244   :  { %3541 = vpow2.f32 %v3151_v33  ;;  %v4142_v20 = vld [vmem:[#allocation7 + $0x40] ss:$16 sps:$4 sm:$0xff]   ;;  %v4144_v0 = vld [vmem:[#allocation7 + $0x48] ss:$16 sps:$4 sm:$0xff]   ;;  %v4150_v21 = vld [vmem:[#allocation7 + $0x64] ss:$16 sps:$4 sm:$0xff]  }
 0x245   :  { %3543 = vpow2.f32 %v3152_v34  ;;  %v4152_v33 = vld [vmem:[#allocation7 + $0x6c] ss:$16 sps:$4 sm:$0xff]   ;;  %v4154_v34 = vld [vmem:[#allocation7 + $0x60] ss:$16 sps:$4 sm:$0xff]  }
 0x246   :  { %3545 = vtanh.f32 %v1088_v24  ;;  %v4120_v24 = vld [vmem:[#allocation7 + $0x8] ss:$16 sps:$4 sm:$0xff]  }
 0x24d   :  { %v3540_v22 = vpop.eup %3539 }
 0x24e   :  { %v3542_v10 = vpop.eup %3541  ;;  %v1093_v25 = vadd.f32 1.0, %v3540_v22  ;;  %v4156_v22 = vld [vmem:[#allocation7 + $0x68] ss:$16 sps:$4 sm:$0xff]  }
 0x24f   :  { %v1099_v27 = vadd.f32 1.0, %v3542_v10  ;;  %v3544_v29 = vpop.eup %3543  ;;  %v4162_v10 = vld [vmem:[#allocation7 + $0x80] ss:$16 sps:$4 sm:$0xff]  }
 0x250   :  { %3547 = vrcp.f32 %v1093_v25  ;;  %v3546_v8 = vpop.eup %3545  ;;  %v1106_v62 = vadd.f32 1.0, %v3544_v29  ;;  %v4164_v25 = vld [vmem:[#allocation7 + $0x84] ss:$16 sps:$4 sm:$0xff]   ;;  %v4168_v29 = vld [vmem:[#allocation7 + $0x8c] ss:$16 sps:$4 sm:$0xff]  }
 0x251   :  { %3549 = vrcp.f32 %v1099_v27  ;;  %v4166_v27 = vld [vmem:[#allocation7 + $0x88] ss:$16 sps:$4 sm:$0xff]  }
 0x252   :  { %3551 = vrcp.f32 %v1106_v62  ;;  %v4183_v62 = vld [vmem:[#allocation7 + $0xc4] ss:$16 sps:$4 sm:$0xff]  }
 0x25a   :  { %v3548_v30 = vpop.eup %3547 }
 0x25b   :  { %v3550_v12 = vpop.eup %3549  ;;  %v1111_v28 = vmul.f32 %v3548_v30, %v3546_v8  ;;  %v4170_v8 = vld [vmem:[#allocation7 + $0xa4] ss:$16 sps:$4 sm:$0xff]   ;;  %v4173_v30 = vld [vmem:[#allocation7 + $0xac] ss:$16 sps:$4 sm:$0xff]  }
 0x25c   :  { %v1110_v23 = vmul.f32 %v3550_v12, %v4018_v26  ;;  %v3552_v11 = vpop.eup %3551  ;;  %v4116_v26 = vld [vmem:[#allocation7 + $0xc] ss:$16 sps:$4 sm:$0xff]   ;;  %v4177_v12 = vld [vmem:[#allocation7 + $0xa0] ss:$16 sps:$4 sm:$0xff]  }
 0x25e   :  { %v4063_v44 = vadd.f32 %v1111_v28, %v1110_v23  ;;  %v4181_v28 = vld [vmem:[#allocation7 + $0xa8] ss:$16 sps:$4 sm:$0xff]   ;;  %v4186_v23 = vld [vmem:[#allocation7 + $0xcc] ss:$16 sps:$4 sm:$0xff]  }
 0x260   :  { %3553 = vtanh.f32 %v4063_v44 }
 0x26a   :  { %v3554_v31 = vpop.eup %3553 }
 0x26b   :  { %v1114_v7 = vmul.f32 %v3554_v31, %v3552_v11  ;;  %v4193_v11 = vld [vmem:[#allocation7 + $0xc8] ss:$16 sps:$4 sm:$0xff]   ;;  %v4195_v31 = vld [vmem:[#allocation7 + $0xe4] ss:$16 sps:$4 sm:$0xff]  }
 0x26d   :  { %v1117_v9 = vpack.c.bf16 %v1114_v7, %v1114_v7  ;;  %v4198_v7 = vld [vmem:[#allocation7 + $0xec] ss:$16 sps:$4 sm:$0xff]  }
 0x26f   :  { %3153 = vst [vmem:[%s4372_s6 + $0x4] sm:$0xf] %v1117_v9  ;;  %1354 = vmatmul.mubr.bf16.vlgmr.msra.gmra.mrb[24].mxu0 %v1117_v9  ;;  %1395 = vmatmul.mubr.bf16.vlgmr.msra.gmra.mrb[24].mxu1 %v1117_v9  ;;  %v4201_v9 = vld [vmem:[#allocation7 + $0xe0] ss:$16 sps:$4 sm:$0xff]  }
 0x270   :  { %1639 = vmatpush1.bf16.msra.mxu0 %v3782_v36  ;;  %1680 = vmatpush1.bf16.msra.mxu1 %v3784_v37 }
 0x271   :  { %1640 = vmatprep.subr.bf16.mxu0 %v3788_v38  ;;  %1681 = vmatprep.subr.bf16.mxu1 %v3790_v39 }
 0x272   :  { %1670 = vmatprep.mubr.bf16.mxu0 %v4398_v14  ;;  %1711 = vmatprep.mubr.bf16.mxu1 %v4398_v14 }
 0x274   :  { %1641 = vmatpush1.bf16.msra.mxu0 %v3792_v40  ;;  %1682 = vmatpush1.bf16.msra.mxu1 %v3796_v41 }
 0x275   :  { %1642 = vmatprep.subr.bf16.mxu0 %v3800_v42  ;;  %1683 = vmatprep.subr.bf16.mxu1 %v3802_v43  ;;  %v4399_v43 = vld [vmem:[#allocation11_spill] sm:$0xff] }
 0x278   :  { %1643 = vmatpush1.bf16.msra.mxu0 %v3809_v45  ;;  %1684 = vmatpush1.bf16.msra.mxu1 %v3811_v46 }
 0x279   :  { %1644 = vmatprep.subr.bf16.mxu0 %v3815_v47  ;;  %1685 = vmatprep.subr.bf16.mxu1 %v3819_v48 }
 0x27c   :  { %1645 = vmatpush1.bf16.msra.mxu0 %v3821_v49  ;;  %1686 = vmatpush1.bf16.msra.mxu1 %v3823_v50 }
 0x27d   :  { %1646 = vmatprep.subr.bf16.mxu0 %v3827_v51  ;;  %1687 = vmatprep.subr.bf16.mxu1 %v3831_v52 }
 0x280   :  { %1647 = vmatpush1.bf16.msra.mxu0 %v3838_v54  ;;  %1688 = vmatpush1.bf16.msra.mxu1 %v3840_v55 }
 0x281   :  { %1648 = vmatprep.subr.bf16.mxu0 %v3842_v56  ;;  %1689 = vmatprep.subr.bf16.mxu1 %v3844_v57 }
 0x284   :  { %1649 = vmatpush1.bf16.msra.mxu0 %v3850_v58  ;;  %1690 = vmatpush1.bf16.msra.mxu1 %v3852_v59 }
 0x285   :  { %1650 = vmatprep.subr.bf16.mxu0 %v3854_v60  ;;  %1691 = vmatprep.subr.bf16.mxu1 %v3856_v61 }
 0x288   :  { %1651 = vmatpush1.bf16.msra.mxu0 %v3867_v63  ;;  %1692 = vmatpush1.bf16.msra.mxu1 %v3869_v1 }
 0x289   :  { %1652 = vmatprep.subr.bf16.mxu0 %v3871_v2  ;;  %1693 = vmatprep.subr.bf16.mxu1 %v3873_v3 }
 0x28c   :  { %1653 = vmatpush1.bf16.msra.mxu0 %v3881_v4  ;;  %1694 = vmatpush1.bf16.msra.mxu1 %v3883_v5 }
 0x28d   :  { %1996 = vmatprep.subr.bf16.mxu1 %v4116_v26 }
 0x342   :  { %v1355_v36 = vpop.f32.mrb[24].mxu0  ;;  %v1396_v37 = vpop.f32.mrb[24].mxu1 }
 0x343   :  { %v1403_v38 = vadd.f32 %v1355_v36, %v3951_v35  ;;  %v1405_v39 = vadd.f32 %v1396_v37, %v3954_v53  ;;  %v1357_v40 = vpop.f32.mrb[25].mxu0  ;;  %v1398_v41 = vpop.f32.mrb[25].mxu1  ;;  %v4205_v36 = vld [vmem:[#allocation7 + $0xe8] ss:$16 sps:$4 sm:$0xff]  }
 0x344   :  { %v1404_v42 = vadd.f32 %v1357_v40, %v3956_v6  ;;  %v1406_v45 = vadd.f32 %v1398_v41, %v4399_v43  ;;  %v1359_v46 = vpop.f32.mrb[26].mxu0  ;;  %v1400_v47 = vpop.f32.mrb[26].mxu1  ;;  %v4114_v6 = vld [vmem:[#allocation7 + $0x4] ss:$16 sps:$4 sm:$0xff]  }
 0x345   :  { %v3186_v48 = vmul.f32 -1.442695, %v1403_v38  ;;  %v1360_v49 = vpop.f32.mrb[27].mxu0  ;;  %v1401_v50 = vpop.f32.mrb[27].mxu1  ;;  %1955 = vmatprep.subr.bf16.mxu0 %v4114_v6  ;;  %v4401_v41 = vld [vmem:[#allocation13_spill] sm:$0xff]  ;;  %v4402_v46 = vld [vmem:[#allocation14_spill] sm:$0xff] }
 0x346   :  { %v3187_v51 = vmul.f32 -1.442695, %v1404_v42  ;;  %v3188_v52 = vmul.f32 -1.442695, %v1406_v45 }
 0x347   :  { %3555 = vpow2.f32 %v3186_v48  ;;  %v4403_v48 = vld [vmem:[#allocation15_spill] sm:$0xff] }
 0x348   :  { %3557 = vpow2.f32 %v3187_v51 }
 0x349   :  { %3559 = vpow2.f32 %v3188_v52 }
 0x34a   :  { %3561 = vtanh.f32 %v1405_v39  ;;  %v4400_v39 = vld [vmem:[#allocation12_spill] sm:$0xff] }
 0x351   :  { %v3556_v54 = vpop.eup %3555 }
 0x352   :  { %v3558_v55 = vpop.eup %3557  ;;  %v1410_v56 = vadd.f32 1.0, %v3556_v54 }
 0x353   :  { %v1416_v57 = vadd.f32 1.0, %v3558_v55  ;;  %v3560_v58 = vpop.eup %3559 }
 0x354   :  { %3563 = vrcp.f32 %v1410_v56  ;;  %v3562_v59 = vpop.eup %3561  ;;  %v1423_v1 = vadd.f32 1.0, %v3560_v58 }
 0x355   :  { %3565 = vrcp.f32 %v1416_v57 }
 0x356   :  { %3567 = vrcp.f32 %v1423_v1 }
 0x35e   :  { %v3564_v60 = vpop.eup %3563 }
 0x35f   :  { %v3566_v61 = vpop.eup %3565  ;;  %v1428_v63 = vmul.f32 %v3564_v60, %v3562_v59 }
 0x360   :  { %v1427_v2 = vmul.f32 %v3566_v61, %v4063_v44  ;;  %v3568_v4 = vpop.eup %3567  ;;  %v4189_v44 = vld [vmem:[#allocation7 + $0xc0] ss:$16 sps:$4 sm:$0xff]  }
 0x362   :  { %v4106_v3 = vadd.f32 %v1428_v63, %v1427_v2 }
 0x364   :  { %3569 = vtanh.f32 %v4106_v3 }
 0x36e   :  { %v3570_v5 = vpop.eup %3569 }
 0x36f   :  { %v1431_v35 = vmul.f32 %v3570_v5, %v3568_v4 }
 0x371   :  { %v1434_v53 = vpack.c.bf16 %v1431_v35, %v1431_v35 }
 0x373   :  { %3189 = vst [vmem:[%s4372_s6 + $0x8] sm:$0xf] %v1434_v53  ;;  %1671 = vmatmul.mubr.bf16.vlgmr.msra.gmra.mrb[28].mxu0 %v1434_v53  ;;  %1712 = vmatmul.mubr.bf16.vlgmr.msra.gmra.mrb[28].mxu1 %v1434_v53 }
 0x374   :  { %1987 = vmatprep.mubr.bf16.mxu0 %v4398_v14  ;;  %2028 = vmatprep.mubr.bf16.mxu1 %v4398_v14 }
 0x375   :  { %1956 = vmatpush1.bf16.msra.mxu0 %v4118_v13  ;;  %1997 = vmatpush1.bf16.msra.mxu1 %v4120_v24 }
 0x376   :  { %1957 = vmatprep.subr.bf16.mxu0 %v4126_v32  ;;  %1998 = vmatprep.subr.bf16.mxu1 %v4128_v16 }
 0x379   :  { %1958 = vmatpush1.bf16.msra.mxu0 %v4130_v15  ;;  %1999 = vmatpush1.bf16.msra.mxu1 %v4132_v17 }
 0x37a   :  { %1959 = vmatprep.subr.bf16.mxu0 %v4138_v19  ;;  %2000 = vmatprep.subr.bf16.mxu1 %v4140_v18 }
 0x37d   :  { %1960 = vmatpush1.bf16.msra.mxu0 %v4142_v20  ;;  %2001 = vmatpush1.bf16.msra.mxu1 %v4144_v0 }
 0x37e   :  { %1961 = vmatprep.subr.bf16.mxu0 %v4150_v21  ;;  %2002 = vmatprep.subr.bf16.mxu1 %v4152_v33 }
 0x381   :  { %1962 = vmatpush1.bf16.msra.mxu0 %v4154_v34  ;;  %2003 = vmatpush1.bf16.msra.mxu1 %v4156_v22 }
 0x382   :  { %1963 = vmatprep.subr.bf16.mxu0 %v4164_v25  ;;  %2004 = vmatprep.subr.bf16.mxu1 %v4168_v29 }
 0x385   :  { %1964 = vmatpush1.bf16.msra.mxu0 %v4162_v10  ;;  %2005 = vmatpush1.bf16.msra.mxu1 %v4166_v27 }
 0x386   :  { %1965 = vmatprep.subr.bf16.mxu0 %v4170_v8  ;;  %2006 = vmatprep.subr.bf16.mxu1 %v4173_v30 }
 0x389   :  { %1966 = vmatpush1.bf16.msra.mxu0 %v4177_v12  ;;  %2007 = vmatpush1.bf16.msra.mxu1 %v4181_v28 }
 0x38a   :  { %1967 = vmatprep.subr.bf16.mxu0 %v4183_v62  ;;  %2008 = vmatprep.subr.bf16.mxu1 %v4186_v23 }
 0x38d   :  { %1968 = vmatpush1.bf16.msra.mxu0 %v4189_v44  ;;  %2009 = vmatpush1.bf16.msra.mxu1 %v4193_v11 }
 0x38e   :  { %1969 = vmatprep.subr.bf16.mxu0 %v4195_v31  ;;  %2010 = vmatprep.subr.bf16.mxu1 %v4198_v7 }
 0x391   :  { %1970 = vmatpush1.bf16.msra.mxu0 %v4201_v9  ;;  %2011 = vmatpush1.bf16.msra.mxu1 %v4205_v36 }
 0x392   :  { %2272 = vmatprep.subr.bf16.mxu0 %v4114_v6  ;;  %2313 = vmatprep.subr.bf16.mxu1 %v4116_v26 }
 0x446   :  { %v1672_v37 = vpop.f32.mrb[28].mxu0  ;;  %v1713_v38 = vpop.f32.mrb[28].mxu1 }
 0x447   :  { %v1720_v40 = vadd.f32 %v1672_v37, %v4400_v39  ;;  %v1722_v42 = vadd.f32 %v1713_v38, %v4401_v41  ;;  %v1674_v43 = vpop.f32.mrb[29].mxu0  ;;  %v1715_v45 = vpop.f32.mrb[29].mxu1 }
 0x448   :  { %v1721_v47 = vadd.f32 %v1674_v43, %v4402_v46  ;;  %v1723_v49 = vadd.f32 %v1715_v45, %v4403_v48  ;;  %v1676_v50 = vpop.f32.mrb[30].mxu0  ;;  %v1717_v51 = vpop.f32.mrb[30].mxu1  ;;  %v4404_v43 = vld [vmem:[#allocation16_spill] sm:$0xff]  ;;  %v4405_v46 = vld [vmem:[#allocation17_spill] sm:$0xff] }
 0x449   :  { %v3222_v52 = vmul.f32 -1.442695, %v1720_v40  ;;  %v1677_v54 = vpop.f32.mrb[31].mxu0  ;;  %v1718_v55 = vpop.f32.mrb[31].mxu1  ;;  %v4406_v50 = vld [vmem:[#allocation18_spill] sm:$0xff] }
 0x44a   :  { %v3223_v56 = vmul.f32 -1.442695, %v1721_v47  ;;  %v3224_v57 = vmul.f32 -1.442695, %v1723_v49 }
 0x44b   :  { %3571 = vpow2.f32 %v3222_v52  ;;  %v4407_v52 = vld [vmem:[#allocation19_spill] sm:$0xff] }
 0x44c   :  { %3573 = vpow2.f32 %v3223_v56 }
 0x44d   :  { %3575 = vpow2.f32 %v3224_v57 }
 0x44e   :  { %3577 = vtanh.f32 %v1722_v42 }
 0x455   :  { %v3572_v58 = vpop.eup %3571 }
 0x456   :  { %v3574_v59 = vpop.eup %3573  ;;  %v1727_v60 = vadd.f32 1.0, %v3572_v58 }
 0x457   :  { %v1733_v61 = vadd.f32 1.0, %v3574_v59  ;;  %v3576_v63 = vpop.eup %3575 }
 0x458   :  { %3579 = vrcp.f32 %v1727_v60  ;;  %v3578_v1 = vpop.eup %3577  ;;  %v1740_v35 = vadd.f32 1.0, %v3576_v63 }
 0x459   :  { %3581 = vrcp.f32 %v1733_v61 }
 0x45a   :  { %3583 = vrcp.f32 %v1740_v35 }
 0x462   :  { %v3580_v2 = vpop.eup %3579 }
 0x463   :  { %v3582_v4 = vpop.eup %3581  ;;  %v1745_v5 = vmul.f32 %v3580_v2, %v3578_v1 }
 0x464   :  { %v1744_v53 = vmul.f32 %v3582_v4, %v4106_v3  ;;  %v3584_v38 = vpop.eup %3583 }
 0x466   :  { %v4217_v37 = vadd.f32 %v1745_v5, %v1744_v53 }
 0x468   :  { %3585 = vtanh.f32 %v4217_v37 }
 0x472   :  { %v3586_v39 = vpop.eup %3585 }
 0x473   :  { %v1748_v40 = vmul.f32 %v3586_v39, %v3584_v38 }
 0x475   :  { %v1751_v41 = vpack.c.bf16 %v1748_v40, %v1748_v40 }
 0x477   :  { %3225 = vst [vmem:[%s4372_s6 + $0xc] sm:$0xf] %v1751_v41  ;;  %1988 = vmatmul.mubr.bf16.vlgmr.msra.gmra.mrb[32].mxu0 %v1751_v41  ;;  %2029 = vmatmul.mubr.bf16.vlgmr.msra.gmra.mrb[32].mxu1 %v1751_v41 }
 0x478   :  { %2273 = vmatpush1.bf16.msra.mxu0 %v4118_v13  ;;  %2314 = vmatpush1.bf16.msra.mxu1 %v4120_v24 }
 0x479   :  { %2274 = vmatprep.subr.bf16.mxu0 %v4126_v32  ;;  %2315 = vmatprep.subr.bf16.mxu1 %v4128_v16 }
 0x47a   :  { %2304 = vmatprep.mubr.bf16.mxu0 %v4398_v14  ;;  %2345 = vmatprep.mubr.bf16.mxu1 %v4398_v14 }
 0x47c   :  { %2275 = vmatpush1.bf16.msra.mxu0 %v4130_v15  ;;  %2316 = vmatpush1.bf16.msra.mxu1 %v4132_v17 }
 0x47d   :  { %2276 = vmatprep.subr.bf16.mxu0 %v4138_v19  ;;  %2317 = vmatprep.subr.bf16.mxu1 %v4140_v18 }
 0x480   :  { %2277 = vmatpush1.bf16.msra.mxu0 %v4142_v20  ;;  %2318 = vmatpush1.bf16.msra.mxu1 %v4144_v0 }
 0x481   :  { %2278 = vmatprep.subr.bf16.mxu0 %v4150_v21  ;;  %2319 = vmatprep.subr.bf16.mxu1 %v4152_v33 }
 0x484   :  { %2279 = vmatpush1.bf16.msra.mxu0 %v4154_v34  ;;  %2320 = vmatpush1.bf16.msra.mxu1 %v4156_v22 }
 0x485   :  { %2280 = vmatprep.subr.bf16.mxu0 %v4164_v25  ;;  %2321 = vmatprep.subr.bf16.mxu1 %v4168_v29 }
 0x488   :  { %2281 = vmatpush1.bf16.msra.mxu0 %v4162_v10  ;;  %2322 = vmatpush1.bf16.msra.mxu1 %v4166_v27 }
 0x489   :  { %2282 = vmatprep.subr.bf16.mxu0 %v4170_v8  ;;  %2323 = vmatprep.subr.bf16.mxu1 %v4173_v30 }
 0x48c   :  { %2283 = vmatpush1.bf16.msra.mxu0 %v4177_v12  ;;  %2324 = vmatpush1.bf16.msra.mxu1 %v4181_v28 }
 0x48d   :  { %2284 = vmatprep.subr.bf16.mxu0 %v4183_v62  ;;  %2325 = vmatprep.subr.bf16.mxu1 %v4186_v23 }
 0x490   :  { %2285 = vmatpush1.bf16.msra.mxu0 %v4189_v44  ;;  %2326 = vmatpush1.bf16.msra.mxu1 %v4193_v11 }
 0x491   :  { %2286 = vmatprep.subr.bf16.mxu0 %v4195_v31  ;;  %2327 = vmatprep.subr.bf16.mxu1 %v4198_v7 }
 0x494   :  { %2287 = vmatpush1.bf16.msra.mxu0 %v4201_v9  ;;  %2328 = vmatpush1.bf16.msra.mxu1 %v4205_v36 }
 0x495   :  { %2589 = vmatprep.subr.bf16.mxu0 %v4114_v6  ;;  %2630 = vmatprep.subr.bf16.mxu1 %v4116_v26 }
 0x54a   :  { %v1989_v3 = vpop.f32.mrb[32].mxu0  ;;  %v2030_v42 = vpop.f32.mrb[32].mxu1 }
 0x54b   :  { %v2037_v45 = vadd.f32 %v1989_v3, %v4404_v43  ;;  %v2039_v47 = vadd.f32 %v2030_v42, %v4405_v46  ;;  %v1991_v48 = vpop.f32.mrb[33].mxu0  ;;  %v2032_v49 = vpop.f32.mrb[33].mxu1 }
 0x54c   :  { %v2038_v51 = vadd.f32 %v1991_v48, %v4406_v50  ;;  %v2040_v54 = vadd.f32 %v2032_v49, %v4407_v52  ;;  %v1993_v55 = vpop.f32.mrb[34].mxu0  ;;  %v2034_v56 = vpop.f32.mrb[34].mxu1  ;;  %v4408_v48 = vld [vmem:[#allocation20_spill] sm:$0xff]  ;;  %v4409_v50 = vld [vmem:[#allocation21_spill] sm:$0xff] }
 0x54d   :  { %v3258_v57 = vmul.f32 -1.442695, %v2037_v45  ;;  %v1994_v58 = vpop.f32.mrb[35].mxu0  ;;  %v2035_v59 = vpop.f32.mrb[35].mxu1  ;;  %v4410_v55 = vld [vmem:[#allocation22_spill] sm:$0xff] }
 0x54e   :  { %v3259_v60 = vmul.f32 -1.442695, %v2038_v51  ;;  %v3260_v61 = vmul.f32 -1.442695, %v2040_v54 }
 0x54f   :  { %3587 = vpow2.f32 %v3258_v57  ;;  %v4411_v57 = vld [vmem:[#allocation23_spill] sm:$0xff] }
 0x550   :  { %3589 = vpow2.f32 %v3259_v60 }
 0x551   :  { %3591 = vpow2.f32 %v3260_v61 }
 0x552   :  { %3593 = vtanh.f32 %v2039_v47 }
 0x559   :  { %v3588_v63 = vpop.eup %3587 }
 0x55a   :  { %v3590_v1 = vpop.eup %3589  ;;  %v2044_v2 = vadd.f32 1.0, %v3588_v63 }
 0x55b   :  { %v2050_v4 = vadd.f32 1.0, %v3590_v1  ;;  %v3592_v5 = vpop.eup %3591 }
 0x55c   :  { %3595 = vrcp.f32 %v2044_v2  ;;  %v3594_v35 = vpop.eup %3593  ;;  %v2057_v40 = vadd.f32 1.0, %v3592_v5 }
 0x55d   :  { %3597 = vrcp.f32 %v2050_v4 }
 0x55e   :  { %3599 = vrcp.f32 %v2057_v40 }
 0x566   :  { %v3596_v53 = vpop.eup %3595 }
 0x567   :  { %v3598_v38 = vpop.eup %3597  ;;  %v2062_v39 = vmul.f32 %v3596_v53, %v3594_v35 }
 0x568   :  { %v2061_v41 = vmul.f32 %v3598_v38, %v4217_v37  ;;  %v3600_v42 = vpop.eup %3599 }
 0x56a   :  { %v4262_v3 = vadd.f32 %v2062_v39, %v2061_v41 }
 0x56c   :  { %3601 = vtanh.f32 %v4262_v3 }
 0x576   :  { %v3602_v43 = vpop.eup %3601 }
 0x577   :  { %v2065_v45 = vmul.f32 %v3602_v43, %v3600_v42 }
 0x579   :  { %v2068_v46 = vpack.c.bf16 %v2065_v45, %v2065_v45 }
 0x57b   :  { %3261 = vst [vmem:[%s4372_s6 + $0x10] sm:$0xf] %v2068_v46  ;;  %2305 = vmatmul.mubr.bf16.vlgmr.msra.gmra.mrb[36].mxu0 %v2068_v46  ;;  %2346 = vmatmul.mubr.bf16.vlgmr.msra.gmra.mrb[36].mxu1 %v2068_v46 }
 0x57c   :  { %2590 = vmatpush1.bf16.msra.mxu0 %v4118_v13  ;;  %2631 = vmatpush1.bf16.msra.mxu1 %v4120_v24 }
 0x57d   :  { %2591 = vmatprep.subr.bf16.mxu0 %v4126_v32  ;;  %2632 = vmatprep.subr.bf16.mxu1 %v4128_v16 }
 0x57e   :  { %2621 = vmatprep.mubr.bf16.mxu0 %v4398_v14  ;;  %2662 = vmatprep.mubr.bf16.mxu1 %v4398_v14 }
 0x580   :  { %2592 = vmatpush1.bf16.msra.mxu0 %v4130_v15  ;;  %2633 = vmatpush1.bf16.msra.mxu1 %v4132_v17 }
 0x581   :  { %2593 = vmatprep.subr.bf16.mxu0 %v4138_v19  ;;  %2634 = vmatprep.subr.bf16.mxu1 %v4140_v18 }
 0x584   :  { %2594 = vmatpush1.bf16.msra.mxu0 %v4142_v20  ;;  %2635 = vmatpush1.bf16.msra.mxu1 %v4144_v0 }
 0x585   :  { %2595 = vmatprep.subr.bf16.mxu0 %v4150_v21  ;;  %2636 = vmatprep.subr.bf16.mxu1 %v4152_v33 }
 0x588   :  { %2596 = vmatpush1.bf16.msra.mxu0 %v4154_v34  ;;  %2637 = vmatpush1.bf16.msra.mxu1 %v4156_v22 }
 0x589   :  { %2597 = vmatprep.subr.bf16.mxu0 %v4164_v25  ;;  %2638 = vmatprep.subr.bf16.mxu1 %v4168_v29 }
 0x58c   :  { %2598 = vmatpush1.bf16.msra.mxu0 %v4162_v10  ;;  %2639 = vmatpush1.bf16.msra.mxu1 %v4166_v27 }
 0x58d   :  { %2599 = vmatprep.subr.bf16.mxu0 %v4170_v8  ;;  %2640 = vmatprep.subr.bf16.mxu1 %v4173_v30 }
 0x590   :  { %2600 = vmatpush1.bf16.msra.mxu0 %v4177_v12  ;;  %2641 = vmatpush1.bf16.msra.mxu1 %v4181_v28 }
 0x591   :  { %2601 = vmatprep.subr.bf16.mxu0 %v4183_v62  ;;  %2642 = vmatprep.subr.bf16.mxu1 %v4186_v23 }
 0x594   :  { %2602 = vmatpush1.bf16.msra.mxu0 %v4189_v44  ;;  %2643 = vmatpush1.bf16.msra.mxu1 %v4193_v11 }
 0x595   :  { %2603 = vmatprep.subr.bf16.mxu0 %v4195_v31  ;;  %2644 = vmatprep.subr.bf16.mxu1 %v4198_v7 }
 0x598   :  { %2604 = vmatpush1.bf16.msra.mxu0 %v4201_v9  ;;  %2645 = vmatpush1.bf16.msra.mxu1 %v4205_v36 }
 0x599   :  { %2906 = vmatprep.subr.bf16.mxu0 %v4114_v6  ;;  %2947 = vmatprep.subr.bf16.mxu1 %v4116_v26 }
 0x64e   :  { %v2306_v37 = vpop.f32.mrb[36].mxu0  ;;  %v2347_v47 = vpop.f32.mrb[36].mxu1 }
 0x64f   :  { %v2354_v49 = vadd.f32 %v2306_v37, %v4408_v48  ;;  %v2356_v51 = vadd.f32 %v2347_v47, %v4409_v50  ;;  %v2308_v52 = vpop.f32.mrb[37].mxu0  ;;  %v2349_v54 = vpop.f32.mrb[37].mxu1 }
 0x650   :  { %v2355_v56 = vadd.f32 %v2308_v52, %v4410_v55  ;;  %v2357_v58 = vadd.f32 %v2349_v54, %v4411_v57  ;;  %v2310_v59 = vpop.f32.mrb[38].mxu0  ;;  %v2351_v60 = vpop.f32.mrb[38].mxu1  ;;  %v4416_v55 = vld [vmem:[#allocation28_spill] sm:$0xff]  ;;  %v4417_v57 = vld [vmem:[#allocation29_spill] sm:$0xff] }
 0x651   :  { %v3294_v61 = vmul.f32 -1.442695, %v2354_v49  ;;  %v2311_v63 = vpop.f32.mrb[39].mxu0  ;;  %v2352_v1 = vpop.f32.mrb[39].mxu1 }
 0x652   :  { %v3295_v6 = vmul.f32 -1.442695, %v2355_v56  ;;  %v3296_v26 = vmul.f32 -1.442695, %v2357_v58  ;;  %v4419_v1 = vld [vmem:[#allocation31_spill] sm:$0xff] }
 0x653   :  { %3603 = vpow2.f32 %v3294_v61  ;;  %v4418_v61 = vld [vmem:[#allocation30_spill] sm:$0xff] }
 0x654   :  { %3605 = vpow2.f32 %v3295_v6 }
 0x655   :  { %3607 = vpow2.f32 %v3296_v26 }
 0x656   :  { %3609 = vtanh.f32 %v2356_v51 }
 0x65d   :  { %v3604_v2 = vpop.eup %3603 }
 0x65e   :  { %v3606_v4 = vpop.eup %3605  ;;  %v2361_v5 = vadd.f32 1.0, %v3604_v2 }
 0x65f   :  { %v2367_v35 = vadd.f32 1.0, %v3606_v4  ;;  %v3608_v53 = vpop.eup %3607 }
 0x660   :  { %3611 = vrcp.f32 %v2361_v5  ;;  %v3610_v38 = vpop.eup %3609  ;;  %v2374_v42 = vadd.f32 1.0, %v3608_v53 }
 0x661   :  { %3613 = vrcp.f32 %v2367_v35 }
 0x662   :  { %3615 = vrcp.f32 %v2374_v42 }
 0x66a   :  { %v3612_v39 = vpop.eup %3611 }
 0x66b   :  { %v3614_v40 = vpop.eup %3613  ;;  %v2379_v41 = vmul.f32 %v3612_v39, %v3610_v38 }
 0x66c   :  { %v2378_v43 = vmul.f32 %v3614_v40, %v4262_v3  ;;  %v3616_v46 = vpop.eup %3615 }
 0x66e   :  { %v4307_v45 = vadd.f32 %v2379_v41, %v2378_v43 }
 0x670   :  { %3617 = vtanh.f32 %v4307_v45 }
 0x67a   :  { %v3618_v37 = vpop.eup %3617 }
 0x67b   :  { %v2382_v47 = vmul.f32 %v3618_v37, %v3616_v46 }
 0x67d   :  { %v2385_v48 = vpack.c.bf16 %v2382_v47, %v2382_v47 }
 0x67f   :  { %3297 = vst [vmem:[%s4372_s6 + $0x14] sm:$0xf] %v2385_v48  ;;  %2622 = vmatmul.mubr.bf16.vlgmr.msra.gmra.mrb[40].mxu0 %v2385_v48  ;;  %2663 = vmatmul.mubr.bf16.vlgmr.msra.gmra.mrb[40].mxu1 %v2385_v48 }
 0x680   :  { %2907 = vmatpush1.bf16.msra.mxu0 %v4118_v13  ;;  %2948 = vmatpush1.bf16.msra.mxu1 %v4120_v24  ;;  %v4412_v24 = vld [vmem:[#allocation24_spill] sm:$0xff] }
 0x681   :  { %2908 = vmatprep.subr.bf16.mxu0 %v4126_v32  ;;  %2949 = vmatprep.subr.bf16.mxu1 %v4128_v16  ;;  %v4413_v16 = vld [vmem:[#allocation25_spill] sm:$0xff] }
 0x682   :  { %2938 = vmatprep.mubr.bf16.mxu0 %v4398_v14  ;;  %2979 = vmatprep.mubr.bf16.mxu1 %v4398_v14 }
 0x684   :  { %2909 = vmatpush1.bf16.msra.mxu0 %v4130_v15  ;;  %2950 = vmatpush1.bf16.msra.mxu1 %v4132_v17 }
 0x685   :  { %2910 = vmatprep.subr.bf16.mxu0 %v4138_v19  ;;  %2951 = vmatprep.subr.bf16.mxu1 %v4140_v18  ;;  %v4414_v18 = vld [vmem:[#allocation26_spill] sm:$0xff] }
 0x688   :  { %2911 = vmatpush1.bf16.msra.mxu0 %v4142_v20  ;;  %2952 = vmatpush1.bf16.msra.mxu1 %v4144_v0  ;;  %v4415_v0 = vld [vmem:[#allocation27_spill] sm:$0xff] }
 0x689   :  { %2912 = vmatprep.subr.bf16.mxu0 %v4150_v21  ;;  %2953 = vmatprep.subr.bf16.mxu1 %v4152_v33 }
 0x68c   :  { %2913 = vmatpush1.bf16.msra.mxu0 %v4154_v34  ;;  %2954 = vmatpush1.bf16.msra.mxu1 %v4156_v22 }
 0x68d   :  { %2914 = vmatprep.subr.bf16.mxu0 %v4164_v25  ;;  %2955 = vmatprep.subr.bf16.mxu1 %v4168_v29 }
 0x690   :  { %2915 = vmatpush1.bf16.msra.mxu0 %v4162_v10  ;;  %2956 = vmatpush1.bf16.msra.mxu1 %v4166_v27 }
 0x691   :  { %2916 = vmatprep.subr.bf16.mxu0 %v4170_v8  ;;  %2957 = vmatprep.subr.bf16.mxu1 %v4173_v30 }
 0x694   :  { %2917 = vmatpush1.bf16.msra.mxu0 %v4177_v12  ;;  %2958 = vmatpush1.bf16.msra.mxu1 %v4181_v28 }
 0x695   :  { %2918 = vmatprep.subr.bf16.mxu0 %v4183_v62  ;;  %2959 = vmatprep.subr.bf16.mxu1 %v4186_v23 }
 0x698   :  { %2919 = vmatpush1.bf16.msra.mxu0 %v4189_v44  ;;  %2960 = vmatpush1.bf16.msra.mxu1 %v4193_v11 }
 0x699   :  { %2920 = vmatprep.subr.bf16.mxu0 %v4195_v31  ;;  %2961 = vmatprep.subr.bf16.mxu1 %v4198_v7 }
 0x69c   :  { %2921 = vmatpush1.bf16.msra.mxu0 %v4201_v9  ;;  %2962 = vmatpush1.bf16.msra.mxu1 %v4205_v36 }
 0x752   :  { %v2623_v14 = vpop.f32.mrb[40].mxu0  ;;  %v2664_v13 = vpop.f32.mrb[40].mxu1 }
 0x753   :  { %v2671_v32 = vadd.f32 %v2623_v14, %v4412_v24  ;;  %v2673_v15 = vadd.f32 %v2664_v13, %v4413_v16  ;;  %v2625_v17 = vpop.f32.mrb[41].mxu0  ;;  %v2666_v19 = vpop.f32.mrb[41].mxu1 }
 0x754   :  { %v2672_v20 = vadd.f32 %v2625_v17, %v4414_v18  ;;  %v2674_v21 = vadd.f32 %v2666_v19, %v4415_v0  ;;  %v2627_v33 = vpop.f32.mrb[42].mxu0  ;;  %v2668_v34 = vpop.f32.mrb[42].mxu1 }
 0x755   :  { %v3330_v22 = vmul.f32 -1.442695, %v2671_v32  ;;  %v2628_v10 = vpop.f32.mrb[43].mxu0  ;;  %v2669_v25 = vpop.f32.mrb[43].mxu1 }
 0x756   :  { %v3331_v27 = vmul.f32 -1.442695, %v2672_v20  ;;  %v3332_v29 = vmul.f32 -1.442695, %v2674_v21 }
 0x757   :  { %3619 = vpow2.f32 %v3330_v22 }
 0x758   :  { %3621 = vpow2.f32 %v3331_v27 }
 0x759   :  { %3623 = vpow2.f32 %v3332_v29 }
 0x75a   :  { %3625 = vtanh.f32 %v2673_v15 }
 0x761   :  { %v3620_v8 = vpop.eup %3619 }
 0x762   :  { %v3622_v30 = vpop.eup %3621  ;;  %v2678_v12 = vadd.f32 1.0, %v3620_v8 }
 0x763   :  { %v2684_v28 = vadd.f32 1.0, %v3622_v30  ;;  %v3624_v62 = vpop.eup %3623 }
 0x764   :  { %3627 = vrcp.f32 %v2678_v12  ;;  %v3626_v23 = vpop.eup %3625  ;;  %v2691_v7 = vadd.f32 1.0, %v3624_v62 }
 0x765   :  { %3629 = vrcp.f32 %v2684_v28 }
 0x766   :  { %3631 = vrcp.f32 %v2691_v7 }
 0x76e   :  { %v3628_v44 = vpop.eup %3627 }
 0x76f   :  { %v3630_v11 = vpop.eup %3629  ;;  %v2696_v31 = vmul.f32 %v3628_v44, %v3626_v23 }
 0x770   :  { %v2695_v9 = vmul.f32 %v3630_v11, %v4307_v45  ;;  %v3632_v3 = vpop.eup %3631 }
 0x772   :  { %v2697_v36 = vadd.f32 %v2696_v31, %v2695_v9 }
 0x774   :  { %3633 = vtanh.f32 %v2697_v36 }
 0x77e   :  { %v3634_v49 = vpop.eup %3633 }
 0x77f   :  { %v2699_v50 = vmul.f32 %v3634_v49, %v3632_v3 }
 0x781   :  { %v2702_v51 = vpack.c.bf16 %v2699_v50, %v2699_v50 }
 0x783   :  { %3333 = vst [vmem:[%s4372_s6 + $0x18] sm:$0xf] %v2702_v51  ;;  %2939 = vmatmul.mubr.bf16.vlgmr.msra.gmra.mrb[44].mxu0 %v2702_v51  ;;  %2980 = vmatmul.mubr.bf16.vlgmr.msra.gmra.mrb[44].mxu1 %v2702_v51 }
 0x856   :  { %v2940_v52 = vpop.f32.mrb[44].mxu0  ;;  %v2981_v54 = vpop.f32.mrb[44].mxu1 }
 0x857   :  { %v2988_v56 = vadd.f32 %v2940_v52, %v4416_v55  ;;  %v2990_v58 = vadd.f32 %v2981_v54, %v4417_v57  ;;  %v2942_v59 = vpop.f32.mrb[45].mxu0  ;;  %v2983_v60 = vpop.f32.mrb[45].mxu1 }
 0x858   :  { %v2989_v63 = vadd.f32 %v2942_v59, %v4418_v61  ;;  %v2991_v6 = vadd.f32 %v2983_v60, %v4419_v1  ;;  %v2944_v26 = vpop.f32.mrb[46].mxu0  ;;  %v2985_v2 = vpop.f32.mrb[46].mxu1 }
 0x859   :  { %v3366_v4 = vmul.f32 -1.442695, %v2988_v56  ;;  %v2945_v5 = vpop.f32.mrb[47].mxu0  ;;  %v2986_v35 = vpop.f32.mrb[47].mxu1 }
 0x85a   :  { %v3367_v53 = vmul.f32 -1.442695, %v2989_v63  ;;  %v3368_v38 = vmul.f32 -1.442695, %v2991_v6 }
 0x85b   :  { %3635 = vpow2.f32 %v3366_v4 }
 0x85c   :  { %3637 = vpow2.f32 %v3367_v53 }
 0x85d   :  { %3639 = vpow2.f32 %v3368_v38 }
 0x85e   :  { %3641 = vtanh.f32 %v2990_v58 }
 0x865   :  { %v3636_v39 = vpop.eup %3635 }
 0x866   :  { %v3638_v40 = vpop.eup %3637  ;;  %v2995_v41 = vadd.f32 1.0, %v3636_v39 }
 0x867   :  { %v3001_v42 = vadd.f32 1.0, %v3638_v40  ;;  %v3640_v43 = vpop.eup %3639 }
 0x868   :  { %3643 = vrcp.f32 %v2995_v41  ;;  %v3642_v45 = vpop.eup %3641  ;;  %v3008_v48 = vadd.f32 1.0, %v3640_v43 }
 0x869   :  { %3645 = vrcp.f32 %v3001_v42 }
 0x86a   :  { %3647 = vrcp.f32 %v3008_v48 }
 0x872   :  { %v3644_v46 = vpop.eup %3643 }
 0x873   :  { %v3646_v37 = vpop.eup %3645  ;;  %v3013_v47 = vmul.f32 %v3644_v46, %v3642_v45 }
 0x874   :  { %v3012_v14 = vmul.f32 %v3646_v37, %v2697_v36  ;;  %v3648_v24 = vpop.eup %3647 }
 0x876   :  { %v3014_v13 = vadd.f32 %v3013_v47, %v3012_v14 }
 0x878   :  { %3649 = vtanh.f32 %v3014_v13  ;;  %3025 = vst [vmem:[%s4374_s8] sm:$0xff] %v3014_v13 }
 0x882   :  { %v3650_v32 = vpop.eup %3649 }
 0x883   :  { %v3016_v16 = vmul.f32 %v3650_v32, %v3648_v24 }
 0x885   :  { %v3019_v15 = vpack.c.bf16 %v3016_v16, %v3016_v16  ;;  %3023 = vst [vmem:[%s4373_s7] sm:$0xff] %v3016_v16 }
 0x887   :  { %3369 = vst [vmem:[%s4372_s6 + $0x1c] sm:$0xf] %v3019_v15 }
 0x888   :  { %3038 = vsyncpa [#allocation6], 1 }
 0x889   :  { %3039 = vsyncpa [#allocation8], 1 }

// kernel: complex_lstm_forward_jit.3
= control target key start
LH: loop header
LB: loop body
LE: loop exit
PB: predicated region body
PF: predicated region fallthrough
CT: control target
= control target key end

     0   :  { %v4545_v1 = vmov 0   ;;  %s4536_s3 = inlined_call_operand.vmem [shape: bf16[128,512], index: 3, kind: input, shape index: {}]   ;;  %s4537_s0 = inlined_call_operand.vmem [shape: bf16[64,128], index: 0, kind: input, shape index: {}]   ;;  %s4538_s4 = inlined_call_operand.vmem [shape: bf16[128,512], index: 4, kind: input, shape index: {}]   ;;  %s4539_s1 = inlined_call_operand.vmem [shape: f32[8,128], index: 1, kind: input, shape index: {}]   ;;  %s4540_s5 = inlined_call_operand.vmem [shape: f32[1,512], index: 5, kind: input, shape index: {}]   ;;  %s4541_s2 = inlined_call_operand.vmem [shape: f32[8,128], index: 2, kind: input, shape index: {}]   ;;  %s4542_s6 = inlined_call_operand.vmem [shape: f32[64,128], index: 6, kind: output, shape index: {0}]   ;;  %s4543_s8 = inlined_call_operand.vmem [shape: f32[8,128], index: 8, kind: output, shape index: {2}]   ;;  %s4544_s7 = inlined_call_operand.vmem [shape: f32[8,128], index: 7, kind: output, shape index: {1}]  }
   0x1   :  { %v3333_v0 = vld [vmem:[%s4536_s3 + $0x4] ss:$16 sps:$4 sm:$0xff]   ;;  %313 = vmatprep.mubr.bf16.mxu0 %v4545_v1  ;;  %386 = vmatprep.mubr.bf16.mxu1 %v4545_v1  ;;  %v3335_v2 = vld [vmem:[%s4536_s3 + $0xc] ss:$16 sps:$4 sm:$0xff]   ;;  %v3337_v3 = vld [vmem:[%s4536_s3] ss:$16 sps:$4 sm:$0xff]  }
   0x2   :  { %281 = vmatprep.subr.bf16.mxu0 %v3333_v0  ;;  %v3338_v4 = vld [vmem:[%s4536_s3 + $0x8] ss:$16 sps:$4 sm:$0xff]   ;;  %354 = vmatprep.subr.bf16.mxu1 %v3335_v2  ;;  %v3339_v5 = vld [vmem:[%s4536_s3 + $0x24] ss:$16 sps:$4 sm:$0xff]   ;;  %v3341_v6 = vld [vmem:[%s4536_s3 + $0x2c] ss:$16 sps:$4 sm:$0xff]  }
   0x3   :  { %282 = vmatpush1.bf16.msra.mxu0 %v3337_v3  ;;  %355 = vmatpush1.bf16.msra.mxu1 %v3338_v4  ;;  %v3343_v7 = vld [vmem:[%s4536_s3 + $0x20] ss:$16 sps:$4 sm:$0xff]   ;;  %v3344_v8 = vld [vmem:[%s4536_s3 + $0x28] ss:$16 sps:$4 sm:$0xff]   ;;  %v3345_v9 = vld [vmem:[%s4536_s3 + $0x44] ss:$16 sps:$4 sm:$0xff]  }
   0x4   :  { %283 = vmatprep.subr.bf16.mxu0 %v3339_v5  ;;  %356 = vmatprep.subr.bf16.mxu1 %v3341_v6  ;;  %v3347_v10 = vld [vmem:[%s4536_s3 + $0x4c] ss:$16 sps:$4 sm:$0xff]   ;;  %v3349_v11 = vld [vmem:[%s4536_s3 + $0x40] ss:$16 sps:$4 sm:$0xff]   ;;  %v3350_v12 = vld [vmem:[%s4536_s3 + $0x48] ss:$16 sps:$4 sm:$0xff]  }
   0x5   :  { %v3351_v13 = vld [vmem:[%s4536_s3 + $0x64] ss:$16 sps:$4 sm:$0xff]   ;;  %v3353_v14 = vld [vmem:[%s4536_s3 + $0x6c] ss:$16 sps:$4 sm:$0xff]   ;;  %v3355_v15 = vld [vmem:[%s4536_s3 + $0x60] ss:$16 sps:$4 sm:$0xff]  }
   0x6   :  { %v3356_v16 = vld [vmem:[%s4536_s3 + $0x68] ss:$16 sps:$4 sm:$0xff]   ;;  %v3357_v17 = vld [vmem:[%s4536_s3 + $0x84] ss:$16 sps:$4 sm:$0xff]   ;;  %v3359_v18 = vld [vmem:[%s4536_s3 + $0x8c] ss:$16 sps:$4 sm:$0xff]  }
   0x7   :  { %284 = vmatpush1.bf16.msra.mxu0 %v3343_v7  ;;  %357 = vmatpush1.bf16.msra.mxu1 %v3344_v8  ;;  %v3361_v19 = vld [vmem:[%s4536_s3 + $0x80] ss:$16 sps:$4 sm:$0xff]   ;;  %v3362_v20 = vld [vmem:[%s4536_s3 + $0x88] ss:$16 sps:$4 sm:$0xff]   ;;  %v3363_v21 = vld [vmem:[%s4536_s3 + $0xa4] ss:$16 sps:$4 sm:$0xff]   ;;  %v77_v8 = vlaneseq }
   0x8   :  { %285 = vmatprep.subr.bf16.mxu0 %v3345_v9  ;;  %358 = vmatprep.subr.bf16.mxu1 %v3347_v10  ;;  %v3365_v22 = vld [vmem:[%s4536_s3 + $0xac] ss:$16 sps:$4 sm:$0xff]   ;;  %v3367_v23 = vld [vmem:[%s4536_s3 + $0xa0] ss:$16 sps:$4 sm:$0xff]   ;;  %v3368_v24 = vld [vmem:[%s4536_s3 + $0xa8] ss:$16 sps:$4 sm:$0xff]  }
   0x9   :  { %v3369_v25 = vld [vmem:[%s4536_s3 + $0xc4] ss:$16 sps:$4 sm:$0xff]   ;;  %v3371_v26 = vld [vmem:[%s4536_s3 + $0xcc] ss:$16 sps:$4 sm:$0xff]   ;;  %v3373_v27 = vld [vmem:[%s4536_s3 + $0xc0] ss:$16 sps:$4 sm:$0xff]  }
   0xa   :  { %v3374_v28 = vld [vmem:[%s4536_s3 + $0xc8] ss:$16 sps:$4 sm:$0xff]   ;;  %v3375_v29 = vld [vmem:[%s4536_s3 + $0xe4] ss:$16 sps:$4 sm:$0xff]   ;;  %v3377_v30 = vld [vmem:[%s4536_s3 + $0xec] ss:$16 sps:$4 sm:$0xff]  }
   0xb   :  { %286 = vmatpush1.bf16.msra.mxu0 %v3349_v11  ;;  %359 = vmatpush1.bf16.msra.mxu1 %v3350_v12  ;;  %v3379_v31 = vld [vmem:[%s4536_s3 + $0xe0] ss:$16 sps:$4 sm:$0xff]   ;;  %v3380_v32 = vld [vmem:[%s4536_s3 + $0xe8] ss:$16 sps:$4 sm:$0xff]   ;;  %v3756_v33 = vld [vmem:[%s4538_s4 + $0x4] ss:$16 sps:$4 sm:$0xff]  }
   0xc   :  { %287 = vmatprep.subr.bf16.mxu0 %v3351_v13  ;;  %360 = vmatprep.subr.bf16.mxu1 %v3353_v14  ;;  %v3761_v34 = vld [vmem:[%s4538_s4 + $0xc] ss:$16 sps:$4 sm:$0xff]   ;;  %v3381_v35 = vld [vmem:[%s4537_s0] sm:$0xff]   ;;  %v3774_v37 = vld [vmem:[%s4538_s4 + $0x8] ss:$16 sps:$4 sm:$0xff]   ;;  %v78_v9 = vshrl.u32 %v77_v8, 7 }
   0xd   :  { %v3769_v36 = vld [vmem:[%s4538_s4] ss:$16 sps:$4 sm:$0xff]   ;;  %v3781_v38 = vld [vmem:[%s4538_s4 + $0x24] ss:$16 sps:$4 sm:$0xff]   ;;  %v3786_v39 = vld [vmem:[%s4538_s4 + $0x2c] ss:$16 sps:$4 sm:$0xff]  }
   0xe   :  { %v3791_v40 = vld [vmem:[%s4538_s4 + $0x20] ss:$16 sps:$4 sm:$0xff]   ;;  %v3798_v41 = vld [vmem:[%s4538_s4 + $0x28] ss:$16 sps:$4 sm:$0xff]   ;;  %v3805_v42 = vld [vmem:[%s4538_s4 + $0x44] ss:$16 sps:$4 sm:$0xff]  }
   0xf   :  { %288 = vmatpush1.bf16.msra.mxu0 %v3355_v15  ;;  %361 = vmatpush1.bf16.msra.mxu1 %v3356_v16  ;;  %v3810_v43 = vld [vmem:[%s4538_s4 + $0x4c] ss:$16 sps:$4 sm:$0xff]   ;;  %v3820_v45 = vld [vmem:[%s4538_s4 + $0x40] ss:$16 sps:$4 sm:$0xff]   ;;  %v3825_v46 = vld [vmem:[%s4538_s4 + $0x48] ss:$16 sps:$4 sm:$0xff]  }
  0x10   :  { %289 = vmatprep.subr.bf16.mxu0 %v3357_v17  ;;  %362 = vmatprep.subr.bf16.mxu1 %v3359_v18  ;;  %v3394_v44 = vld [vmem:[%s4537_s0 + $0x8] sm:$0xff]   ;;  %v3832_v47 = vld [vmem:[%s4538_s4 + $0x64] ss:$16 sps:$4 sm:$0xff]   ;;  %v3844_v49 = vld [vmem:[%s4538_s4 + $0x60] ss:$16 sps:$4 sm:$0xff]   ;;  %v87_v10 = vsub.s32 2, %v78_v9 }
  0x11   :  { %v3839_v48 = vld [vmem:[%s4538_s4 + $0x6c] ss:$16 sps:$4 sm:$0xff]   ;;  %v3849_v50 = vld [vmem:[%s4538_s4 + $0x68] ss:$16 sps:$4 sm:$0xff]   ;;  %v3856_v51 = vld [vmem:[%s4538_s4 + $0x84] ss:$16 sps:$4 sm:$0xff]  }
  0x12   :  { %v3863_v52 = vld [vmem:[%s4538_s4 + $0x8c] ss:$16 sps:$4 sm:$0xff]   ;;  %v3407_v53 = vld [vmem:[%s4537_s0 + $0x10] sm:$0xff]   ;;  %v3878_v55 = vld [vmem:[%s4538_s4 + $0x88] ss:$16 sps:$4 sm:$0xff]   ;;  %v91_v11 = vsub.s32 3, %v78_v9 }
  0x13   :  { %290 = vmatpush1.bf16.msra.mxu0 %v3361_v19  ;;  %363 = vmatpush1.bf16.msra.mxu1 %v3362_v20  ;;  %v3873_v54 = vld [vmem:[%s4538_s4 + $0x80] ss:$16 sps:$4 sm:$0xff]   ;;  %v3883_v56 = vld [vmem:[%s4538_s4 + $0xa4] ss:$16 sps:$4 sm:$0xff]   ;;  %v3888_v57 = vld [vmem:[%s4538_s4 + $0xac] ss:$16 sps:$4 sm:$0xff]  }
  0x14   :  { %291 = vmatprep.subr.bf16.mxu0 %v3363_v21  ;;  %364 = vmatprep.subr.bf16.mxu1 %v3365_v22  ;;  %v3897_v58 = vld [vmem:[%s4538_s4 + $0xa0] ss:$16 sps:$4 sm:$0xff]   ;;  %v3902_v59 = vld [vmem:[%s4538_s4 + $0xa8] ss:$16 sps:$4 sm:$0xff]   ;;  %v3907_v60 = vld [vmem:[%s4538_s4 + $0xc4] ss:$16 sps:$4 sm:$0xff]  }
  0x15   :  { %v3912_v61 = vld [vmem:[%s4538_s4 + $0xcc] ss:$16 sps:$4 sm:$0xff]   ;;  %v3926_v63 = vld [vmem:[%s4538_s4 + $0xc0] ss:$16 sps:$4 sm:$0xff]   ;;  %v3931_v0 = vld [vmem:[%s4538_s4 + $0xc8] ss:$16 sps:$4 sm:$0xff]  }
  0x16   :  { %v3420_v62 = vld [vmem:[%s4537_s0 + $0x18] sm:$0xff]   ;;  %v3936_v2 = vld [vmem:[%s4538_s4 + $0xe4] ss:$16 sps:$4 sm:$0xff]   ;;  %v3952_v4 = vld [vmem:[%s4538_s4 + $0xe0] ss:$16 sps:$4 sm:$0xff]   ;;  %v79_v12 = vsub.s32 0, %v78_v9 }
  0x17   :  { %292 = vmatpush1.bf16.msra.mxu0 %v3367_v23  ;;  %365 = vmatpush1.bf16.msra.mxu1 %v3368_v24  ;;  %v3941_v3 = vld [vmem:[%s4538_s4 + $0xec] ss:$16 sps:$4 sm:$0xff]   ;;  %v3957_v5 = vld [vmem:[%s4538_s4 + $0xe8] ss:$16 sps:$4 sm:$0xff]   ;;  %v31_v6 = vld [vmem:[%s4539_s1] sm:$0xff]  ;;  %v83_v14 = vsub.s32 1, %v78_v9 }
  0x18   :  { %293 = vmatprep.subr.bf16.mxu0 %v3369_v25  ;;  %366 = vmatprep.subr.bf16.mxu1 %v3371_v26  ;;  %v467_v7 = vpack.c.bf16 %v31_v6, %v31_v6  ;;  %v75_v13 = vld [vmem:[%s4540_s5] sm:$0xf] }
  0x19   :  { %v4007_v15 = vrot.slane %v75_v13, %v87_v10  ;;  %v4013_v18 = vrot.slane %v75_v13, %v91_v11  ;;  %v80_v19 = vrot.slane %v75_v13, %v79_v12  ;;  %v84_v22 = vrot.slane %v75_v13, %v83_v14 }
  0x1b   :  { %294 = vmatpush1.bf16.msra.mxu0 %v3373_v27  ;;  %367 = vmatpush1.bf16.msra.mxu1 %v3374_v28 }
  0x1c   :  { %295 = vmatprep.subr.bf16.mxu0 %v3375_v29  ;;  %368 = vmatprep.subr.bf16.mxu1 %v3377_v30 }
  0x1f   :  { %296 = vmatpush1.bf16.msra.mxu0 %v3379_v31  ;;  %369 = vmatpush1.bf16.msra.mxu1 %v3380_v32 }
  0x20   :  { %660 = vmatprep.subr.bf16.mxu0 %v3756_v33  ;;  %701 = vmatprep.subr.bf16.mxu1 %v3761_v34 }
  0x22   :  { %314 = vmatmul.mubr.bf16.vlgmr.msra.gmra.mrb[0].mxu0 %v3381_v35  ;;  %387 = vmatmul.mubr.bf16.vlgmr.msra.gmra.mrb[0].mxu1 %v3381_v35 }
  0x23   :  { %661 = vmatpush1.bf16.msra.mxu0 %v3769_v36  ;;  %702 = vmatpush1.bf16.msra.mxu1 %v3774_v37 }
  0x24   :  { %662 = vmatprep.subr.bf16.mxu0 %v3781_v38  ;;  %703 = vmatprep.subr.bf16.mxu1 %v3786_v39 }
  0x25   :  { %323 = vmatprep.mubr.bf16.mxu0 %v4545_v1  ;;  %396 = vmatprep.mubr.bf16.mxu1 %v4545_v1 }
  0x27   :  { %663 = vmatpush1.bf16.msra.mxu0 %v3791_v40  ;;  %704 = vmatpush1.bf16.msra.mxu1 %v3798_v41 }
  0x28   :  { %664 = vmatprep.subr.bf16.mxu0 %v3805_v42  ;;  %705 = vmatprep.subr.bf16.mxu1 %v3810_v43 }
  0x2a   :  { %324 = vmatmul.mubr.bf16.gmra.mrb[4].mxu0 %v3394_v44  ;;  %397 = vmatmul.mubr.bf16.gmra.mrb[4].mxu1 %v3394_v44 }
  0x2b   :  { %665 = vmatpush1.bf16.msra.mxu0 %v3820_v45  ;;  %706 = vmatpush1.bf16.msra.mxu1 %v3825_v46 }
  0x2c   :  { %666 = vmatprep.subr.bf16.mxu0 %v3832_v47  ;;  %707 = vmatprep.subr.bf16.mxu1 %v3839_v48 }
  0x2d   :  { %333 = vmatprep.mubr.bf16.mxu0 %v4545_v1  ;;  %406 = vmatprep.mubr.bf16.mxu1 %v4545_v1 }
  0x2f   :  { %667 = vmatpush1.bf16.msra.mxu0 %v3844_v49  ;;  %708 = vmatpush1.bf16.msra.mxu1 %v3849_v50 }
  0x30   :  { %668 = vmatprep.subr.bf16.mxu0 %v3856_v51  ;;  %709 = vmatprep.subr.bf16.mxu1 %v3863_v52 }
  0x32   :  { %334 = vmatmul.mubr.bf16.gmra.mrb[8].mxu0 %v3407_v53  ;;  %407 = vmatmul.mubr.bf16.gmra.mrb[8].mxu1 %v3407_v53 }
  0x33   :  { %669 = vmatpush1.bf16.msra.mxu0 %v3873_v54  ;;  %710 = vmatpush1.bf16.msra.mxu1 %v3878_v55 }
  0x34   :  { %670 = vmatprep.subr.bf16.mxu0 %v3883_v56  ;;  %711 = vmatprep.subr.bf16.mxu1 %v3888_v57 }
  0x35   :  { %343 = vmatprep.mubr.bf16.mxu0 %v4545_v1  ;;  %416 = vmatprep.mubr.bf16.mxu1 %v4545_v1 }
  0x37   :  { %671 = vmatpush1.bf16.msra.mxu0 %v3897_v58  ;;  %712 = vmatpush1.bf16.msra.mxu1 %v3902_v59 }
  0x38   :  { %672 = vmatprep.subr.bf16.mxu0 %v3907_v60  ;;  %713 = vmatprep.subr.bf16.mxu1 %v3912_v61 }
  0x3a   :  { %344 = vmatmul.mubr.bf16.gmra.mrb[12].mxu0 %v3420_v62  ;;  %417 = vmatmul.mubr.bf16.gmra.mrb[12].mxu1 %v3420_v62 }
  0x3b   :  { %673 = vmatpush1.bf16.msra.mxu0 %v3926_v63  ;;  %714 = vmatpush1.bf16.msra.mxu1 %v3931_v0 }
  0x3c   :  { %674 = vmatprep.subr.bf16.mxu0 %v3936_v2  ;;  %715 = vmatprep.subr.bf16.mxu1 %v3941_v3 }
  0x3d   :  { %692 = vmatprep.mubr.bf16.mxu0 %v4545_v1  ;;  %733 = vmatprep.mubr.bf16.mxu1 %v4545_v1 }
  0x3f   :  { %675 = vmatpush1.bf16.msra.mxu0 %v3952_v4  ;;  %716 = vmatpush1.bf16.msra.mxu1 %v3957_v5 }
  0x40   :  { %975 = vmatprep.subr.bf16.mxu0 %v3756_v33  ;;  %1016 = vmatprep.subr.bf16.mxu1 %v3761_v34 }
  0x42   :  { %693 = vmatmul.mubr.bf16.vlgmr.msra.gmra.mrb[16].mxu0 %v467_v7  ;;  %734 = vmatmul.mubr.bf16.vlgmr.msra.gmra.mrb[16].mxu1 %v467_v7 }
  0x43   :  { %976 = vmatpush1.bf16.msra.mxu0 %v3769_v36  ;;  %1017 = vmatpush1.bf16.msra.mxu1 %v3774_v37 }
  0x44   :  { %977 = vmatprep.subr.bf16.mxu0 %v3781_v38  ;;  %1018 = vmatprep.subr.bf16.mxu1 %v3786_v39 }
  0x45   :  { %1007 = vmatprep.mubr.bf16.mxu0 %v4545_v1  ;;  %1048 = vmatprep.mubr.bf16.mxu1 %v4545_v1 }
  0x47   :  { %978 = vmatpush1.bf16.msra.mxu0 %v3791_v40  ;;  %1019 = vmatpush1.bf16.msra.mxu1 %v3798_v41 }
  0x48   :  { %979 = vmatprep.subr.bf16.mxu0 %v3805_v42  ;;  %1020 = vmatprep.subr.bf16.mxu1 %v3810_v43 }
  0x4b   :  { %980 = vmatpush1.bf16.msra.mxu0 %v3820_v45  ;;  %1021 = vmatpush1.bf16.msra.mxu1 %v3825_v46 }
  0x4c   :  { %981 = vmatprep.subr.bf16.mxu0 %v3832_v47  ;;  %1022 = vmatprep.subr.bf16.mxu1 %v3839_v48 }
  0x4f   :  { %982 = vmatpush1.bf16.msra.mxu0 %v3844_v49  ;;  %1023 = vmatpush1.bf16.msra.mxu1 %v3849_v50 }
  0x50   :  { %983 = vmatprep.subr.bf16.mxu0 %v3856_v51  ;;  %1024 = vmatprep.subr.bf16.mxu1 %v3863_v52 }
  0x53   :  { %984 = vmatpush1.bf16.msra.mxu0 %v3873_v54  ;;  %1025 = vmatpush1.bf16.msra.mxu1 %v3878_v55 }
  0x54   :  { %985 = vmatprep.subr.bf16.mxu0 %v3883_v56  ;;  %1026 = vmatprep.subr.bf16.mxu1 %v3888_v57 }
  0x57   :  { %986 = vmatpush1.bf16.msra.mxu0 %v3897_v58  ;;  %1027 = vmatpush1.bf16.msra.mxu1 %v3902_v59 }
  0x58   :  { %987 = vmatprep.subr.bf16.mxu0 %v3907_v60  ;;  %1028 = vmatprep.subr.bf16.mxu1 %v3912_v61 }
  0x5b   :  { %988 = vmatpush1.bf16.msra.mxu0 %v3926_v63  ;;  %1029 = vmatpush1.bf16.msra.mxu1 %v3931_v0 }
  0x5c   :  { %989 = vmatprep.subr.bf16.mxu0 %v3936_v2  ;;  %1030 = vmatprep.subr.bf16.mxu1 %v3941_v3 }
  0x5f   :  { %990 = vmatpush1.bf16.msra.mxu0 %v3952_v4  ;;  %1031 = vmatpush1.bf16.msra.mxu1 %v3957_v5 }
  0x60   :  { %1291 = vmatprep.subr.bf16.mxu0 %v3756_v33  ;;  %1332 = vmatprep.subr.bf16.mxu1 %v3761_v34 }
  0xf5   :  { %v4009_v16 = vpop.f32.mrb[0].mxu0  ;;  %v4011_v17 = vpop.f32.mrb[0].mxu1 }
  0xf6   :  { %v317_v20 = vpop.f32.mrb[1].mxu0  ;;  %v390_v21 = vpop.f32.mrb[1].mxu1 }
  0xf7   :  { %v319_v23 = vpop.f32.mrb[2].mxu0  ;;  %v392_v24 = vpop.f32.mrb[2].mxu1 }
  0xf8   :  { %v4015_v25 = vadd.f32 %v319_v23, %v80_v19  ;;  %v321_v26 = vpop.f32.mrb[3].mxu0  ;;  %v4018_v27 = vadd.f32 %v392_v24, %v4007_v15  ;;  %v394_v28 = vpop.f32.mrb[3].mxu1 }
  0xf9   :  { %v4020_v29 = vadd.f32 %v321_v26, %v84_v22  ;;  %v4023_v30 = vadd.f32 %v394_v28, %v4013_v18 }
  0xfd   :  { %v325_v31 = vpop.f32.mrb[4].mxu0  ;;  %v398_v32 = vpop.f32.mrb[4].mxu1 }
  0xfe   :  { %v4025_v35 = vadd.f32 %v325_v31, %v80_v19  ;;  %v327_v44 = vpop.f32.mrb[5].mxu0  ;;  %v4028_v53 = vadd.f32 %v398_v32, %v4007_v15  ;;  %v400_v62 = vpop.f32.mrb[5].mxu1 }
  0xff   :  { %v4030_v6 = vadd.f32 %v327_v44, %v84_v22  ;;  %v329_v7 = vpop.f32.mrb[6].mxu0  ;;  %v4033_v8 = vadd.f32 %v400_v62, %v4013_v18  ;;  %v402_v9 = vpop.f32.mrb[6].mxu1 }
 0x100   :  { %v4035_v10 = vadd.f32 %v329_v7, %v80_v19  ;;  %v331_v11 = vpop.f32.mrb[7].mxu0  ;;  %v4038_v12 = vadd.f32 %v402_v9, %v4007_v15  ;;  %v404_v13 = vpop.f32.mrb[7].mxu1 }
 0x101   :  { %4547 = vst [vmem:[#allocation5_spill] sm:$0xff] %v4033_v8  ;;  %v4040_v14 = vadd.f32 %v331_v11, %v84_v22  ;;  %v4043_v23 = vadd.f32 %v404_v13, %v4013_v18 }
 0x102   :  { %4548 = vst [vmem:[#allocation6_spill] sm:$0xff] %v4035_v10  ;;  %4549 = vst [vmem:[#allocation7_spill] sm:$0xff] %v4038_v12 }
 0x103   :  { %4550 = vst [vmem:[#allocation8_spill] sm:$0xff] %v4040_v14  ;;  %4551 = vst [vmem:[#allocation9_spill] sm:$0xff] %v4043_v23 }
 0x105   :  { %v335_v24 = vpop.f32.mrb[8].mxu0  ;;  %v408_v26 = vpop.f32.mrb[8].mxu1 }
 0x106   :  { %v4045_v28 = vadd.f32 %v335_v24, %v80_v19  ;;  %v337_v31 = vpop.f32.mrb[9].mxu0  ;;  %v4048_v32 = vadd.f32 %v408_v26, %v4007_v15  ;;  %v410_v44 = vpop.f32.mrb[9].mxu1 }
 0x107   :  { %v4050_v62 = vadd.f32 %v337_v31, %v84_v22  ;;  %v339_v7 = vpop.f32.mrb[10].mxu0  ;;  %v4053_v9 = vadd.f32 %v410_v44, %v4013_v18  ;;  %v412_v11 = vpop.f32.mrb[10].mxu1 }
 0x108   :  { %4552 = vst [vmem:[#allocation10_spill] sm:$0xff] %v4045_v28  ;;  %4553 = vst [vmem:[#allocation11_spill] sm:$0xff] %v4048_v32  ;;  %v4055_v1 = vadd.f32 %v339_v7, %v80_v19  ;;  %v341_v13 = vpop.f32.mrb[11].mxu0  ;;  %v4058_v23 = vadd.f32 %v412_v11, %v4007_v15  ;;  %v414_v24 = vpop.f32.mrb[11].mxu1 }
 0x109   :  { %4554 = vst [vmem:[#allocation12_spill] sm:$0xff] %v4050_v62  ;;  %4555 = vst [vmem:[#allocation13_spill] sm:$0xff] %v4053_v9  ;;  %v4060_v28 = vadd.f32 %v341_v13, %v84_v22  ;;  %v4063_v26 = vadd.f32 %v414_v24, %v4013_v18 }
 0x10a   :  { %4556 = vst [vmem:[#allocation14_spill] sm:$0xff] %v4055_v1  ;;  %4557 = vst [vmem:[#allocation15_spill] sm:$0xff] %v4058_v23 }
 0x10b   :  { %4558 = vst [vmem:[#allocation16_spill] sm:$0xff] %v4060_v28  ;;  %4559 = vst [vmem:[#allocation17_spill] sm:$0xff] %v4063_v26 }
 0x10d   :  { %v345_v32 = vpop.f32.mrb[12].mxu0  ;;  %v418_v31 = vpop.f32.mrb[12].mxu1 }
 0x10e   :  { %v4065_v62 = vadd.f32 %v345_v32, %v80_v19  ;;  %v347_v14 = vpop.f32.mrb[13].mxu0  ;;  %v4068_v44 = vadd.f32 %v418_v31, %v4007_v15  ;;  %v420_v7 = vpop.f32.mrb[13].mxu1 }
 0x10f   :  { %v4070_v1 = vadd.f32 %v347_v14, %v84_v22  ;;  %v349_v9 = vpop.f32.mrb[14].mxu0  ;;  %v4073_v11 = vadd.f32 %v420_v7, %v4013_v18  ;;  %v422_v13 = vpop.f32.mrb[14].mxu1  ;;  %v316_v14 = vadd.f32 %v4009_v16, %v80_v19  ;;  %v318_v7 = vadd.f32 %v317_v20, %v84_v22 }
 0x110   :  { %4560 = vst [vmem:[#allocation18_spill] sm:$0xff] %v4065_v62  ;;  %4561 = vst [vmem:[#allocation19_spill] sm:$0xff] %v4068_v44  ;;  %v4075_v28 = vadd.f32 %v349_v9, %v80_v19  ;;  %v351_v24 = vpop.f32.mrb[15].mxu0  ;;  %v4078_v26 = vadd.f32 %v422_v13, %v4007_v15  ;;  %v424_v32 = vpop.f32.mrb[15].mxu1 }
 0x111   :  { %4562 = vst [vmem:[#allocation20_spill] sm:$0xff] %v4070_v1  ;;  %4563 = vst [vmem:[#allocation21_spill] sm:$0xff] %v4073_v11  ;;  %v4080_v62 = vadd.f32 %v351_v24, %v84_v22  ;;  %v4083_v31 = vadd.f32 %v424_v32, %v4013_v18  ;;  %v389_v1 = vadd.f32 %v4011_v17, %v4007_v15  ;;  %v33_v22 = vld [vmem:[%s4541_s2] sm:$0xff] }
 0x112   :  { %4564 = vst [vmem:[#allocation22_spill] sm:$0xff] %v4075_v28  ;;  %4565 = vst [vmem:[#allocation23_spill] sm:$0xff] %v4078_v26  ;;  %v391_v11 = vadd.f32 %v390_v21, %v4013_v18 }
 0x113   :  { %4566 = vst [vmem:[#allocation24_spill] sm:$0xff] %v4080_v62  ;;  %4567 = vst [vmem:[#allocation25_spill] sm:$0xff] %v4083_v31 }
 0x115   :  { %v694_v9 = vpop.f32.mrb[16].mxu0  ;;  %v735_v28 = vpop.f32.mrb[16].mxu1 }
 0x116   :  { %v742_v44 = vadd.f32 %v694_v9, %v316_v14  ;;  %v744_v23 = vadd.f32 %v735_v28, %v389_v1  ;;  %v696_v13 = vpop.f32.mrb[17].mxu0  ;;  %v737_v26 = vpop.f32.mrb[17].mxu1  ;;  %v4568_v14 = vmov 0  }
 0x117   :  { %v743_v12 = vadd.f32 %v696_v13, %v318_v7  ;;  %v745_v24 = vadd.f32 %v737_v26, %v391_v11  ;;  %v698_v62 = vpop.f32.mrb[18].mxu0  ;;  %v739_v10 = vpop.f32.mrb[18].mxu1 }
 0x118   :  { %v3077_v32 = vmul.f32 -1.442695, %v742_v44  ;;  %v699_v31 = vpop.f32.mrb[19].mxu0  ;;  %v740_v8 = vpop.f32.mrb[19].mxu1 }
 0x119   :  { %v3078_v16 = vmul.f32 -1.442695, %v743_v12  ;;  %v3079_v15 = vmul.f32 -1.442695, %v745_v24 }
 0x11a   :  { %3481 = vpow2.f32 %v3077_v32 }
 0x11b   :  { %3483 = vpow2.f32 %v3078_v16 }
 0x11c   :  { %3485 = vpow2.f32 %v3079_v15 }
 0x11d   :  { %3487 = vtanh.f32 %v744_v23 }
 0x124   :  { %v3482_v17 = vpop.eup %3481 }
 0x125   :  { %v3484_v19 = vpop.eup %3483  ;;  %v749_v18 = vadd.f32 1.0, %v3482_v17 }
 0x126   :  { %v755_v20 = vadd.f32 1.0, %v3484_v19  ;;  %v3486_v1 = vpop.eup %3485 }
 0x127   :  { %3489 = vrcp.f32 %v749_v18  ;;  %v3488_v21 = vpop.eup %3487  ;;  %v762_v28 = vadd.f32 1.0, %v3486_v1 }
 0x128   :  { %3491 = vrcp.f32 %v755_v20 }
 0x129   :  { %3493 = vrcp.f32 %v762_v28 }
 0x131   :  { %v3490_v10 = vpop.eup %3489 }
 0x132   :  { %v3492_v8 = vpop.eup %3491  ;;  %v767_v12 = vmul.f32 %v3490_v10, %v3488_v21 }
 0x133   :  { %v766_v62 = vmul.f32 %v3492_v8, %v33_v22  ;;  %v3494_v23 = vpop.eup %3493 }
 0x135   :  { %v4092_v26 = vadd.f32 %v767_v12, %v766_v62 }
 0x137   :  { %3495 = vtanh.f32 %v4092_v26 }
 0x141   :  { %v3496_v44 = vpop.eup %3495 }
 0x142   :  { %v770_v11 = vmul.f32 %v3496_v44, %v3494_v23 }
 0x144   :  { %773 = vst [vmem:[%s4542_s6] sm:$0xff] %v770_v11  ;;  %v782_v31 = vpack.c.bf16 %v770_v11, %v770_v11 }
 0x146   :  { %1008 = vmatmul.mubr.bf16.vlgmr.msra.gmra.mrb[20].mxu0 %v782_v31  ;;  %1049 = vmatmul.mubr.bf16.vlgmr.msra.gmra.mrb[20].mxu1 %v782_v31 }
 0x147   :  { %1292 = vmatpush1.bf16.msra.mxu0 %v3769_v36  ;;  %1333 = vmatpush1.bf16.msra.mxu1 %v3774_v37 }
 0x148   :  { %1293 = vmatprep.subr.bf16.mxu0 %v3781_v38  ;;  %1334 = vmatprep.subr.bf16.mxu1 %v3786_v39 }
 0x149   :  { %1323 = vmatprep.mubr.bf16.mxu0 %v4568_v14  ;;  %1364 = vmatprep.mubr.bf16.mxu1 %v4568_v14 }
 0x14b   :  { %1294 = vmatpush1.bf16.msra.mxu0 %v3791_v40  ;;  %1335 = vmatpush1.bf16.msra.mxu1 %v3798_v41 }
 0x14c   :  { %1295 = vmatprep.subr.bf16.mxu0 %v3805_v42  ;;  %1336 = vmatprep.subr.bf16.mxu1 %v3810_v43 }
 0x14f   :  { %1296 = vmatpush1.bf16.msra.mxu0 %v3820_v45  ;;  %1337 = vmatpush1.bf16.msra.mxu1 %v3825_v46 }
 0x150   :  { %1297 = vmatprep.subr.bf16.mxu0 %v3832_v47  ;;  %1338 = vmatprep.subr.bf16.mxu1 %v3839_v48 }
 0x153   :  { %1298 = vmatpush1.bf16.msra.mxu0 %v3844_v49  ;;  %1339 = vmatpush1.bf16.msra.mxu1 %v3849_v50 }
 0x154   :  { %1299 = vmatprep.subr.bf16.mxu0 %v3856_v51  ;;  %1340 = vmatprep.subr.bf16.mxu1 %v3863_v52 }
 0x157   :  { %1300 = vmatpush1.bf16.msra.mxu0 %v3873_v54  ;;  %1341 = vmatpush1.bf16.msra.mxu1 %v3878_v55 }
 0x158   :  { %1301 = vmatprep.subr.bf16.mxu0 %v3883_v56  ;;  %1342 = vmatprep.subr.bf16.mxu1 %v3888_v57 }
 0x15b   :  { %1302 = vmatpush1.bf16.msra.mxu0 %v3897_v58  ;;  %1343 = vmatpush1.bf16.msra.mxu1 %v3902_v59 }
 0x15c   :  { %1303 = vmatprep.subr.bf16.mxu0 %v3907_v60  ;;  %1344 = vmatprep.subr.bf16.mxu1 %v3912_v61 }
 0x15f   :  { %1304 = vmatpush1.bf16.msra.mxu0 %v3926_v63  ;;  %1345 = vmatpush1.bf16.msra.mxu1 %v3931_v0 }
 0x160   :  { %1305 = vmatprep.subr.bf16.mxu0 %v3936_v2  ;;  %1346 = vmatprep.subr.bf16.mxu1 %v3941_v3 }
 0x163   :  { %1306 = vmatpush1.bf16.msra.mxu0 %v3952_v4  ;;  %1347 = vmatpush1.bf16.msra.mxu1 %v3957_v5 }
 0x164   :  { %1607 = vmatprep.subr.bf16.mxu0 %v3756_v33  ;;  %1648 = vmatprep.subr.bf16.mxu1 %v3761_v34 }
 0x219   :  { %v1009_v7 = vpop.f32.mrb[20].mxu0  ;;  %v1050_v9 = vpop.f32.mrb[20].mxu1 }
 0x21a   :  { %v1057_v13 = vadd.f32 %v1009_v7, %v4015_v25  ;;  %v1059_v24 = vadd.f32 %v1050_v9, %v4018_v27  ;;  %v1011_v32 = vpop.f32.mrb[21].mxu0  ;;  %v1052_v16 = vpop.f32.mrb[21].mxu1 }
 0x21b   :  { %v1058_v15 = vadd.f32 %v1011_v32, %v4020_v29  ;;  %v1060_v17 = vadd.f32 %v1052_v16, %v4023_v30  ;;  %v1013_v19 = vpop.f32.mrb[22].mxu0  ;;  %v1054_v18 = vpop.f32.mrb[22].mxu1  ;;  %v4215_v32 = vld [vmem:[%s4538_s4 + $0x24] ss:$16 sps:$4 sm:$0xff]   ;;  %v4220_v16 = vld [vmem:[%s4538_s4 + $0x2c] ss:$16 sps:$4 sm:$0xff]  }
 0x21c   :  { %v3112_v20 = vmul.f32 -1.442695, %v1057_v13  ;;  %v1014_v1 = vpop.f32.mrb[23].mxu0  ;;  %v1055_v21 = vpop.f32.mrb[23].mxu1  ;;  %v4201_v13 = vld [vmem:[%s4538_s4] ss:$16 sps:$4 sm:$0xff]  }
 0x21d   :  { %v3113_v33 = vmul.f32 -1.442695, %v1058_v15  ;;  %v3114_v34 = vmul.f32 -1.442695, %v1060_v17  ;;  %v4225_v15 = vld [vmem:[%s4538_s4 + $0x20] ss:$16 sps:$4 sm:$0xff]  }
 0x21e   :  { %3497 = vpow2.f32 %v3112_v20  ;;  %v4230_v17 = vld [vmem:[%s4538_s4 + $0x28] ss:$16 sps:$4 sm:$0xff]   ;;  %v4239_v19 = vld [vmem:[%s4538_s4 + $0x44] ss:$16 sps:$4 sm:$0xff]   ;;  %v4244_v18 = vld [vmem:[%s4538_s4 + $0x4c] ss:$16 sps:$4 sm:$0xff]  }
 0x21f   :  { %3499 = vpow2.f32 %v3113_v33  ;;  %v4249_v20 = vld [vmem:[%s4538_s4 + $0x40] ss:$16 sps:$4 sm:$0xff]   ;;  %v4254_v1 = vld [vmem:[%s4538_s4 + $0x48] ss:$16 sps:$4 sm:$0xff]   ;;  %v4263_v21 = vld [vmem:[%s4538_s4 + $0x64] ss:$16 sps:$4 sm:$0xff]  }
 0x220   :  { %3501 = vpow2.f32 %v3114_v34  ;;  %v4268_v33 = vld [vmem:[%s4538_s4 + $0x6c] ss:$16 sps:$4 sm:$0xff]   ;;  %v4273_v34 = vld [vmem:[%s4538_s4 + $0x60] ss:$16 sps:$4 sm:$0xff]  }
 0x221   :  { %3503 = vtanh.f32 %v1059_v24  ;;  %v4206_v24 = vld [vmem:[%s4538_s4 + $0x8] ss:$16 sps:$4 sm:$0xff]  }
 0x228   :  { %v3498_v22 = vpop.eup %3497 }
 0x229   :  { %v3500_v10 = vpop.eup %3499  ;;  %v1064_v25 = vadd.f32 1.0, %v3498_v22  ;;  %v4278_v22 = vld [vmem:[%s4538_s4 + $0x68] ss:$16 sps:$4 sm:$0xff]  }
 0x22a   :  { %v1070_v27 = vadd.f32 1.0, %v3500_v10  ;;  %v3502_v29 = vpop.eup %3501  ;;  %v4287_v10 = vld [vmem:[%s4538_s4 + $0x84] ss:$16 sps:$4 sm:$0xff]  }
 0x22b   :  { %3505 = vrcp.f32 %v1064_v25  ;;  %v3504_v8 = vpop.eup %3503  ;;  %v1077_v62 = vadd.f32 1.0, %v3502_v29  ;;  %v4292_v25 = vld [vmem:[%s4538_s4 + $0x8c] ss:$16 sps:$4 sm:$0xff]   ;;  %v4302_v29 = vld [vmem:[%s4538_s4 + $0x88] ss:$16 sps:$4 sm:$0xff]  }
 0x22c   :  { %3507 = vrcp.f32 %v1070_v27  ;;  %v4297_v27 = vld [vmem:[%s4538_s4 + $0x80] ss:$16 sps:$4 sm:$0xff]  }
 0x22d   :  { %3509 = vrcp.f32 %v1077_v62  ;;  %v4332_v62 = vld [vmem:[%s4538_s4 + $0xc4] ss:$16 sps:$4 sm:$0xff]  }
 0x235   :  { %v3506_v30 = vpop.eup %3505 }
 0x236   :  { %v3508_v12 = vpop.eup %3507  ;;  %v1082_v28 = vmul.f32 %v3506_v30, %v3504_v8  ;;  %v4309_v8 = vld [vmem:[%s4538_s4 + $0xa4] ss:$16 sps:$4 sm:$0xff]   ;;  %v4316_v30 = vld [vmem:[%s4538_s4 + $0xa0] ss:$16 sps:$4 sm:$0xff]  }
 0x237   :  { %v1081_v23 = vmul.f32 %v3508_v12, %v4092_v26  ;;  %v3510_v11 = vpop.eup %3509  ;;  %v4196_v26 = vld [vmem:[%s4538_s4 + $0xc] ss:$16 sps:$4 sm:$0xff]   ;;  %v4321_v12 = vld [vmem:[%s4538_s4 + $0xa8] ss:$16 sps:$4 sm:$0xff]  }
 0x239   :  { %v4137_v44 = vadd.f32 %v1082_v28, %v1081_v23  ;;  %v4326_v28 = vld [vmem:[%s4538_s4 + $0xac] ss:$16 sps:$4 sm:$0xff]  }
 0x23a   :  { %v4337_v23 = vld [vmem:[%s4538_s4 + $0xcc] ss:$16 sps:$4 sm:$0xff]  }
 0x23b   :  { %3511 = vtanh.f32 %v4137_v44 }
 0x245   :  { %v3512_v31 = vpop.eup %3511 }
 0x246   :  { %v1085_v7 = vmul.f32 %v3512_v31, %v3510_v11  ;;  %v4350_v11 = vld [vmem:[%s4538_s4 + $0xc8] ss:$16 sps:$4 sm:$0xff]   ;;  %v4357_v31 = vld [vmem:[%s4538_s4 + $0xe4] ss:$16 sps:$4 sm:$0xff]  }
 0x248   :  { %3115 = vst [vmem:[%s4542_s6 + $0x8] sm:$0xff] %v1085_v7  ;;  %v1098_v9 = vpack.c.bf16 %v1085_v7, %v1085_v7  ;;  %v4362_v7 = vld [vmem:[%s4538_s4 + $0xec] ss:$16 sps:$4 sm:$0xff]  }
 0x24a   :  { %1324 = vmatmul.mubr.bf16.vlgmr.msra.gmra.mrb[24].mxu0 %v1098_v9  ;;  %1365 = vmatmul.mubr.bf16.vlgmr.msra.gmra.mrb[24].mxu1 %v1098_v9  ;;  %v4369_v9 = vld [vmem:[%s4538_s4 + $0xe0] ss:$16 sps:$4 sm:$0xff]  }
 0x24b   :  { %1608 = vmatpush1.bf16.msra.mxu0 %v3769_v36  ;;  %1649 = vmatpush1.bf16.msra.mxu1 %v3774_v37 }
 0x24c   :  { %1609 = vmatprep.subr.bf16.mxu0 %v3781_v38  ;;  %1650 = vmatprep.subr.bf16.mxu1 %v3786_v39 }
 0x24d   :  { %1639 = vmatprep.mubr.bf16.mxu0 %v4568_v14  ;;  %1680 = vmatprep.mubr.bf16.mxu1 %v4568_v14 }
 0x24f   :  { %1610 = vmatpush1.bf16.msra.mxu0 %v3791_v40  ;;  %1651 = vmatpush1.bf16.msra.mxu1 %v3798_v41 }
 0x250   :  { %1611 = vmatprep.subr.bf16.mxu0 %v3805_v42  ;;  %1652 = vmatprep.subr.bf16.mxu1 %v3810_v43  ;;  %v4569_v43 = vld [vmem:[#allocation5_spill] sm:$0xff] }
 0x253   :  { %1612 = vmatpush1.bf16.msra.mxu0 %v3820_v45  ;;  %1653 = vmatpush1.bf16.msra.mxu1 %v3825_v46 }
 0x254   :  { %1613 = vmatprep.subr.bf16.mxu0 %v3832_v47  ;;  %1654 = vmatprep.subr.bf16.mxu1 %v3839_v48 }
 0x257   :  { %1614 = vmatpush1.bf16.msra.mxu0 %v3844_v49  ;;  %1655 = vmatpush1.bf16.msra.mxu1 %v3849_v50 }
 0x258   :  { %1615 = vmatprep.subr.bf16.mxu0 %v3856_v51  ;;  %1656 = vmatprep.subr.bf16.mxu1 %v3863_v52 }
 0x25b   :  { %1616 = vmatpush1.bf16.msra.mxu0 %v3873_v54  ;;  %1657 = vmatpush1.bf16.msra.mxu1 %v3878_v55 }
 0x25c   :  { %1617 = vmatprep.subr.bf16.mxu0 %v3883_v56  ;;  %1658 = vmatprep.subr.bf16.mxu1 %v3888_v57 }
 0x25f   :  { %1618 = vmatpush1.bf16.msra.mxu0 %v3897_v58  ;;  %1659 = vmatpush1.bf16.msra.mxu1 %v3902_v59 }
 0x260   :  { %1619 = vmatprep.subr.bf16.mxu0 %v3907_v60  ;;  %1660 = vmatprep.subr.bf16.mxu1 %v3912_v61 }
 0x263   :  { %1620 = vmatpush1.bf16.msra.mxu0 %v3926_v63  ;;  %1661 = vmatpush1.bf16.msra.mxu1 %v3931_v0 }
 0x264   :  { %1621 = vmatprep.subr.bf16.mxu0 %v3936_v2  ;;  %1662 = vmatprep.subr.bf16.mxu1 %v3941_v3 }
 0x267   :  { %1622 = vmatpush1.bf16.msra.mxu0 %v3952_v4  ;;  %1663 = vmatpush1.bf16.msra.mxu1 %v3957_v5 }
 0x268   :  { %1964 = vmatprep.subr.bf16.mxu1 %v4196_v26 }
 0x31d   :  { %v1325_v36 = vpop.f32.mrb[24].mxu0  ;;  %v1366_v37 = vpop.f32.mrb[24].mxu1 }
 0x31e   :  { %v1373_v38 = vadd.f32 %v1325_v36, %v4025_v35  ;;  %v1375_v39 = vadd.f32 %v1366_v37, %v4028_v53  ;;  %v1327_v40 = vpop.f32.mrb[25].mxu0  ;;  %v1368_v41 = vpop.f32.mrb[25].mxu1  ;;  %v4374_v36 = vld [vmem:[%s4538_s4 + $0xe8] ss:$16 sps:$4 sm:$0xff]  }
 0x31f   :  { %v1374_v42 = vadd.f32 %v1327_v40, %v4030_v6  ;;  %v1376_v45 = vadd.f32 %v1368_v41, %v4569_v43  ;;  %v1329_v46 = vpop.f32.mrb[26].mxu0  ;;  %v1370_v47 = vpop.f32.mrb[26].mxu1  ;;  %v4191_v6 = vld [vmem:[%s4538_s4 + $0x4] ss:$16 sps:$4 sm:$0xff]  }
 0x320   :  { %v3148_v48 = vmul.f32 -1.442695, %v1373_v38  ;;  %v1330_v49 = vpop.f32.mrb[27].mxu0  ;;  %v1371_v50 = vpop.f32.mrb[27].mxu1  ;;  %1923 = vmatprep.subr.bf16.mxu0 %v4191_v6  ;;  %v4571_v41 = vld [vmem:[#allocation7_spill] sm:$0xff]  ;;  %v4572_v46 = vld [vmem:[#allocation8_spill] sm:$0xff] }
 0x321   :  { %v3149_v51 = vmul.f32 -1.442695, %v1374_v42  ;;  %v3150_v52 = vmul.f32 -1.442695, %v1376_v45 }
 0x322   :  { %3513 = vpow2.f32 %v3148_v48  ;;  %v4573_v48 = vld [vmem:[#allocation9_spill] sm:$0xff] }
 0x323   :  { %3515 = vpow2.f32 %v3149_v51 }
 0x324   :  { %3517 = vpow2.f32 %v3150_v52 }
 0x325   :  { %3519 = vtanh.f32 %v1375_v39  ;;  %v4570_v39 = vld [vmem:[#allocation6_spill] sm:$0xff] }
 0x32c   :  { %v3514_v54 = vpop.eup %3513 }
 0x32d   :  { %v3516_v55 = vpop.eup %3515  ;;  %v1380_v56 = vadd.f32 1.0, %v3514_v54 }
 0x32e   :  { %v1386_v57 = vadd.f32 1.0, %v3516_v55  ;;  %v3518_v58 = vpop.eup %3517 }
 0x32f   :  { %3521 = vrcp.f32 %v1380_v56  ;;  %v3520_v59 = vpop.eup %3519  ;;  %v1393_v0 = vadd.f32 1.0, %v3518_v58 }
 0x330   :  { %3523 = vrcp.f32 %v1386_v57 }
 0x331   :  { %3525 = vrcp.f32 %v1393_v0 }
 0x339   :  { %v3522_v60 = vpop.eup %3521 }
 0x33a   :  { %v3524_v61 = vpop.eup %3523  ;;  %v1398_v63 = vmul.f32 %v3522_v60, %v3520_v59 }
 0x33b   :  { %v1397_v2 = vmul.f32 %v3524_v61, %v4137_v44  ;;  %v3526_v4 = vpop.eup %3525  ;;  %v4345_v44 = vld [vmem:[%s4538_s4 + $0xc0] ss:$16 sps:$4 sm:$0xff]  }
 0x33d   :  { %v4180_v3 = vadd.f32 %v1398_v63, %v1397_v2 }
 0x33f   :  { %3527 = vtanh.f32 %v4180_v3 }
 0x349   :  { %v3528_v5 = vpop.eup %3527 }
 0x34a   :  { %v1401_v35 = vmul.f32 %v3528_v5, %v3526_v4 }
 0x34c   :  { %3151 = vst [vmem:[%s4542_s6 + $0x10] sm:$0xff] %v1401_v35  ;;  %v1414_v53 = vpack.c.bf16 %v1401_v35, %v1401_v35 }
 0x34e   :  { %1640 = vmatmul.mubr.bf16.vlgmr.msra.gmra.mrb[28].mxu0 %v1414_v53  ;;  %1681 = vmatmul.mubr.bf16.vlgmr.msra.gmra.mrb[28].mxu1 %v1414_v53 }
 0x34f   :  { %1955 = vmatprep.mubr.bf16.mxu0 %v4568_v14  ;;  %1996 = vmatprep.mubr.bf16.mxu1 %v4568_v14 }
 0x350   :  { %1924 = vmatpush1.bf16.msra.mxu0 %v4201_v13  ;;  %1965 = vmatpush1.bf16.msra.mxu1 %v4206_v24 }
 0x351   :  { %1925 = vmatprep.subr.bf16.mxu0 %v4215_v32  ;;  %1966 = vmatprep.subr.bf16.mxu1 %v4220_v16 }
 0x354   :  { %1926 = vmatpush1.bf16.msra.mxu0 %v4225_v15  ;;  %1967 = vmatpush1.bf16.msra.mxu1 %v4230_v17 }
 0x355   :  { %1927 = vmatprep.subr.bf16.mxu0 %v4239_v19  ;;  %1968 = vmatprep.subr.bf16.mxu1 %v4244_v18 }
 0x358   :  { %1928 = vmatpush1.bf16.msra.mxu0 %v4249_v20  ;;  %1969 = vmatpush1.bf16.msra.mxu1 %v4254_v1 }
 0x359   :  { %1929 = vmatprep.subr.bf16.mxu0 %v4263_v21  ;;  %1970 = vmatprep.subr.bf16.mxu1 %v4268_v33 }
 0x35c   :  { %1930 = vmatpush1.bf16.msra.mxu0 %v4273_v34  ;;  %1971 = vmatpush1.bf16.msra.mxu1 %v4278_v22 }
 0x35d   :  { %1931 = vmatprep.subr.bf16.mxu0 %v4287_v10  ;;  %1972 = vmatprep.subr.bf16.mxu1 %v4292_v25 }
 0x360   :  { %1932 = vmatpush1.bf16.msra.mxu0 %v4297_v27  ;;  %1973 = vmatpush1.bf16.msra.mxu1 %v4302_v29 }
 0x361   :  { %1933 = vmatprep.subr.bf16.mxu0 %v4309_v8  ;;  %1974 = vmatprep.subr.bf16.mxu1 %v4326_v28 }
 0x364   :  { %1934 = vmatpush1.bf16.msra.mxu0 %v4316_v30  ;;  %1975 = vmatpush1.bf16.msra.mxu1 %v4321_v12 }
 0x365   :  { %1935 = vmatprep.subr.bf16.mxu0 %v4332_v62  ;;  %1976 = vmatprep.subr.bf16.mxu1 %v4337_v23 }
 0x368   :  { %1936 = vmatpush1.bf16.msra.mxu0 %v4345_v44  ;;  %1977 = vmatpush1.bf16.msra.mxu1 %v4350_v11 }
 0x369   :  { %1937 = vmatprep.subr.bf16.mxu0 %v4357_v31  ;;  %1978 = vmatprep.subr.bf16.mxu1 %v4362_v7 }
 0x36c   :  { %1938 = vmatpush1.bf16.msra.mxu0 %v4369_v9  ;;  %1979 = vmatpush1.bf16.msra.mxu1 %v4374_v36 }
 0x36d   :  { %2239 = vmatprep.subr.bf16.mxu0 %v4191_v6  ;;  %2280 = vmatprep.subr.bf16.mxu1 %v4196_v26 }
 0x421   :  { %v1641_v37 = vpop.f32.mrb[28].mxu0  ;;  %v1682_v38 = vpop.f32.mrb[28].mxu1 }
 0x422   :  { %v1689_v40 = vadd.f32 %v1641_v37, %v4570_v39  ;;  %v1691_v42 = vadd.f32 %v1682_v38, %v4571_v41  ;;  %v1643_v43 = vpop.f32.mrb[29].mxu0  ;;  %v1684_v45 = vpop.f32.mrb[29].mxu1 }
 0x423   :  { %v1690_v47 = vadd.f32 %v1643_v43, %v4572_v46  ;;  %v1692_v49 = vadd.f32 %v1684_v45, %v4573_v48  ;;  %v1645_v50 = vpop.f32.mrb[30].mxu0  ;;  %v1686_v51 = vpop.f32.mrb[30].mxu1  ;;  %v4574_v43 = vld [vmem:[#allocation10_spill] sm:$0xff]  ;;  %v4575_v46 = vld [vmem:[#allocation11_spill] sm:$0xff] }
 0x424   :  { %v3184_v52 = vmul.f32 -1.442695, %v1689_v40  ;;  %v1646_v54 = vpop.f32.mrb[31].mxu0  ;;  %v1687_v55 = vpop.f32.mrb[31].mxu1  ;;  %v4576_v50 = vld [vmem:[#allocation12_spill] sm:$0xff] }
 0x425   :  { %v3185_v56 = vmul.f32 -1.442695, %v1690_v47  ;;  %v3186_v57 = vmul.f32 -1.442695, %v1692_v49 }
 0x426   :  { %3529 = vpow2.f32 %v3184_v52  ;;  %v4577_v52 = vld [vmem:[#allocation13_spill] sm:$0xff] }
 0x427   :  { %3531 = vpow2.f32 %v3185_v56 }
 0x428   :  { %3533 = vpow2.f32 %v3186_v57 }
 0x429   :  { %3535 = vtanh.f32 %v1691_v42 }
 0x430   :  { %v3530_v58 = vpop.eup %3529 }
 0x431   :  { %v3532_v59 = vpop.eup %3531  ;;  %v1696_v60 = vadd.f32 1.0, %v3530_v58 }
 0x432   :  { %v1702_v61 = vadd.f32 1.0, %v3532_v59  ;;  %v3534_v63 = vpop.eup %3533 }
 0x433   :  { %3537 = vrcp.f32 %v1696_v60  ;;  %v3536_v0 = vpop.eup %3535  ;;  %v1709_v35 = vadd.f32 1.0, %v3534_v63 }
 0x434   :  { %3539 = vrcp.f32 %v1702_v61 }
 0x435   :  { %3541 = vrcp.f32 %v1709_v35 }
 0x43d   :  { %v3538_v2 = vpop.eup %3537 }
 0x43e   :  { %v3540_v4 = vpop.eup %3539  ;;  %v1714_v5 = vmul.f32 %v3538_v2, %v3536_v0 }
 0x43f   :  { %v1713_v53 = vmul.f32 %v3540_v4, %v4180_v3  ;;  %v3542_v38 = vpop.eup %3541 }
 0x441   :  { %v4387_v37 = vadd.f32 %v1714_v5, %v1713_v53 }
 0x443   :  { %3543 = vtanh.f32 %v4387_v37 }
 0x44d   :  { %v3544_v39 = vpop.eup %3543 }
 0x44e   :  { %v1717_v40 = vmul.f32 %v3544_v39, %v3542_v38 }
 0x450   :  { %3187 = vst [vmem:[%s4542_s6 + $0x18] sm:$0xff] %v1717_v40  ;;  %v1730_v41 = vpack.c.bf16 %v1717_v40, %v1717_v40 }
 0x452   :  { %1956 = vmatmul.mubr.bf16.vlgmr.msra.gmra.mrb[32].mxu0 %v1730_v41  ;;  %1997 = vmatmul.mubr.bf16.vlgmr.msra.gmra.mrb[32].mxu1 %v1730_v41 }
 0x453   :  { %2240 = vmatpush1.bf16.msra.mxu0 %v4201_v13  ;;  %2281 = vmatpush1.bf16.msra.mxu1 %v4206_v24 }
 0x454   :  { %2241 = vmatprep.subr.bf16.mxu0 %v4215_v32  ;;  %2282 = vmatprep.subr.bf16.mxu1 %v4220_v16 }
 0x455   :  { %2271 = vmatprep.mubr.bf16.mxu0 %v4568_v14  ;;  %2312 = vmatprep.mubr.bf16.mxu1 %v4568_v14 }
 0x457   :  { %2242 = vmatpush1.bf16.msra.mxu0 %v4225_v15  ;;  %2283 = vmatpush1.bf16.msra.mxu1 %v4230_v17 }
 0x458   :  { %2243 = vmatprep.subr.bf16.mxu0 %v4239_v19  ;;  %2284 = vmatprep.subr.bf16.mxu1 %v4244_v18 }
 0x45b   :  { %2244 = vmatpush1.bf16.msra.mxu0 %v4249_v20  ;;  %2285 = vmatpush1.bf16.msra.mxu1 %v4254_v1 }
 0x45c   :  { %2245 = vmatprep.subr.bf16.mxu0 %v4263_v21  ;;  %2286 = vmatprep.subr.bf16.mxu1 %v4268_v33 }
 0x45f   :  { %2246 = vmatpush1.bf16.msra.mxu0 %v4273_v34  ;;  %2287 = vmatpush1.bf16.msra.mxu1 %v4278_v22 }
 0x460   :  { %2247 = vmatprep.subr.bf16.mxu0 %v4287_v10  ;;  %2288 = vmatprep.subr.bf16.mxu1 %v4292_v25 }
 0x463   :  { %2248 = vmatpush1.bf16.msra.mxu0 %v4297_v27  ;;  %2289 = vmatpush1.bf16.msra.mxu1 %v4302_v29 }
 0x464   :  { %2249 = vmatprep.subr.bf16.mxu0 %v4309_v8  ;;  %2290 = vmatprep.subr.bf16.mxu1 %v4326_v28 }
 0x467   :  { %2250 = vmatpush1.bf16.msra.mxu0 %v4316_v30  ;;  %2291 = vmatpush1.bf16.msra.mxu1 %v4321_v12 }
 0x468   :  { %2251 = vmatprep.subr.bf16.mxu0 %v4332_v62  ;;  %2292 = vmatprep.subr.bf16.mxu1 %v4337_v23 }
 0x46b   :  { %2252 = vmatpush1.bf16.msra.mxu0 %v4345_v44  ;;  %2293 = vmatpush1.bf16.msra.mxu1 %v4350_v11 }
 0x46c   :  { %2253 = vmatprep.subr.bf16.mxu0 %v4357_v31  ;;  %2294 = vmatprep.subr.bf16.mxu1 %v4362_v7 }
 0x46f   :  { %2254 = vmatpush1.bf16.msra.mxu0 %v4369_v9  ;;  %2295 = vmatpush1.bf16.msra.mxu1 %v4374_v36 }
 0x470   :  { %2555 = vmatprep.subr.bf16.mxu0 %v4191_v6  ;;  %2596 = vmatprep.subr.bf16.mxu1 %v4196_v26 }
 0x525   :  { %v1957_v3 = vpop.f32.mrb[32].mxu0  ;;  %v1998_v42 = vpop.f32.mrb[32].mxu1 }
 0x526   :  { %v2005_v45 = vadd.f32 %v1957_v3, %v4574_v43  ;;  %v2007_v47 = vadd.f32 %v1998_v42, %v4575_v46  ;;  %v1959_v48 = vpop.f32.mrb[33].mxu0  ;;  %v2000_v49 = vpop.f32.mrb[33].mxu1 }
 0x527   :  { %v2006_v51 = vadd.f32 %v1959_v48, %v4576_v50  ;;  %v2008_v54 = vadd.f32 %v2000_v49, %v4577_v52  ;;  %v1961_v55 = vpop.f32.mrb[34].mxu0  ;;  %v2002_v56 = vpop.f32.mrb[34].mxu1  ;;  %v4578_v48 = vld [vmem:[#allocation14_spill] sm:$0xff]  ;;  %v4579_v50 = vld [vmem:[#allocation15_spill] sm:$0xff] }
 0x528   :  { %v3220_v57 = vmul.f32 -1.442695, %v2005_v45  ;;  %v1962_v58 = vpop.f32.mrb[35].mxu0  ;;  %v2003_v59 = vpop.f32.mrb[35].mxu1  ;;  %v4580_v55 = vld [vmem:[#allocation16_spill] sm:$0xff] }
 0x529   :  { %v3221_v60 = vmul.f32 -1.442695, %v2006_v51  ;;  %v3222_v61 = vmul.f32 -1.442695, %v2008_v54 }
 0x52a   :  { %3545 = vpow2.f32 %v3220_v57  ;;  %v4581_v57 = vld [vmem:[#allocation17_spill] sm:$0xff] }
 0x52b   :  { %3547 = vpow2.f32 %v3221_v60 }
 0x52c   :  { %3549 = vpow2.f32 %v3222_v61 }
 0x52d   :  { %3551 = vtanh.f32 %v2007_v47 }
 0x534   :  { %v3546_v63 = vpop.eup %3545 }
 0x535   :  { %v3548_v0 = vpop.eup %3547  ;;  %v2012_v2 = vadd.f32 1.0, %v3546_v63 }
 0x536   :  { %v2018_v4 = vadd.f32 1.0, %v3548_v0  ;;  %v3550_v5 = vpop.eup %3549 }
 0x537   :  { %3553 = vrcp.f32 %v2012_v2  ;;  %v3552_v35 = vpop.eup %3551  ;;  %v2025_v40 = vadd.f32 1.0, %v3550_v5 }
 0x538   :  { %3555 = vrcp.f32 %v2018_v4 }
 0x539   :  { %3557 = vrcp.f32 %v2025_v40 }
 0x541   :  { %v3554_v53 = vpop.eup %3553 }
 0x542   :  { %v3556_v38 = vpop.eup %3555  ;;  %v2030_v39 = vmul.f32 %v3554_v53, %v3552_v35 }
 0x543   :  { %v2029_v41 = vmul.f32 %v3556_v38, %v4387_v37  ;;  %v3558_v42 = vpop.eup %3557 }
 0x545   :  { %v4432_v3 = vadd.f32 %v2030_v39, %v2029_v41 }
 0x547   :  { %3559 = vtanh.f32 %v4432_v3 }
 0x551   :  { %v3560_v43 = vpop.eup %3559 }
 0x552   :  { %v2033_v45 = vmul.f32 %v3560_v43, %v3558_v42 }
 0x554   :  { %3223 = vst [vmem:[%s4542_s6 + $0x20] sm:$0xff] %v2033_v45  ;;  %v2046_v46 = vpack.c.bf16 %v2033_v45, %v2033_v45 }
 0x556   :  { %2272 = vmatmul.mubr.bf16.vlgmr.msra.gmra.mrb[36].mxu0 %v2046_v46  ;;  %2313 = vmatmul.mubr.bf16.vlgmr.msra.gmra.mrb[36].mxu1 %v2046_v46 }
 0x557   :  { %2556 = vmatpush1.bf16.msra.mxu0 %v4201_v13  ;;  %2597 = vmatpush1.bf16.msra.mxu1 %v4206_v24 }
 0x558   :  { %2557 = vmatprep.subr.bf16.mxu0 %v4215_v32  ;;  %2598 = vmatprep.subr.bf16.mxu1 %v4220_v16 }
 0x559   :  { %2587 = vmatprep.mubr.bf16.mxu0 %v4568_v14  ;;  %2628 = vmatprep.mubr.bf16.mxu1 %v4568_v14 }
 0x55b   :  { %2558 = vmatpush1.bf16.msra.mxu0 %v4225_v15  ;;  %2599 = vmatpush1.bf16.msra.mxu1 %v4230_v17 }
 0x55c   :  { %2559 = vmatprep.subr.bf16.mxu0 %v4239_v19  ;;  %2600 = vmatprep.subr.bf16.mxu1 %v4244_v18 }
 0x55f   :  { %2560 = vmatpush1.bf16.msra.mxu0 %v4249_v20  ;;  %2601 = vmatpush1.bf16.msra.mxu1 %v4254_v1 }
 0x560   :  { %2561 = vmatprep.subr.bf16.mxu0 %v4263_v21  ;;  %2602 = vmatprep.subr.bf16.mxu1 %v4268_v33 }
 0x563   :  { %2562 = vmatpush1.bf16.msra.mxu0 %v4273_v34  ;;  %2603 = vmatpush1.bf16.msra.mxu1 %v4278_v22 }
 0x564   :  { %2563 = vmatprep.subr.bf16.mxu0 %v4287_v10  ;;  %2604 = vmatprep.subr.bf16.mxu1 %v4292_v25 }
 0x567   :  { %2564 = vmatpush1.bf16.msra.mxu0 %v4297_v27  ;;  %2605 = vmatpush1.bf16.msra.mxu1 %v4302_v29 }
 0x568   :  { %2565 = vmatprep.subr.bf16.mxu0 %v4309_v8  ;;  %2606 = vmatprep.subr.bf16.mxu1 %v4326_v28 }
 0x56b   :  { %2566 = vmatpush1.bf16.msra.mxu0 %v4316_v30  ;;  %2607 = vmatpush1.bf16.msra.mxu1 %v4321_v12 }
 0x56c   :  { %2567 = vmatprep.subr.bf16.mxu0 %v4332_v62  ;;  %2608 = vmatprep.subr.bf16.mxu1 %v4337_v23 }
 0x56f   :  { %2568 = vmatpush1.bf16.msra.mxu0 %v4345_v44  ;;  %2609 = vmatpush1.bf16.msra.mxu1 %v4350_v11 }
 0x570   :  { %2569 = vmatprep.subr.bf16.mxu0 %v4357_v31  ;;  %2610 = vmatprep.subr.bf16.mxu1 %v4362_v7 }
 0x573   :  { %2570 = vmatpush1.bf16.msra.mxu0 %v4369_v9  ;;  %2611 = vmatpush1.bf16.msra.mxu1 %v4374_v36 }
 0x574   :  { %2871 = vmatprep.subr.bf16.mxu0 %v4191_v6  ;;  %2912 = vmatprep.subr.bf16.mxu1 %v4196_v26 }
 0x629   :  { %v2273_v37 = vpop.f32.mrb[36].mxu0  ;;  %v2314_v47 = vpop.f32.mrb[36].mxu1 }
 0x62a   :  { %v2321_v49 = vadd.f32 %v2273_v37, %v4578_v48  ;;  %v2323_v51 = vadd.f32 %v2314_v47, %v4579_v50  ;;  %v2275_v52 = vpop.f32.mrb[37].mxu0  ;;  %v2316_v54 = vpop.f32.mrb[37].mxu1 }
 0x62b   :  { %v2322_v56 = vadd.f32 %v2275_v52, %v4580_v55  ;;  %v2324_v58 = vadd.f32 %v2316_v54, %v4581_v57  ;;  %v2277_v59 = vpop.f32.mrb[38].mxu0  ;;  %v2318_v60 = vpop.f32.mrb[38].mxu1  ;;  %v4586_v55 = vld [vmem:[#allocation22_spill] sm:$0xff]  ;;  %v4587_v57 = vld [vmem:[#allocation23_spill] sm:$0xff] }
 0x62c   :  { %v3256_v61 = vmul.f32 -1.442695, %v2321_v49  ;;  %v2278_v63 = vpop.f32.mrb[39].mxu0  ;;  %v2319_v0 = vpop.f32.mrb[39].mxu1 }
 0x62d   :  { %v3257_v6 = vmul.f32 -1.442695, %v2322_v56  ;;  %v3258_v26 = vmul.f32 -1.442695, %v2324_v58  ;;  %v4589_v0 = vld [vmem:[#allocation25_spill] sm:$0xff] }
 0x62e   :  { %3561 = vpow2.f32 %v3256_v61  ;;  %v4588_v61 = vld [vmem:[#allocation24_spill] sm:$0xff] }
 0x62f   :  { %3563 = vpow2.f32 %v3257_v6 }
 0x630   :  { %3565 = vpow2.f32 %v3258_v26 }
 0x631   :  { %3567 = vtanh.f32 %v2323_v51 }
 0x638   :  { %v3562_v2 = vpop.eup %3561 }
 0x639   :  { %v3564_v4 = vpop.eup %3563  ;;  %v2328_v5 = vadd.f32 1.0, %v3562_v2 }
 0x63a   :  { %v2334_v35 = vadd.f32 1.0, %v3564_v4  ;;  %v3566_v53 = vpop.eup %3565 }
 0x63b   :  { %3569 = vrcp.f32 %v2328_v5  ;;  %v3568_v38 = vpop.eup %3567  ;;  %v2341_v42 = vadd.f32 1.0, %v3566_v53 }
 0x63c   :  { %3571 = vrcp.f32 %v2334_v35 }
 0x63d   :  { %3573 = vrcp.f32 %v2341_v42 }
 0x645   :  { %v3570_v39 = vpop.eup %3569 }
 0x646   :  { %v3572_v40 = vpop.eup %3571  ;;  %v2346_v41 = vmul.f32 %v3570_v39, %v3568_v38 }
 0x647   :  { %v2345_v43 = vmul.f32 %v3572_v40, %v4432_v3  ;;  %v3574_v46 = vpop.eup %3573 }
 0x649   :  { %v4477_v45 = vadd.f32 %v2346_v41, %v2345_v43 }
 0x64b   :  { %3575 = vtanh.f32 %v4477_v45 }
 0x655   :  { %v3576_v37 = vpop.eup %3575 }
 0x656   :  { %v2349_v47 = vmul.f32 %v3576_v37, %v3574_v46 }
 0x658   :  { %3259 = vst [vmem:[%s4542_s6 + $0x28] sm:$0xff] %v2349_v47  ;;  %v2362_v48 = vpack.c.bf16 %v2349_v47, %v2349_v47 }
 0x65a   :  { %2588 = vmatmul.mubr.bf16.vlgmr.msra.gmra.mrb[40].mxu0 %v2362_v48  ;;  %2629 = vmatmul.mubr.bf16.vlgmr.msra.gmra.mrb[40].mxu1 %v2362_v48 }
 0x65b   :  { %2872 = vmatpush1.bf16.msra.mxu0 %v4201_v13  ;;  %2913 = vmatpush1.bf16.msra.mxu1 %v4206_v24  ;;  %v4582_v24 = vld [vmem:[#allocation18_spill] sm:$0xff] }
 0x65c   :  { %2873 = vmatprep.subr.bf16.mxu0 %v4215_v32  ;;  %2914 = vmatprep.subr.bf16.mxu1 %v4220_v16  ;;  %v4583_v16 = vld [vmem:[#allocation19_spill] sm:$0xff] }
 0x65d   :  { %2903 = vmatprep.mubr.bf16.mxu0 %v4568_v14  ;;  %2944 = vmatprep.mubr.bf16.mxu1 %v4568_v14 }
 0x65f   :  { %2874 = vmatpush1.bf16.msra.mxu0 %v4225_v15  ;;  %2915 = vmatpush1.bf16.msra.mxu1 %v4230_v17 }
 0x660   :  { %2875 = vmatprep.subr.bf16.mxu0 %v4239_v19  ;;  %2916 = vmatprep.subr.bf16.mxu1 %v4244_v18  ;;  %v4584_v18 = vld [vmem:[#allocation20_spill] sm:$0xff] }
 0x663   :  { %2876 = vmatpush1.bf16.msra.mxu0 %v4249_v20  ;;  %2917 = vmatpush1.bf16.msra.mxu1 %v4254_v1  ;;  %v4585_v1 = vld [vmem:[#allocation21_spill] sm:$0xff] }
 0x664   :  { %2877 = vmatprep.subr.bf16.mxu0 %v4263_v21  ;;  %2918 = vmatprep.subr.bf16.mxu1 %v4268_v33 }
 0x667   :  { %2878 = vmatpush1.bf16.msra.mxu0 %v4273_v34  ;;  %2919 = vmatpush1.bf16.msra.mxu1 %v4278_v22 }
 0x668   :  { %2879 = vmatprep.subr.bf16.mxu0 %v4287_v10  ;;  %2920 = vmatprep.subr.bf16.mxu1 %v4292_v25 }
 0x66b   :  { %2880 = vmatpush1.bf16.msra.mxu0 %v4297_v27  ;;  %2921 = vmatpush1.bf16.msra.mxu1 %v4302_v29 }
 0x66c   :  { %2881 = vmatprep.subr.bf16.mxu0 %v4309_v8  ;;  %2922 = vmatprep.subr.bf16.mxu1 %v4326_v28 }
 0x66f   :  { %2882 = vmatpush1.bf16.msra.mxu0 %v4316_v30  ;;  %2923 = vmatpush1.bf16.msra.mxu1 %v4321_v12 }
 0x670   :  { %2883 = vmatprep.subr.bf16.mxu0 %v4332_v62  ;;  %2924 = vmatprep.subr.bf16.mxu1 %v4337_v23 }
 0x673   :  { %2884 = vmatpush1.bf16.msra.mxu0 %v4345_v44  ;;  %2925 = vmatpush1.bf16.msra.mxu1 %v4350_v11 }
 0x674   :  { %2885 = vmatprep.subr.bf16.mxu0 %v4357_v31  ;;  %2926 = vmatprep.subr.bf16.mxu1 %v4362_v7 }
 0x677   :  { %2886 = vmatpush1.bf16.msra.mxu0 %v4369_v9  ;;  %2927 = vmatpush1.bf16.msra.mxu1 %v4374_v36 }
 0x72d   :  { %v2589_v14 = vpop.f32.mrb[40].mxu0  ;;  %v2630_v13 = vpop.f32.mrb[40].mxu1 }
 0x72e   :  { %v2637_v32 = vadd.f32 %v2589_v14, %v4582_v24  ;;  %v2639_v15 = vadd.f32 %v2630_v13, %v4583_v16  ;;  %v2591_v17 = vpop.f32.mrb[41].mxu0  ;;  %v2632_v19 = vpop.f32.mrb[41].mxu1 }
 0x72f   :  { %v2638_v20 = vadd.f32 %v2591_v17, %v4584_v18  ;;  %v2640_v21 = vadd.f32 %v2632_v19, %v4585_v1  ;;  %v2593_v33 = vpop.f32.mrb[42].mxu0  ;;  %v2634_v34 = vpop.f32.mrb[42].mxu1 }
 0x730   :  { %v3292_v22 = vmul.f32 -1.442695, %v2637_v32  ;;  %v2594_v10 = vpop.f32.mrb[43].mxu0  ;;  %v2635_v25 = vpop.f32.mrb[43].mxu1 }
 0x731   :  { %v3293_v27 = vmul.f32 -1.442695, %v2638_v20  ;;  %v3294_v29 = vmul.f32 -1.442695, %v2640_v21 }
 0x732   :  { %3577 = vpow2.f32 %v3292_v22 }
 0x733   :  { %3579 = vpow2.f32 %v3293_v27 }
 0x734   :  { %3581 = vpow2.f32 %v3294_v29 }
 0x735   :  { %3583 = vtanh.f32 %v2639_v15 }
 0x73c   :  { %v3578_v8 = vpop.eup %3577 }
 0x73d   :  { %v3580_v30 = vpop.eup %3579  ;;  %v2644_v12 = vadd.f32 1.0, %v3578_v8 }
 0x73e   :  { %v2650_v28 = vadd.f32 1.0, %v3580_v30  ;;  %v3582_v62 = vpop.eup %3581 }
 0x73f   :  { %3585 = vrcp.f32 %v2644_v12  ;;  %v3584_v23 = vpop.eup %3583  ;;  %v2657_v7 = vadd.f32 1.0, %v3582_v62 }
 0x740   :  { %3587 = vrcp.f32 %v2650_v28 }
 0x741   :  { %3589 = vrcp.f32 %v2657_v7 }
 0x749   :  { %v3586_v44 = vpop.eup %3585 }
 0x74a   :  { %v3588_v11 = vpop.eup %3587  ;;  %v2662_v31 = vmul.f32 %v3586_v44, %v3584_v23 }
 0x74b   :  { %v2661_v9 = vmul.f32 %v3588_v11, %v4477_v45  ;;  %v3590_v3 = vpop.eup %3589 }
 0x74d   :  { %v2663_v36 = vadd.f32 %v2662_v31, %v2661_v9 }
 0x74f   :  { %3591 = vtanh.f32 %v2663_v36 }
 0x759   :  { %v3592_v49 = vpop.eup %3591 }
 0x75a   :  { %v2665_v50 = vmul.f32 %v3592_v49, %v3590_v3 }
 0x75c   :  { %3295 = vst [vmem:[%s4542_s6 + $0x30] sm:$0xff] %v2665_v50  ;;  %v2678_v51 = vpack.c.bf16 %v2665_v50, %v2665_v50 }
 0x75e   :  { %2904 = vmatmul.mubr.bf16.vlgmr.msra.gmra.mrb[44].mxu0 %v2678_v51  ;;  %2945 = vmatmul.mubr.bf16.vlgmr.msra.gmra.mrb[44].mxu1 %v2678_v51 }
 0x831   :  { %v2905_v52 = vpop.f32.mrb[44].mxu0  ;;  %v2946_v54 = vpop.f32.mrb[44].mxu1 }
 0x832   :  { %v2953_v56 = vadd.f32 %v2905_v52, %v4586_v55  ;;  %v2955_v58 = vadd.f32 %v2946_v54, %v4587_v57  ;;  %v2907_v59 = vpop.f32.mrb[45].mxu0  ;;  %v2948_v60 = vpop.f32.mrb[45].mxu1 }
 0x833   :  { %v2954_v63 = vadd.f32 %v2907_v59, %v4588_v61  ;;  %v2956_v6 = vadd.f32 %v2948_v60, %v4589_v0  ;;  %v2909_v26 = vpop.f32.mrb[46].mxu0  ;;  %v2950_v2 = vpop.f32.mrb[46].mxu1 }
 0x834   :  { %v3328_v4 = vmul.f32 -1.442695, %v2953_v56  ;;  %v2910_v5 = vpop.f32.mrb[47].mxu0  ;;  %v2951_v35 = vpop.f32.mrb[47].mxu1 }
 0x835   :  { %v3329_v53 = vmul.f32 -1.442695, %v2954_v63  ;;  %v3330_v38 = vmul.f32 -1.442695, %v2956_v6 }
 0x836   :  { %3593 = vpow2.f32 %v3328_v4 }
 0x837   :  { %3595 = vpow2.f32 %v3329_v53 }
 0x838   :  { %3597 = vpow2.f32 %v3330_v38 }
 0x839   :  { %3599 = vtanh.f32 %v2955_v58 }
 0x840   :  { %v3594_v39 = vpop.eup %3593 }
 0x841   :  { %v3596_v40 = vpop.eup %3595  ;;  %v2960_v41 = vadd.f32 1.0, %v3594_v39 }
 0x842   :  { %v2966_v42 = vadd.f32 1.0, %v3596_v40  ;;  %v3598_v43 = vpop.eup %3597 }
 0x843   :  { %3601 = vrcp.f32 %v2960_v41  ;;  %v3600_v45 = vpop.eup %3599  ;;  %v2973_v48 = vadd.f32 1.0, %v3598_v43 }
 0x844   :  { %3603 = vrcp.f32 %v2966_v42 }
 0x845   :  { %3605 = vrcp.f32 %v2973_v48 }
 0x84d   :  { %v3602_v46 = vpop.eup %3601 }
 0x84e   :  { %v3604_v37 = vpop.eup %3603  ;;  %v2978_v47 = vmul.f32 %v3602_v46, %v3600_v45 }
 0x84f   :  { %v2977_v14 = vmul.f32 %v3604_v37, %v2663_v36  ;;  %v3606_v24 = vpop.eup %3605 }
 0x851   :  { %v2979_v13 = vadd.f32 %v2978_v47, %v2977_v14 }
 0x853   :  { %3607 = vtanh.f32 %v2979_v13  ;;  %2989 = vst [vmem:[%s4543_s8] sm:$0xff] %v2979_v13 }
 0x85d   :  { %v3608_v32 = vpop.eup %3607 }
 0x85e   :  { %v2981_v16 = vmul.f32 %v3608_v32, %v3606_v24 }
 0x860   :  { %3331 = vst [vmem:[%s4542_s6 + $0x38] sm:$0xff] %v2981_v16  ;;  %2987 = vst [vmem:[%s4544_s7] sm:$0xff] %v2981_v16 }

</bundles_post_ra>
